<compile_context>
chip_gen: v7x
topology: tpu7x:2x2x1
jax: 0.10.0
libtpu: 0.0.40
codegen_flags: <defaults>
</compile_context>

<pallas_src>
import functools

import jax
import jax.numpy as jnp
from jax import lax
from jax.experimental import pallas as pl
from jax.experimental.pallas import tpu as pltpu

LANE = 128


def _round_up(x, m):
    return (x + m - 1) // m * m


def _pad_last(a, size, value=0.0):
    c = a.shape[-1]
    if c == size:
        return a
    pad = [(0, 0)] * (a.ndim - 1) + [(0, size - c)]
    return jnp.pad(a, pad, constant_values=value)


def _pad_weight(w_hwio, cpi, cpo):
    kh, kw, ci, co = w_hwio.shape
    return jnp.pad(w_hwio, ((0, 0), (0, 0), (0, cpi - ci), (0, cpo - co)))


def _row_chunks(Ho, Wo, max_rows=128):
    """Static row chunks (h0, th) so each chunk has <= ~max_rows output rows."""
    th = max(1, min(Ho, max_rows // max(Wo, 1)))
    chunks = []
    h0 = 0
    while h0 < Ho:
        ch = min(th, Ho - h0)
        chunks.append((h0, ch))
        h0 += ch
    return tuple(chunks)


# --------------------------- fully fused block kernel ---------------------------

def _block_kernel(*refs, equal_in_out, stride, H, W, Ho, Wo, chunks):
    if equal_in_out:
        (xph_ref, w1_ref, s1_ref, b1_ref, s2_ref, b2_ref, w2_ref,
         o_ref, act_scr, h_scr) = refs
        wsc_ref = None
    else:
        (xph_ref, w1_ref, s1_ref, b1_ref, s2_ref, b2_ref, w2_ref, wsc_ref,
         o_ref, act_scr, h_scr) = refs

    s = stride
    P = s * s
    Ci = xph_ref.shape[-1]            # true input channels (unpadded in HBM)
    Cpi = act_scr.shape[-1]           # lane-padded input channels (VMEM only)
    Cpo = h_scr.shape[-1]             # lane-padded output channels (VMEM only)
    Co = o_ref.shape[-1]              # true output channels (unpadded in HBM)
    Hph, Wph = act_scr.shape[1], act_scr.shape[2]

    # Per-step scratch init: zero the conv-padding rings and the unused lanes
    # (>= Ci).  Unconditional so it is correct under megacore grid sharding and
    # never reads uninitialized (possibly NaN) VMEM into the MXU.
    act_scr[...] = jnp.zeros_like(act_scr)
    h_scr[...] = jnp.zeros_like(h_scr)

    # ---- stage 1 (hoisted prologue): act = relu(bn1(x)) -> bf16 scratch ----
    # act_scr[p, i, j, :Ci] == relu(bn1(x))_padded[i*s + p//s, j*s + p%s, :],
    # with conv1's zero-padding ring (and round-up padding) forced to 0.
    s1 = s1_ref[...]                  # (1, Ci)
    b1 = b1_ref[...]
    for p in range(P):
        ph, pw = p // s, p % s
        xp = xph_ref[0, p]            # (Hph, Wph, Ci) f32
        a = jnp.maximum(xp * s1 + b1, 0.0)
        ii = lax.broadcasted_iota(jnp.int32, (Hph, Wph, 1), 0) * s + ph
        jj = lax.broadcasted_iota(jnp.int32, (Hph, Wph, 1), 1) * s + pw
        valid = jnp.logical_and(jnp.logical_and(ii >= 1, ii <= H),
                                jnp.logical_and(jj >= 1, jj <= W))
        act_scr[p, :, :, pl.ds(0, Ci)] = (
            jnp.where(valid, a, 0.0).astype(act_scr.dtype))

    # ---- stage 2: conv1 (3x3, stride s) -> bn2+relu -> h_scr (bf16, zero ring) ----
    s2 = s2_ref[...]                  # (1, Cpo)
    b2 = b2_ref[...]
    for h0, th in chunks:
        rows_c = th * Wo
        acc = jnp.zeros((rows_c, Cpo), jnp.float32)
        for kh in range(3):
            qh, rh = divmod(kh, s)
            for kw in range(3):
                qw, rw = divmod(kw, s)
                a = act_scr[rh * s + rw, pl.ds(h0 + qh, th), pl.ds(qw, Wo), :]
                acc = acc + jnp.dot(a.reshape(rows_c, Cpi), w1_ref[kh * 3 + kw],
                                    preferred_element_type=jnp.float32)
        h = jnp.maximum(acc * s2 + b2, 0.0)
        h_scr[pl.ds(1 + h0, th), pl.ds(1, Wo), :] = (
            h.reshape(th, Wo, Cpo).astype(h_scr.dtype))

    # ---- stage 3: conv2 (3x3, stride 1) + fused residual ----
    if not equal_in_out:
        # projection shortcut reads relu(bn1(x)) at padded coords (i*s+1, j*s+1)
        sq, sr = divmod(1, s)
        sphase = sr * s + sr
    for h0, th in chunks:
        rows_c = th * Wo
        acc = jnp.zeros((rows_c, Cpo), jnp.float32)
        for kh in range(3):
            for kw in range(3):
                hp = h_scr[pl.ds(h0 + kh, th), pl.ds(kw, Wo), :]
                acc = acc + jnp.dot(hp.reshape(rows_c, Cpo), w2_ref[kh * 3 + kw],
                                    preferred_element_type=jnp.float32)
        if equal_in_out:
            res = xph_ref[0, 0, pl.ds(1 + h0, th), pl.ds(1, Wo), :]   # raw x (f32)
            out = acc[:, :Co] + res.reshape(rows_c, Co)
        else:
            rr = act_scr[sphase, pl.ds(sq + h0, th), pl.ds(sq, Wo), :]  # bf16
            acc = acc + jnp.dot(rr.reshape(rows_c, Cpi), wsc_ref[...],
                                preferred_element_type=jnp.float32)
            out = acc[:, :Co]
        o_ref[0, pl.ds(h0 * Wo, rows_c), :] = out


# ----------------------------- Block forward -----------------------------

def block_forward(x_nchw, params, stride, equal_in_out):
    # TODO(synk): in a full network keep activations NHWC across blocks; the
    # NCHW<->NHWC transposes exist only to match the PyTorch interface.
    x = jnp.transpose(x_nchw, (0, 2, 3, 1)).astype(jnp.float32)
    N, H, W, Ci = x.shape
    Co = params["w1"].shape[-1]
    Cpi = _round_up(Ci, LANE)
    Cpo = _round_up(Co, LANE)
    s = stride
    Ho = (H - 1) // s + 1
    Wo = (W - 1) // s + 1
    Hp, Wp = H + 2, W + 2
    Hph, Wph = -(-Hp // s), -(-Wp // s)

    if equal_in_out:
        assert stride == 1, "identity shortcut requires stride == 1"

    # Spatial zero-pad (conv padding=1 + round-up) and polyphase split so every
    # in-kernel tap slice is stride-1.  Channels stay at true width in HBM.
    xpad = jnp.pad(x, ((0, 0), (1, Hph * s - Hp + 1), (1, Wph * s - Wp + 1), (0, 0)))
    xph = (xpad.reshape(N, Hph, s, Wph, s, Ci)
               .transpose(0, 2, 4, 1, 3, 5)
               .reshape(N, s * s, Hph, Wph, Ci))

    # Weights / folded-BN params: 128-lane padding lives only here (tiny) and
    # in the VMEM scratches -- never on the activation HBM path.
    w1_r = _pad_weight(params["w1"], Cpi, Cpo).reshape(9, Cpi, Cpo).astype(jnp.bfloat16)
    w2_r = _pad_weight(params["w2"], Cpo, Cpo).reshape(9, Cpo, Cpo).astype(jnp.bfloat16)
    s1 = params["bn1_scale"].reshape(1, Ci).astype(jnp.float32)
    b1 = params["bn1_bias"].reshape(1, Ci).astype(jnp.float32)
    s2 = _pad_last(params["bn2_scale"], Cpo, 1.0).reshape(1, Cpo).astype(jnp.float32)
    b2 = _pad_last(params["bn2_bias"], Cpo, 0.0).reshape(1, Cpo).astype(jnp.float32)

    chunks = _row_chunks(Ho, Wo, max_rows=128)
    kern = functools.partial(_block_kernel, equal_in_out=equal_in_out, stride=s,
                             H=H, W=W, Ho=Ho, Wo=Wo, chunks=chunks)

    in_specs = [
        pl.BlockSpec((1, s * s, Hph, Wph, Ci), lambda n: (n, 0, 0, 0, 0)),
        pl.BlockSpec((9, Cpi, Cpo), lambda n: (0, 0, 0)),
        pl.BlockSpec((1, Ci), lambda n: (0, 0)),
        pl.BlockSpec((1, Ci), lambda n: (0, 0)),
        pl.BlockSpec((1, Cpo), lambda n: (0, 0)),
        pl.BlockSpec((1, Cpo), lambda n: (0, 0)),
        pl.BlockSpec((9, Cpo, Cpo), lambda n: (0, 0, 0)),
    ]
    args = [xph, w1_r, s1, b1, s2, b2, w2_r]
    if not equal_in_out:
        wsc_r = _pad_weight(params["w_sc"], Cpi, Cpo).reshape(Cpi, Cpo).astype(jnp.bfloat16)
        in_specs.append(pl.BlockSpec((Cpi, Cpo), lambda n: (0, 0)))
        args.append(wsc_r)

    out = pl.pallas_call(
        kern,
        out_shape=jax.ShapeDtypeStruct((N, Ho * Wo, Co), jnp.float32),
        grid=(N,),
        in_specs=in_specs,
        out_specs=pl.BlockSpec((1, Ho * Wo, Co), lambda n: (n, 0, 0)),
        scratch_shapes=[
            pltpu.VMEM((s * s, Hph, Wph, Cpi), jnp.bfloat16),   # relu(bn1(x)), polyphase
            pltpu.VMEM((Ho + 2, Wo + 2, Cpo), jnp.bfloat16),    # relu(bn2(conv1)), padded
        ],
        compiler_params=pltpu.CompilerParams(dimension_semantics=("parallel",)),
    )(*args)

    return jnp.transpose(out.reshape(N, Ho, Wo, Co), (0, 3, 1, 2))   # back to NCHW


# ----------------------------- pure-JAX reference -----------------------------

def block_reference(x_nchw, params, stride, equal_in_out, emulate_bf16=False):
    x = jnp.transpose(x_nchw, (0, 2, 3, 1)).astype(jnp.float32)
    dn = ("NHWC", "HWIO", "NHWC")
    relu = lambda v: jnp.maximum(v, 0.0)

    def conv(v, w, strides, pad):
        if emulate_bf16:
            v = v.astype(jnp.bfloat16)
            w = w.astype(jnp.bfloat16)
        return lax.conv_general_dilated(v, w, strides, pad, dimension_numbers=dn,
                                        preferred_element_type=jnp.float32)

    out = relu(x * params["bn1_scale"] + params["bn1_bias"])
    residual = x if equal_in_out else out
    c1 = conv(out, params["w1"], (stride, stride), [(1, 1), (1, 1)])
    hh = relu(c1 * params["bn2_scale"] + params["bn2_bias"])
    c2 = conv(hh, params["w2"], (1, 1), [(1, 1), (1, 1)])
    if not equal_in_out:
        residual = conv(residual, params["w_sc"], (stride, stride), [(0, 0), (0, 0)])
    return jnp.transpose(c2 + residual, (0, 3, 1, 2))


# ----------------------------- deterministic params -----------------------------

def init_params(key, in_planes, out_planes, equal_in_out, eps=1e-5):
    ks = jax.random.split(key, 11)
    w1 = jax.random.normal(ks[0], (3, 3, in_planes, out_planes), jnp.float32) * 0.1
    w2 = jax.random.normal(ks[1], (3, 3, out_planes, out_planes), jnp.float32) * 0.1
    g1 = jax.random.uniform(ks[2], (in_planes,), jnp.float32, 0.5, 1.5)
    b1 = jax.random.normal(ks[3], (in_planes,), jnp.float32) * 0.1
    m1 = jax.random.normal(ks[4], (in_planes,), jnp.float32) * 0.1
    v1 = jax.random.uniform(ks[5], (in_planes,), jnp.float32, 0.5, 1.5)
    g2 = jax.random.uniform(ks[6], (out_planes,), jnp.float32, 0.5, 1.5)
    b2 = jax.random.normal(ks[7], (out_planes,), jnp.float32) * 0.1
    m2 = jax.random.normal(ks[8], (out_planes,), jnp.float32) * 0.1
    v2 = jax.random.uniform(ks[9], (out_planes,), jnp.float32, 0.5, 1.5)
    s1 = g1 / jnp.sqrt(v1 + eps)
    s2 = g2 / jnp.sqrt(v2 + eps)
    params = {
        "w1": w1, "w2": w2,
        "bn1_scale": s1, "bn1_bias": b1 - m1 * s1,
        "bn2_scale": s2, "bn2_bias": b2 - m2 * s2,
    }
    if not equal_in_out:
        params["w_sc"] = (
            jax.random.normal(ks[10], (1, 1, in_planes, out_planes), jnp.float32) * 0.1
        )
    return params


if __name__ == "__main__":
    key = jax.random.PRNGKey(0)
    fwd = jax.jit(block_forward, static_argnums=(2, 3))

    configs = [
        (4, 8, 2),   # projection shortcut: in != out, stride 2
        (8, 8, 1),   # identity shortcut:   in == out, stride 1
    ]
    for in_planes, out_planes, stride in configs:
        equal_in_out = in_planes == out_planes
        key, kx, kp = jax.random.split(key, 3)
        x = jax.random.normal(kx, (2, in_planes, 16, 16), jnp.float32)   # NCHW, like PyTorch
        params = init_params(kp, in_planes, out_planes, equal_in_out)

        y = jax.block_until_ready(fwd(x, params, stride, equal_in_out))
        Ho = (16 - 1) // stride + 1
        assert y.shape == (2, out_planes, Ho, Ho), y.shape

        # tight check vs a reference that emulates the kernel's bf16 matmul inputs
        y_bf = block_reference(x, params, stride, equal_in_out, emulate_bf16=True)
        if not jnp.allclose(y, y_bf, atol=2e-3, rtol=2e-3):
            raise AssertionError(
                f"mismatch vs bf16 reference cfg={(in_planes, out_planes, stride)}, "
                f"max err {jnp.max(jnp.abs(y - y_bf))}")
        # loose check vs the pure-f32 reference (bf16 matmul rounding tolerance)
        y_f32 = block_reference(x, params, stride, equal_in_out, emulate_bf16=False)
        if not jnp.allclose(y, y_f32, atol=3e-2, rtol=3e-2):
            raise AssertionError(
                f"mismatch vs f32 reference cfg={(in_planes, out_planes, stride)}, "
                f"max err {jnp.max(jnp.abs(y - y_f32))}")

    print("KERNEL_OK")
</pallas_src>

<mosaic_0001>
module attributes {stable_mosaic.version = 11 : i64} {
  func.func @_block_kernel(%arg0: i32, %arg1: memref<1x4x9x9x4xf32, #tpu.memory_space<vmem>>, %arg2: memref<9x128x128xbf16, #tpu.memory_space<vmem>>, %arg3: memref<1x4xf32, #tpu.memory_space<vmem>>, %arg4: memref<1x4xf32, #tpu.memory_space<vmem>>, %arg5: memref<1x128xf32, #tpu.memory_space<vmem>>, %arg6: memref<1x128xf32, #tpu.memory_space<vmem>>, %arg7: memref<9x128x128xbf16, #tpu.memory_space<vmem>>, %arg8: memref<128x128xbf16, #tpu.memory_space<vmem>>, %arg9: memref<1x64x8xf32, #tpu.memory_space<vmem>>, %arg10: memref<4x9x9x128xbf16, #tpu.memory_space<vmem>>, %arg11: memref<10x10x128xbf16, #tpu.memory_space<vmem>>) attributes {dimension_semantics = [#tpu.dimension_semantics<parallel>], iteration_bounds = array<i64: 2>, scalar_prefetch = 0 : i64, scratch_operands = 2 : i64, tpu.core_type = #tpu.core_type<tc>, window_params = [{transform_indices = @transform_0, window_bounds = array<i64: 1, 4, 9, 9, 4>}, {pipeline_mode = #tpu.pipeline_mode<synchronous>, transform_indices = @transform_1, window_bounds = array<i64: 9, 128, 128>}, {pipeline_mode = #tpu.pipeline_mode<synchronous>, transform_indices = @transform_2, window_bounds = array<i64: 1, 4>}, {pipeline_mode = #tpu.pipeline_mode<synchronous>, transform_indices = @transform_3, window_bounds = array<i64: 1, 4>}, {pipeline_mode = #tpu.pipeline_mode<synchronous>, transform_indices = @transform_4, window_bounds = array<i64: 1, 128>}, {pipeline_mode = #tpu.pipeline_mode<synchronous>, transform_indices = @transform_5, window_bounds = array<i64: 1, 128>}, {pipeline_mode = #tpu.pipeline_mode<synchronous>, transform_indices = @transform_6, window_bounds = array<i64: 9, 128, 128>}, {pipeline_mode = #tpu.pipeline_mode<synchronous>, transform_indices = @transform_7, window_bounds = array<i64: 128, 128>}, {transform_indices = @transform_8, window_bounds = array<i64: 1, 64, 8>}]} {
    %cst = arith.constant 0.000000e+00 : bf16
    %0 = vector.broadcast %cst : bf16 to vector<4x9x9x128xbf16>
    %c0 = arith.constant 0 : index
    %c0_0 = arith.constant 0 : index
    %c0_1 = arith.constant 0 : index
    %c0_2 = arith.constant 0 : index
    %1 = vector.load %arg10[%c0, %c0_0, %c0_1, %c0_2] : memref<4x9x9x128xbf16, #tpu.memory_space<vmem>>, vector<4x9x9x128xbf16>
    tpu.vector_store %arg10[%c0, %c0_0, %c0_1, %c0_2], %0 {strides = array<i32>} : memref<4x9x9x128xbf16, #tpu.memory_space<vmem>>, vector<4x9x9x128xbf16>,
    %cst_3 = arith.constant 0.000000e+00 : bf16
    %2 = vector.broadcast %cst_3 : bf16 to vector<10x10x128xbf16>
    %c0_4 = arith.constant 0 : index
    %c0_5 = arith.constant 0 : index
    %c0_6 = arith.constant 0 : index
    %3 = vector.load %arg11[%c0_4, %c0_5, %c0_6] : memref<10x10x128xbf16, #tpu.memory_space<vmem>>, vector<10x10x128xbf16>
    tpu.vector_store %arg11[%c0_4, %c0_5, %c0_6], %2 {strides = array<i32>} : memref<10x10x128xbf16, #tpu.memory_space<vmem>>, vector<10x10x128xbf16>,
    %c0_7 = arith.constant 0 : index
    %c0_8 = arith.constant 0 : index
    %4 = vector.load %arg3[%c0_7, %c0_8] : memref<1x4xf32, #tpu.memory_space<vmem>>, vector<1x4xf32>
    %c0_9 = arith.constant 0 : index
    %c0_10 = arith.constant 0 : index
    %5 = vector.load %arg4[%c0_9, %c0_10] : memref<1x4xf32, #tpu.memory_space<vmem>>, vector<1x4xf32>
    %c0_11 = arith.constant 0 : index
    %c0_12 = arith.constant 0 : index
    %c0_13 = arith.constant 0 : index
    %c0_14 = arith.constant 0 : index
    %c0_15 = arith.constant 0 : index
    %6 = vector.load %arg1[%c0_11, %c0_12, %c0_13, %c0_14, %c0_15] : memref<1x4x9x9x4xf32, #tpu.memory_space<vmem>>, vector<1x1x9x9x4xf32>
    %7 = vector.shape_cast %6 : vector<1x1x9x9x4xf32> to vector<9x9x4xf32>
    %8 = vector.shape_cast %4 : vector<1x4xf32> to vector<1x1x4xf32>
    %9 = vector.broadcast %8 : vector<1x1x4xf32> to vector<9x9x4xf32>
    %10 = arith.mulf %7, %9 : vector<9x9x4xf32>
    %11 = vector.shape_cast %5 : vector<1x4xf32> to vector<1x1x4xf32>
    %12 = vector.broadcast %11 : vector<1x1x4xf32> to vector<9x9x4xf32>
    %13 = arith.addf %10, %12 : vector<9x9x4xf32>
    %cst_16 = arith.constant 0.000000e+00 : f32
    %14 = vector.broadcast %cst_16 : f32 to vector<9x9x4xf32>
    %15 = arith.maximumf %13, %14 : vector<9x9x4xf32>
    %16 = tpu.iota {dimensions = array<i32: 0>} : vector<9x9x1xi32>
    %c2_i32 = arith.constant 2 : i32
    %17 = vector.broadcast %c2_i32 : i32 to vector<9x9x1xi32>
    %18 = arith.muli %16, %17 : vector<9x9x1xi32>
    %c0_i32 = arith.constant 0 : i32
    %19 = vector.broadcast %c0_i32 : i32 to vector<9x9x1xi32>
    %20 = arith.addi %18, %19 : vector<9x9x1xi32>
    %21 = tpu.iota {dimensions = array<i32: 1>} : vector<9x9x1xi32>
    %c2_i32_17 = arith.constant 2 : i32
    %22 = vector.broadcast %c2_i32_17 : i32 to vector<9x9x1xi32>
    %23 = arith.muli %21, %22 : vector<9x9x1xi32>
    %c0_i32_18 = arith.constant 0 : i32
    %24 = vector.broadcast %c0_i32_18 : i32 to vector<9x9x1xi32>
    %25 = arith.addi %23, %24 : vector<9x9x1xi32>
    %c1_i32 = arith.constant 1 : i32
    %26 = vector.broadcast %c1_i32 : i32 to vector<9x9x1xi32>
    %27 = arith.cmpi sge, %20, %26 : vector<9x9x1xi32>
    %c16_i32 = arith.constant 16 : i32
    %28 = vector.broadcast %c16_i32 : i32 to vector<9x9x1xi32>
    %29 = arith.cmpi sle, %20, %28 : vector<9x9x1xi32>
    %30 = arith.andi %27, %29 : vector<9x9x1xi1>
    %c1_i32_19 = arith.constant 1 : i32
    %31 = vector.broadcast %c1_i32_19 : i32 to vector<9x9x1xi32>
    %32 = arith.cmpi sge, %25, %31 : vector<9x9x1xi32>
    %c16_i32_20 = arith.constant 16 : i32
    %33 = vector.broadcast %c16_i32_20 : i32 to vector<9x9x1xi32>
    %34 = arith.cmpi sle, %25, %33 : vector<9x9x1xi32>
    %35 = arith.andi %32, %34 : vector<9x9x1xi1>
    %36 = arith.andi %30, %35 : vector<9x9x1xi1>
    %cst_21 = arith.constant 0.000000e+00 : f32
    %37 = vector.shape_cast %36 : vector<9x9x1xi1> to vector<9x9x1xi1>
    %38 = vector.broadcast %37 : vector<9x9x1xi1> to vector<9x9x4xi1>
    %39 = vector.broadcast %cst_21 : f32 to vector<9x9x4xf32>
    %40 = arith.select %38, %15, %39 : vector<9x9x4xi1>, vector<9x9x4xf32>
    %41 = arith.truncf %40 : vector<9x9x4xf32> to vector<9x9x4xbf16>
    %c0_22 = arith.constant 0 : index
    %c0_23 = arith.constant 0 : index
    %c0_24 = arith.constant 0 : index
    %c0_25 = arith.constant 0 : index
    %42 = vector.load %arg10[%c0_22, %c0_23, %c0_24, %c0_25] : memref<4x9x9x128xbf16, #tpu.memory_space<vmem>>, vector<1x9x9x4xbf16>
    %43 = vector.shape_cast %42 : vector<1x9x9x4xbf16> to vector<9x9x4xbf16>
    %44 = vector.shape_cast %41 : vector<9x9x4xbf16> to vector<1x9x9x4xbf16>
    tpu.vector_store %arg10[%c0_22, %c0_23, %c0_24, %c0_25], %44 {strides = array<i32>} : memref<4x9x9x128xbf16, #tpu.memory_space<vmem>>, vector<1x9x9x4xbf16>,
    %c0_26 = arith.constant 0 : index
    %c1 = arith.constant 1 : index
    %c0_27 = arith.constant 0 : index
    %c0_28 = arith.constant 0 : index
    %c0_29 = arith.constant 0 : index
    %45 = vector.load %arg1[%c0_26, %c1, %c0_27, %c0_28, %c0_29] : memref<1x4x9x9x4xf32, #tpu.memory_space<vmem>>, vector<1x1x9x9x4xf32>
    %46 = vector.shape_cast %45 : vector<1x1x9x9x4xf32> to vector<9x9x4xf32>
    %47 = vector.shape_cast %4 : vector<1x4xf32> to vector<1x1x4xf32>
    %48 = vector.broadcast %47 : vector<1x1x4xf32> to vector<9x9x4xf32>
    %49 = arith.mulf %46, %48 : vector<9x9x4xf32>
    %50 = vector.shape_cast %5 : vector<1x4xf32> to vector<1x1x4xf32>
    %51 = vector.broadcast %50 : vector<1x1x4xf32> to vector<9x9x4xf32>
    %52 = arith.addf %49, %51 : vector<9x9x4xf32>
    %cst_30 = arith.constant 0.000000e+00 : f32
    %53 = vector.broadcast %cst_30 : f32 to vector<9x9x4xf32>
    %54 = arith.maximumf %52, %53 : vector<9x9x4xf32>
    %55 = tpu.iota {dimensions = array<i32: 0>} : vector<9x9x1xi32>
    %c2_i32_31 = arith.constant 2 : i32
    %56 = vector.broadcast %c2_i32_31 : i32 to vector<9x9x1xi32>
    %57 = arith.muli %55, %56 : vector<9x9x1xi32>
    %c0_i32_32 = arith.constant 0 : i32
    %58 = vector.broadcast %c0_i32_32 : i32 to vector<9x9x1xi32>
    %59 = arith.addi %57, %58 : vector<9x9x1xi32>
    %60 = tpu.iota {dimensions = array<i32: 1>} : vector<9x9x1xi32>
    %c2_i32_33 = arith.constant 2 : i32
    %61 = vector.broadcast %c2_i32_33 : i32 to vector<9x9x1xi32>
    %62 = arith.muli %60, %61 : vector<9x9x1xi32>
    %c1_i32_34 = arith.constant 1 : i32
    %63 = vector.broadcast %c1_i32_34 : i32 to vector<9x9x1xi32>
    %64 = arith.addi %62, %63 : vector<9x9x1xi32>
    %c1_i32_35 = arith.constant 1 : i32
    %65 = vector.broadcast %c1_i32_35 : i32 to vector<9x9x1xi32>
    %66 = arith.cmpi sge, %59, %65 : vector<9x9x1xi32>
    %c16_i32_36 = arith.constant 16 : i32
    %67 = vector.broadcast %c16_i32_36 : i32 to vector<9x9x1xi32>
    %68 = arith.cmpi sle, %59, %67 : vector<9x9x1xi32>
    %69 = arith.andi %66, %68 : vector<9x9x1xi1>
    %c1_i32_37 = arith.constant 1 : i32
    %70 = vector.broadcast %c1_i32_37 : i32 to vector<9x9x1xi32>
    %71 = arith.cmpi sge, %64, %70 : vector<9x9x1xi32>
    %c16_i32_38 = arith.constant 16 : i32
    %72 = vector.broadcast %c16_i32_38 : i32 to vector<9x9x1xi32>
    %73 = arith.cmpi sle, %64, %72 : vector<9x9x1xi32>
    %74 = arith.andi %71, %73 : vector<9x9x1xi1>
    %75 = arith.andi %69, %74 : vector<9x9x1xi1>
    %cst_39 = arith.constant 0.000000e+00 : f32
    %76 = vector.shape_cast %75 : vector<9x9x1xi1> to vector<9x9x1xi1>
    %77 = vector.broadcast %76 : vector<9x9x1xi1> to vector<9x9x4xi1>
    %78 = vector.broadcast %cst_39 : f32 to vector<9x9x4xf32>
    %79 = arith.select %77, %54, %78 : vector<9x9x4xi1>, vector<9x9x4xf32>
    %80 = arith.truncf %79 : vector<9x9x4xf32> to vector<9x9x4xbf16>
    %c1_40 = arith.constant 1 : index
    %c0_41 = arith.constant 0 : index
    %c0_42 = arith.constant 0 : index
    %c0_43 = arith.constant 0 : index
    %81 = vector.load %arg10[%c1_40, %c0_41, %c0_42, %c0_43] : memref<4x9x9x128xbf16, #tpu.memory_space<vmem>>, vector<1x9x9x4xbf16>
    %82 = vector.shape_cast %81 : vector<1x9x9x4xbf16> to vector<9x9x4xbf16>
    %83 = vector.shape_cast %80 : vector<9x9x4xbf16> to vector<1x9x9x4xbf16>
    tpu.vector_store %arg10[%c1_40, %c0_41, %c0_42, %c0_43], %83 {strides = array<i32>} : memref<4x9x9x128xbf16, #tpu.memory_space<vmem>>, vector<1x9x9x4xbf16>,
    %c0_44 = arith.constant 0 : index
    %c2 = arith.constant 2 : index
    %c0_45 = arith.constant 0 : index
    %c0_46 = arith.constant 0 : index
    %c0_47 = arith.constant 0 : index
    %84 = vector.load %arg1[%c0_44, %c2, %c0_45, %c0_46, %c0_47] : memref<1x4x9x9x4xf32, #tpu.memory_space<vmem>>, vector<1x1x9x9x4xf32>
    %85 = vector.shape_cast %84 : vector<1x1x9x9x4xf32> to vector<9x9x4xf32>
    %86 = vector.shape_cast %4 : vector<1x4xf32> to vector<1x1x4xf32>
    %87 = vector.broadcast %86 : vector<1x1x4xf32> to vector<9x9x4xf32>
    %88 = arith.mulf %85, %87 : vector<9x9x4xf32>
    %89 = vector.shape_cast %5 : vector<1x4xf32> to vector<1x1x4xf32>
    %90 = vector.broadcast %89 : vector<1x1x4xf32> to vector<9x9x4xf32>
    %91 = arith.addf %88, %90 : vector<9x9x4xf32>
    %cst_48 = arith.constant 0.000000e+00 : f32
    %92 = vector.broadcast %cst_48 : f32 to vector<9x9x4xf32>
    %93 = arith.maximumf %91, %92 : vector<9x9x4xf32>
    %94 = tpu.iota {dimensions = array<i32: 0>} : vector<9x9x1xi32>
    %c2_i32_49 = arith.constant 2 : i32
    %95 = vector.broadcast %c2_i32_49 : i32 to vector<9x9x1xi32>
    %96 = arith.muli %94, %95 : vector<9x9x1xi32>
    %c1_i32_50 = arith.constant 1 : i32
    %97 = vector.broadcast %c1_i32_50 : i32 to vector<9x9x1xi32>
    %98 = arith.addi %96, %97 : vector<9x9x1xi32>
    %99 = tpu.iota {dimensions = array<i32: 1>} : vector<9x9x1xi32>
    %c2_i32_51 = arith.constant 2 : i32
    %100 = vector.broadcast %c2_i32_51 : i32 to vector<9x9x1xi32>
    %101 = arith.muli %99, %100 : vector<9x9x1xi32>
    %c0_i32_52 = arith.constant 0 : i32
    %102 = vector.broadcast %c0_i32_52 : i32 to vector<9x9x1xi32>
    %103 = arith.addi %101, %102 : vector<9x9x1xi32>
    %c1_i32_53 = arith.constant 1 : i32
    %104 = vector.broadcast %c1_i32_53 : i32 to vector<9x9x1xi32>
    %105 = arith.cmpi sge, %98, %104 : vector<9x9x1xi32>
    %c16_i32_54 = arith.constant 16 : i32
    %106 = vector.broadcast %c16_i32_54 : i32 to vector<9x9x1xi32>
    %107 = arith.cmpi sle, %98, %106 : vector<9x9x1xi32>
    %108 = arith.andi %105, %107 : vector<9x9x1xi1>
    %c1_i32_55 = arith.constant 1 : i32
    %109 = vector.broadcast %c1_i32_55 : i32 to vector<9x9x1xi32>
    %110 = arith.cmpi sge, %103, %109 : vector<9x9x1xi32>
    %c16_i32_56 = arith.constant 16 : i32
    %111 = vector.broadcast %c16_i32_56 : i32 to vector<9x9x1xi32>
    %112 = arith.cmpi sle, %103, %111 : vector<9x9x1xi32>
    %113 = arith.andi %110, %112 : vector<9x9x1xi1>
    %114 = arith.andi %108, %113 : vector<9x9x1xi1>
    %cst_57 = arith.constant 0.000000e+00 : f32
    %115 = vector.shape_cast %114 : vector<9x9x1xi1> to vector<9x9x1xi1>
    %116 = vector.broadcast %115 : vector<9x9x1xi1> to vector<9x9x4xi1>
    %117 = vector.broadcast %cst_57 : f32 to vector<9x9x4xf32>
    %118 = arith.select %116, %93, %117 : vector<9x9x4xi1>, vector<9x9x4xf32>
    %119 = arith.truncf %118 : vector<9x9x4xf32> to vector<9x9x4xbf16>
    %c2_58 = arith.constant 2 : index
    %c0_59 = arith.constant 0 : index
    %c0_60 = arith.constant 0 : index
    %c0_61 = arith.constant 0 : index
    %120 = vector.load %arg10[%c2_58, %c0_59, %c0_60, %c0_61] : memref<4x9x9x128xbf16, #tpu.memory_space<vmem>>, vector<1x9x9x4xbf16>
    %121 = vector.shape_cast %120 : vector<1x9x9x4xbf16> to vector<9x9x4xbf16>
    %122 = vector.shape_cast %119 : vector<9x9x4xbf16> to vector<1x9x9x4xbf16>
    tpu.vector_store %arg10[%c2_58, %c0_59, %c0_60, %c0_61], %122 {strides = array<i32>} : memref<4x9x9x128xbf16, #tpu.memory_space<vmem>>, vector<1x9x9x4xbf16>,
    %c0_62 = arith.constant 0 : index
    %c3 = arith.constant 3 : index
    %c0_63 = arith.constant 0 : index
    %c0_64 = arith.constant 0 : index
    %c0_65 = arith.constant 0 : index
    %123 = vector.load %arg1[%c0_62, %c3, %c0_63, %c0_64, %c0_65] : memref<1x4x9x9x4xf32, #tpu.memory_space<vmem>>, vector<1x1x9x9x4xf32>
    %124 = vector.shape_cast %123 : vector<1x1x9x9x4xf32> to vector<9x9x4xf32>
    %125 = vector.shape_cast %4 : vector<1x4xf32> to vector<1x1x4xf32>
    %126 = vector.broadcast %125 : vector<1x1x4xf32> to vector<9x9x4xf32>
    %127 = arith.mulf %124, %126 : vector<9x9x4xf32>
    %128 = vector.shape_cast %5 : vector<1x4xf32> to vector<1x1x4xf32>
    %129 = vector.broadcast %128 : vector<1x1x4xf32> to vector<9x9x4xf32>
    %130 = arith.addf %127, %129 : vector<9x9x4xf32>
    %cst_66 = arith.constant 0.000000e+00 : f32
    %131 = vector.broadcast %cst_66 : f32 to vector<9x9x4xf32>
    %132 = arith.maximumf %130, %131 : vector<9x9x4xf32>
    %133 = tpu.iota {dimensions = array<i32: 0>} : vector<9x9x1xi32>
    %c2_i32_67 = arith.constant 2 : i32
    %134 = vector.broadcast %c2_i32_67 : i32 to vector<9x9x1xi32>
    %135 = arith.muli %133, %134 : vector<9x9x1xi32>
    %c1_i32_68 = arith.constant 1 : i32
    %136 = vector.broadcast %c1_i32_68 : i32 to vector<9x9x1xi32>
    %137 = arith.addi %135, %136 : vector<9x9x1xi32>
    %138 = tpu.iota {dimensions = array<i32: 1>} : vector<9x9x1xi32>
    %c2_i32_69 = arith.constant 2 : i32
    %139 = vector.broadcast %c2_i32_69 : i32 to vector<9x9x1xi32>
    %140 = arith.muli %138, %139 : vector<9x9x1xi32>
    %c1_i32_70 = arith.constant 1 : i32
    %141 = vector.broadcast %c1_i32_70 : i32 to vector<9x9x1xi32>
    %142 = arith.addi %140, %141 : vector<9x9x1xi32>
    %c1_i32_71 = arith.constant 1 : i32
    %143 = vector.broadcast %c1_i32_71 : i32 to vector<9x9x1xi32>
    %144 = arith.cmpi sge, %137, %143 : vector<9x9x1xi32>
    %c16_i32_72 = arith.constant 16 : i32
    %145 = vector.broadcast %c16_i32_72 : i32 to vector<9x9x1xi32>
    %146 = arith.cmpi sle, %137, %145 : vector<9x9x1xi32>
    %147 = arith.andi %144, %146 : vector<9x9x1xi1>
    %c1_i32_73 = arith.constant 1 : i32
    %148 = vector.broadcast %c1_i32_73 : i32 to vector<9x9x1xi32>
    %149 = arith.cmpi sge, %142, %148 : vector<9x9x1xi32>
    %c16_i32_74 = arith.constant 16 : i32
    %150 = vector.broadcast %c16_i32_74 : i32 to vector<9x9x1xi32>
    %151 = arith.cmpi sle, %142, %150 : vector<9x9x1xi32>
    %152 = arith.andi %149, %151 : vector<9x9x1xi1>
    %153 = arith.andi %147, %152 : vector<9x9x1xi1>
    %cst_75 = arith.constant 0.000000e+00 : f32
    %154 = vector.shape_cast %153 : vector<9x9x1xi1> to vector<9x9x1xi1>
    %155 = vector.broadcast %154 : vector<9x9x1xi1> to vector<9x9x4xi1>
    %156 = vector.broadcast %cst_75 : f32 to vector<9x9x4xf32>
    %157 = arith.select %155, %132, %156 : vector<9x9x4xi1>, vector<9x9x4xf32>
    %158 = arith.truncf %157 : vector<9x9x4xf32> to vector<9x9x4xbf16>
    %c3_76 = arith.constant 3 : index
    %c0_77 = arith.constant 0 : index
    %c0_78 = arith.constant 0 : index
    %c0_79 = arith.constant 0 : index
    %159 = vector.load %arg10[%c3_76, %c0_77, %c0_78, %c0_79] : memref<4x9x9x128xbf16, #tpu.memory_space<vmem>>, vector<1x9x9x4xbf16>
    %160 = vector.shape_cast %159 : vector<1x9x9x4xbf16> to vector<9x9x4xbf16>
    %161 = vector.shape_cast %158 : vector<9x9x4xbf16> to vector<1x9x9x4xbf16>
    tpu.vector_store %arg10[%c3_76, %c0_77, %c0_78, %c0_79], %161 {strides = array<i32>} : memref<4x9x9x128xbf16, #tpu.memory_space<vmem>>, vector<1x9x9x4xbf16>,
    %c0_80 = arith.constant 0 : index
    %c0_81 = arith.constant 0 : index
    %162 = vector.load %arg5[%c0_80, %c0_81] : memref<1x128xf32, #tpu.memory_space<vmem>>, vector<1x128xf32>
    %c0_82 = arith.constant 0 : index
    %c0_83 = arith.constant 0 : index
    %163 = vector.load %arg6[%c0_82, %c0_83] : memref<1x128xf32, #tpu.memory_space<vmem>>, vector<1x128xf32>
    %cst_84 = arith.constant 0.000000e+00 : f32
    %164 = vector.broadcast %cst_84 : f32 to vector<64x128xf32>
    %c0_85 = arith.constant 0 : index
    %c0_86 = arith.constant 0 : index
    %c0_87 = arith.constant 0 : index
    %c0_88 = arith.constant 0 : index
    %165 = vector.load %arg10[%c0_85, %c0_86, %c0_87, %c0_88] : memref<4x9x9x128xbf16, #tpu.memory_space<vmem>>, vector<1x8x8x128xbf16>
    %166 = vector.shape_cast %165 : vector<1x8x8x128xbf16> to vector<8x8x128xbf16>
    %167 = vector.shape_cast %166 : vector<8x8x128xbf16> to vector<64x128xbf16>
    %c0_89 = arith.constant 0 : index
    %c0_90 = arith.constant 0 : index
    %c0_91 = arith.constant 0 : index
    %168 = vector.load %arg2[%c0_89, %c0_90, %c0_91] : memref<9x128x128xbf16, #tpu.memory_space<vmem>>, vector<1x128x128xbf16>
    %169 = vector.shape_cast %168 : vector<1x128x128xbf16> to vector<128x128xbf16>
    %cst_92 = arith.constant dense<0.000000e+00> : vector<64x128xf32>
    %170 = tpu.matmul %167, %169, %cst_92 {dimension_numbers = #tpu.dot_dimension_numbers<[1], [0], [0], [1], [0, 0, 1, 1], [], []>} : vector<64x128xbf16>, vector<128x128xbf16>, vector<64x128xf32> -> vector<64x128xf32>
    %171 = arith.addf %164, %170 : vector<64x128xf32>
    %c1_93 = arith.constant 1 : index
    %c0_94 = arith.constant 0 : index
    %c0_95 = arith.constant 0 : index
    %c0_96 = arith.constant 0 : index
    %172 = vector.load %arg10[%c1_93, %c0_94, %c0_95, %c0_96] : memref<4x9x9x128xbf16, #tpu.memory_space<vmem>>, vector<1x8x8x128xbf16>
    %173 = vector.shape_cast %172 : vector<1x8x8x128xbf16> to vector<8x8x128xbf16>
    %174 = vector.shape_cast %173 : vector<8x8x128xbf16> to vector<64x128xbf16>
    %c1_97 = arith.constant 1 : index
    %c0_98 = arith.constant 0 : index
    %c0_99 = arith.constant 0 : index
    %175 = vector.load %arg2[%c1_97, %c0_98, %c0_99] : memref<9x128x128xbf16, #tpu.memory_space<vmem>>, vector<1x128x128xbf16>
    %176 = vector.shape_cast %175 : vector<1x128x128xbf16> to vector<128x128xbf16>
    %cst_100 = arith.constant dense<0.000000e+00> : vector<64x128xf32>
    %177 = tpu.matmul %174, %176, %cst_100 {dimension_numbers = #tpu.dot_dimension_numbers<[1], [0], [0], [1], [0, 0, 1, 1], [], []>} : vector<64x128xbf16>, vector<128x128xbf16>, vector<64x128xf32> -> vector<64x128xf32>
    %178 = arith.addf %171, %177 : vector<64x128xf32>
    %c0_101 = arith.constant 0 : index
    %c0_102 = arith.constant 0 : index
    %c1_103 = arith.constant 1 : index
    %c0_104 = arith.constant 0 : index
    %179 = vector.load %arg10[%c0_101, %c0_102, %c1_103, %c0_104] : memref<4x9x9x128xbf16, #tpu.memory_space<vmem>>, vector<1x8x8x128xbf16>
    %180 = vector.shape_cast %179 : vector<1x8x8x128xbf16> to vector<8x8x128xbf16>
    %181 = vector.shape_cast %180 : vector<8x8x128xbf16> to vector<64x128xbf16>
    %c2_105 = arith.constant 2 : index
    %c0_106 = arith.constant 0 : index
    %c0_107 = arith.constant 0 : index
    %182 = vector.load %arg2[%c2_105, %c0_106, %c0_107] : memref<9x128x128xbf16, #tpu.memory_space<vmem>>, vector<1x128x128xbf16>
    %183 = vector.shape_cast %182 : vector<1x128x128xbf16> to vector<128x128xbf16>
    %cst_108 = arith.constant dense<0.000000e+00> : vector<64x128xf32>
    %184 = tpu.matmul %181, %183, %cst_108 {dimension_numbers = #tpu.dot_dimension_numbers<[1], [0], [0], [1], [0, 0, 1, 1], [], []>} : vector<64x128xbf16>, vector<128x128xbf16>, vector<64x128xf32> -> vector<64x128xf32>
    %185 = arith.addf %178, %184 : vector<64x128xf32>
    %c2_109 = arith.constant 2 : index
    %c0_110 = arith.constant 0 : index
    %c0_111 = arith.constant 0 : index
    %c0_112 = arith.constant 0 : index
    %186 = vector.load %arg10[%c2_109, %c0_110, %c0_111, %c0_112] : memref<4x9x9x128xbf16, #tpu.memory_space<vmem>>, vector<1x8x8x128xbf16>
    %187 = vector.shape_cast %186 : vector<1x8x8x128xbf16> to vector<8x8x128xbf16>
    %188 = vector.shape_cast %187 : vector<8x8x128xbf16> to vector<64x128xbf16>
    %c3_113 = arith.constant 3 : index
    %c0_114 = arith.constant 0 : index
    %c0_115 = arith.constant 0 : index
    %189 = vector.load %arg2[%c3_113, %c0_114, %c0_115] : memref<9x128x128xbf16, #tpu.memory_space<vmem>>, vector<1x128x128xbf16>
    %190 = vector.shape_cast %189 : vector<1x128x128xbf16> to vector<128x128xbf16>
    %cst_116 = arith.constant dense<0.000000e+00> : vector<64x128xf32>
    %191 = tpu.matmul %188, %190, %cst_116 {dimension_numbers = #tpu.dot_dimension_numbers<[1], [0], [0], [1], [0, 0, 1, 1], [], []>} : vector<64x128xbf16>, vector<128x128xbf16>, vector<64x128xf32> -> vector<64x128xf32>
    %192 = arith.addf %185, %191 : vector<64x128xf32>
    %c3_117 = arith.constant 3 : index
    %c0_118 = arith.constant 0 : index
    %c0_119 = arith.constant 0 : index
    %c0_120 = arith.constant 0 : index
    %193 = vector.load %arg10[%c3_117, %c0_118, %c0_119, %c0_120] : memref<4x9x9x128xbf16, #tpu.memory_space<vmem>>, vector<1x8x8x128xbf16>
    %194 = vector.shape_cast %193 : vector<1x8x8x128xbf16> to vector<8x8x128xbf16>
    %195 = vector.shape_cast %194 : vector<8x8x128xbf16> to vector<64x128xbf16>
    %c4 = arith.constant 4 : index
    %c0_121 = arith.constant 0 : index
    %c0_122 = arith.constant 0 : index
    %196 = vector.load %arg2[%c4, %c0_121, %c0_122] : memref<9x128x128xbf16, #tpu.memory_space<vmem>>, vector<1x128x128xbf16>
    %197 = vector.shape_cast %196 : vector<1x128x128xbf16> to vector<128x128xbf16>
    %cst_123 = arith.constant dense<0.000000e+00> : vector<64x128xf32>
    %198 = tpu.matmul %195, %197, %cst_123 {dimension_numbers = #tpu.dot_dimension_numbers<[1], [0], [0], [1], [0, 0, 1, 1], [], []>} : vector<64x128xbf16>, vector<128x128xbf16>, vector<64x128xf32> -> vector<64x128xf32>
    %199 = arith.addf %192, %198 : vector<64x128xf32>
    %c2_124 = arith.constant 2 : index
    %c0_125 = arith.constant 0 : index
    %c1_126 = arith.constant 1 : index
    %c0_127 = arith.constant 0 : index
    %200 = vector.load %arg10[%c2_124, %c0_125, %c1_126, %c0_127] : memref<4x9x9x128xbf16, #tpu.memory_space<vmem>>, vector<1x8x8x128xbf16>
    %201 = vector.shape_cast %200 : vector<1x8x8x128xbf16> to vector<8x8x128xbf16>
    %202 = vector.shape_cast %201 : vector<8x8x128xbf16> to vector<64x128xbf16>
    %c5 = arith.constant 5 : index
    %c0_128 = arith.constant 0 : index
    %c0_129 = arith.constant 0 : index
    %203 = vector.load %arg2[%c5, %c0_128, %c0_129] : memref<9x128x128xbf16, #tpu.memory_space<vmem>>, vector<1x128x128xbf16>
    %204 = vector.shape_cast %203 : vector<1x128x128xbf16> to vector<128x128xbf16>
    %cst_130 = arith.constant dense<0.000000e+00> : vector<64x128xf32>
    %205 = tpu.matmul %202, %204, %cst_130 {dimension_numbers = #tpu.dot_dimension_numbers<[1], [0], [0], [1], [0, 0, 1, 1], [], []>} : vector<64x128xbf16>, vector<128x128xbf16>, vector<64x128xf32> -> vector<64x128xf32>
    %206 = arith.addf %199, %205 : vector<64x128xf32>
    %c0_131 = arith.constant 0 : index
    %c1_132 = arith.constant 1 : index
    %c0_133 = arith.constant 0 : index
    %c0_134 = arith.constant 0 : index
    %207 = vector.load %arg10[%c0_131, %c1_132, %c0_133, %c0_134] : memref<4x9x9x128xbf16, #tpu.memory_space<vmem>>, vector<1x8x8x128xbf16>
    %208 = vector.shape_cast %207 : vector<1x8x8x128xbf16> to vector<8x8x128xbf16>
    %209 = vector.shape_cast %208 : vector<8x8x128xbf16> to vector<64x128xbf16>
    %c6 = arith.constant 6 : index
    %c0_135 = arith.constant 0 : index
    %c0_136 = arith.constant 0 : index
    %210 = vector.load %arg2[%c6, %c0_135, %c0_136] : memref<9x128x128xbf16, #tpu.memory_space<vmem>>, vector<1x128x128xbf16>
    %211 = vector.shape_cast %210 : vector<1x128x128xbf16> to vector<128x128xbf16>
    %cst_137 = arith.constant dense<0.000000e+00> : vector<64x128xf32>
    %212 = tpu.matmul %209, %211, %cst_137 {dimension_numbers = #tpu.dot_dimension_numbers<[1], [0], [0], [1], [0, 0, 1, 1], [], []>} : vector<64x128xbf16>, vector<128x128xbf16>, vector<64x128xf32> -> vector<64x128xf32>
    %213 = arith.addf %206, %212 : vector<64x128xf32>
    %c1_138 = arith.constant 1 : index
    %c1_139 = arith.constant 1 : index
    %c0_140 = arith.constant 0 : index
    %c0_141 = arith.constant 0 : index
    %214 = vector.load %arg10[%c1_138, %c1_139, %c0_140, %c0_141] : memref<4x9x9x128xbf16, #tpu.memory_space<vmem>>, vector<1x8x8x128xbf16>
    %215 = vector.shape_cast %214 : vector<1x8x8x128xbf16> to vector<8x8x128xbf16>
    %216 = vector.shape_cast %215 : vector<8x8x128xbf16> to vector<64x128xbf16>
    %c7 = arith.constant 7 : index
    %c0_142 = arith.constant 0 : index
    %c0_143 = arith.constant 0 : index
    %217 = vector.load %arg2[%c7, %c0_142, %c0_143] : memref<9x128x128xbf16, #tpu.memory_space<vmem>>, vector<1x128x128xbf16>
    %218 = vector.shape_cast %217 : vector<1x128x128xbf16> to vector<128x128xbf16>
    %cst_144 = arith.constant dense<0.000000e+00> : vector<64x128xf32>
    %219 = tpu.matmul %216, %218, %cst_144 {dimension_numbers = #tpu.dot_dimension_numbers<[1], [0], [0], [1], [0, 0, 1, 1], [], []>} : vector<64x128xbf16>, vector<128x128xbf16>, vector<64x128xf32> -> vector<64x128xf32>
    %220 = arith.addf %213, %219 : vector<64x128xf32>
    %c0_145 = arith.constant 0 : index
    %c1_146 = arith.constant 1 : index
    %c1_147 = arith.constant 1 : index
    %c0_148 = arith.constant 0 : index
    %221 = vector.load %arg10[%c0_145, %c1_146, %c1_147, %c0_148] : memref<4x9x9x128xbf16, #tpu.memory_space<vmem>>, vector<1x8x8x128xbf16>
    %222 = vector.shape_cast %221 : vector<1x8x8x128xbf16> to vector<8x8x128xbf16>
    %223 = vector.shape_cast %222 : vector<8x8x128xbf16> to vector<64x128xbf16>
    %c8 = arith.constant 8 : index
    %c0_149 = arith.constant 0 : index
    %c0_150 = arith.constant 0 : index
    %224 = vector.load %arg2[%c8, %c0_149, %c0_150] : memref<9x128x128xbf16, #tpu.memory_space<vmem>>, vector<1x128x128xbf16>
    %225 = vector.shape_cast %224 : vector<1x128x128xbf16> to vector<128x128xbf16>
    %cst_151 = arith.constant dense<0.000000e+00> : vector<64x128xf32>
    %226 = tpu.matmul %223, %225, %cst_151 {dimension_numbers = #tpu.dot_dimension_numbers<[1], [0], [0], [1], [0, 0, 1, 1], [], []>} : vector<64x128xbf16>, vector<128x128xbf16>, vector<64x128xf32> -> vector<64x128xf32>
    %227 = arith.addf %220, %226 : vector<64x128xf32>
    %228 = vector.broadcast %162 : vector<1x128xf32> to vector<64x128xf32>
    %229 = arith.mulf %227, %228 : vector<64x128xf32>
    %230 = vector.broadcast %163 : vector<1x128xf32> to vector<64x128xf32>
    %231 = arith.addf %229, %230 : vector<64x128xf32>
    %cst_152 = arith.constant 0.000000e+00 : f32
    %232 = vector.broadcast %cst_152 : f32 to vector<64x128xf32>
    %233 = arith.maximumf %231, %232 : vector<64x128xf32>
    %234 = vector.shape_cast %233 : vector<64x128xf32> to vector<8x8x128xf32>
    %235 = arith.truncf %234 : vector<8x8x128xf32> to vector<8x8x128xbf16>
    %c1_153 = arith.constant 1 : index
    %c1_154 = arith.constant 1 : index
    %c0_155 = arith.constant 0 : index
    %236 = vector.load %arg11[%c1_153, %c1_154, %c0_155] : memref<10x10x128xbf16, #tpu.memory_space<vmem>>, vector<8x8x128xbf16>
    tpu.vector_store %arg11[%c1_153, %c1_154, %c0_155], %235 {strides = array<i32>} : memref<10x10x128xbf16, #tpu.memory_space<vmem>>, vector<8x8x128xbf16>,
    %cst_156 = arith.constant 0.000000e+00 : f32
    %237 = vector.broadcast %cst_156 : f32 to vector<64x128xf32>
    %c0_157 = arith.constant 0 : index
    %c0_158 = arith.constant 0 : index
    %c0_159 = arith.constant 0 : index
    %238 = vector.load %arg11[%c0_157, %c0_158, %c0_159] : memref<10x10x128xbf16, #tpu.memory_space<vmem>>, vector<8x8x128xbf16>
    %239 = vector.shape_cast %238 : vector<8x8x128xbf16> to vector<64x128xbf16>
    %c0_160 = arith.constant 0 : index
    %c0_161 = arith.constant 0 : index
    %c0_162 = arith.constant 0 : index
    %240 = vector.load %arg7[%c0_160, %c0_161, %c0_162] : memref<9x128x128xbf16, #tpu.memory_space<vmem>>, vector<1x128x128xbf16>
    %241 = vector.shape_cast %240 : vector<1x128x128xbf16> to vector<128x128xbf16>
    %cst_163 = arith.constant dense<0.000000e+00> : vector<64x128xf32>
    %242 = tpu.matmul %239, %241, %cst_163 {dimension_numbers = #tpu.dot_dimension_numbers<[1], [0], [0], [1], [0, 0, 1, 1], [], []>} : vector<64x128xbf16>, vector<128x128xbf16>, vector<64x128xf32> -> vector<64x128xf32>
    %243 = arith.addf %237, %242 : vector<64x128xf32>
    %c0_164 = arith.constant 0 : index
    %c1_165 = arith.constant 1 : index
    %c0_166 = arith.constant 0 : index
    %244 = vector.load %arg11[%c0_164, %c1_165, %c0_166] : memref<10x10x128xbf16, #tpu.memory_space<vmem>>, vector<8x8x128xbf16>
    %245 = vector.shape_cast %244 : vector<8x8x128xbf16> to vector<64x128xbf16>
    %c1_167 = arith.constant 1 : index
    %c0_168 = arith.constant 0 : index
    %c0_169 = arith.constant 0 : index
    %246 = vector.load %arg7[%c1_167, %c0_168, %c0_169] : memref<9x128x128xbf16, #tpu.memory_space<vmem>>, vector<1x128x128xbf16>
    %247 = vector.shape_cast %246 : vector<1x128x128xbf16> to vector<128x128xbf16>
    %cst_170 = arith.constant dense<0.000000e+00> : vector<64x128xf32>
    %248 = tpu.matmul %245, %247, %cst_170 {dimension_numbers = #tpu.dot_dimension_numbers<[1], [0], [0], [1], [0, 0, 1, 1], [], []>} : vector<64x128xbf16>, vector<128x128xbf16>, vector<64x128xf32> -> vector<64x128xf32>
    %249 = arith.addf %243, %248 : vector<64x128xf32>
    %c0_171 = arith.constant 0 : index
    %c2_172 = arith.constant 2 : index
    %c0_173 = arith.constant 0 : index
    %250 = vector.load %arg11[%c0_171, %c2_172, %c0_173] : memref<10x10x128xbf16, #tpu.memory_space<vmem>>, vector<8x8x128xbf16>
    %251 = vector.shape_cast %250 : vector<8x8x128xbf16> to vector<64x128xbf16>
    %c2_174 = arith.constant 2 : index
    %c0_175 = arith.constant 0 : index
    %c0_176 = arith.constant 0 : index
    %252 = vector.load %arg7[%c2_174, %c0_175, %c0_176] : memref<9x128x128xbf16, #tpu.memory_space<vmem>>, vector<1x128x128xbf16>
    %253 = vector.shape_cast %252 : vector<1x128x128xbf16> to vector<128x128xbf16>
    %cst_177 = arith.constant dense<0.000000e+00> : vector<64x128xf32>
    %254 = tpu.matmul %251, %253, %cst_177 {dimension_numbers = #tpu.dot_dimension_numbers<[1], [0], [0], [1], [0, 0, 1, 1], [], []>} : vector<64x128xbf16>, vector<128x128xbf16>, vector<64x128xf32> -> vector<64x128xf32>
    %255 = arith.addf %249, %254 : vector<64x128xf32>
    %c1_178 = arith.constant 1 : index
    %c0_179 = arith.constant 0 : index
    %c0_180 = arith.constant 0 : index
    %256 = vector.load %arg11[%c1_178, %c0_179, %c0_180] : memref<10x10x128xbf16, #tpu.memory_space<vmem>>, vector<8x8x128xbf16>
    %257 = vector.shape_cast %256 : vector<8x8x128xbf16> to vector<64x128xbf16>
    %c3_181 = arith.constant 3 : index
    %c0_182 = arith.constant 0 : index
    %c0_183 = arith.constant 0 : index
    %258 = vector.load %arg7[%c3_181, %c0_182, %c0_183] : memref<9x128x128xbf16, #tpu.memory_space<vmem>>, vector<1x128x128xbf16>
    %259 = vector.shape_cast %258 : vector<1x128x128xbf16> to vector<128x128xbf16>
    %cst_184 = arith.constant dense<0.000000e+00> : vector<64x128xf32>
    %260 = tpu.matmul %257, %259, %cst_184 {dimension_numbers = #tpu.dot_dimension_numbers<[1], [0], [0], [1], [0, 0, 1, 1], [], []>} : vector<64x128xbf16>, vector<128x128xbf16>, vector<64x128xf32> -> vector<64x128xf32>
    %261 = arith.addf %255, %260 : vector<64x128xf32>
    %c1_185 = arith.constant 1 : index
    %c1_186 = arith.constant 1 : index
    %c0_187 = arith.constant 0 : index
    %262 = vector.load %arg11[%c1_185, %c1_186, %c0_187] : memref<10x10x128xbf16, #tpu.memory_space<vmem>>, vector<8x8x128xbf16>
    %263 = vector.shape_cast %262 : vector<8x8x128xbf16> to vector<64x128xbf16>
    %c4_188 = arith.constant 4 : index
    %c0_189 = arith.constant 0 : index
    %c0_190 = arith.constant 0 : index
    %264 = vector.load %arg7[%c4_188, %c0_189, %c0_190] : memref<9x128x128xbf16, #tpu.memory_space<vmem>>, vector<1x128x128xbf16>
    %265 = vector.shape_cast %264 : vector<1x128x128xbf16> to vector<128x128xbf16>
    %cst_191 = arith.constant dense<0.000000e+00> : vector<64x128xf32>
    %266 = tpu.matmul %263, %265, %cst_191 {dimension_numbers = #tpu.dot_dimension_numbers<[1], [0], [0], [1], [0, 0, 1, 1], [], []>} : vector<64x128xbf16>, vector<128x128xbf16>, vector<64x128xf32> -> vector<64x128xf32>
    %267 = arith.addf %261, %266 : vector<64x128xf32>
    %c1_192 = arith.constant 1 : index
    %c2_193 = arith.constant 2 : index
    %c0_194 = arith.constant 0 : index
    %268 = vector.load %arg11[%c1_192, %c2_193, %c0_194] : memref<10x10x128xbf16, #tpu.memory_space<vmem>>, vector<8x8x128xbf16>
    %269 = vector.shape_cast %268 : vector<8x8x128xbf16> to vector<64x128xbf16>
    %c5_195 = arith.constant 5 : index
    %c0_196 = arith.constant 0 : index
    %c0_197 = arith.constant 0 : index
    %270 = vector.load %arg7[%c5_195, %c0_196, %c0_197] : memref<9x128x128xbf16, #tpu.memory_space<vmem>>, vector<1x128x128xbf16>
    %271 = vector.shape_cast %270 : vector<1x128x128xbf16> to vector<128x128xbf16>
    %cst_198 = arith.constant dense<0.000000e+00> : vector<64x128xf32>
    %272 = tpu.matmul %269, %271, %cst_198 {dimension_numbers = #tpu.dot_dimension_numbers<[1], [0], [0], [1], [0, 0, 1, 1], [], []>} : vector<64x128xbf16>, vector<128x128xbf16>, vector<64x128xf32> -> vector<64x128xf32>
    %273 = arith.addf %267, %272 : vector<64x128xf32>
    %c2_199 = arith.constant 2 : index
    %c0_200 = arith.constant 0 : index
    %c0_201 = arith.constant 0 : index
    %274 = vector.load %arg11[%c2_199, %c0_200, %c0_201] : memref<10x10x128xbf16, #tpu.memory_space<vmem>>, vector<8x8x128xbf16>
    %275 = vector.shape_cast %274 : vector<8x8x128xbf16> to vector<64x128xbf16>
    %c6_202 = arith.constant 6 : index
    %c0_203 = arith.constant 0 : index
    %c0_204 = arith.constant 0 : index
    %276 = vector.load %arg7[%c6_202, %c0_203, %c0_204] : memref<9x128x128xbf16, #tpu.memory_space<vmem>>, vector<1x128x128xbf16>
    %277 = vector.shape_cast %276 : vector<1x128x128xbf16> to vector<128x128xbf16>
    %cst_205 = arith.constant dense<0.000000e+00> : vector<64x128xf32>
    %278 = tpu.matmul %275, %277, %cst_205 {dimension_numbers = #tpu.dot_dimension_numbers<[1], [0], [0], [1], [0, 0, 1, 1], [], []>} : vector<64x128xbf16>, vector<128x128xbf16>, vector<64x128xf32> -> vector<64x128xf32>
    %279 = arith.addf %273, %278 : vector<64x128xf32>
    %c2_206 = arith.constant 2 : index
    %c1_207 = arith.constant 1 : index
    %c0_208 = arith.constant 0 : index
    %280 = vector.load %arg11[%c2_206, %c1_207, %c0_208] : memref<10x10x128xbf16, #tpu.memory_space<vmem>>, vector<8x8x128xbf16>
    %281 = vector.shape_cast %280 : vector<8x8x128xbf16> to vector<64x128xbf16>
    %c7_209 = arith.constant 7 : index
    %c0_210 = arith.constant 0 : index
    %c0_211 = arith.constant 0 : index
    %282 = vector.load %arg7[%c7_209, %c0_210, %c0_211] : memref<9x128x128xbf16, #tpu.memory_space<vmem>>, vector<1x128x128xbf16>
    %283 = vector.shape_cast %282 : vector<1x128x128xbf16> to vector<128x128xbf16>
    %cst_212 = arith.constant dense<0.000000e+00> : vector<64x128xf32>
    %284 = tpu.matmul %281, %283, %cst_212 {dimension_numbers = #tpu.dot_dimension_numbers<[1], [0], [0], [1], [0, 0, 1, 1], [], []>} : vector<64x128xbf16>, vector<128x128xbf16>, vector<64x128xf32> -> vector<64x128xf32>
    %285 = arith.addf %279, %284 : vector<64x128xf32>
    %c2_213 = arith.constant 2 : index
    %c2_214 = arith.constant 2 : index
    %c0_215 = arith.constant 0 : index
    %286 = vector.load %arg11[%c2_213, %c2_214, %c0_215] : memref<10x10x128xbf16, #tpu.memory_space<vmem>>, vector<8x8x128xbf16>
    %287 = vector.shape_cast %286 : vector<8x8x128xbf16> to vector<64x128xbf16>
    %c8_216 = arith.constant 8 : index
    %c0_217 = arith.constant 0 : index
    %c0_218 = arith.constant 0 : index
    %288 = vector.load %arg7[%c8_216, %c0_217, %c0_218] : memref<9x128x128xbf16, #tpu.memory_space<vmem>>, vector<1x128x128xbf16>
    %289 = vector.shape_cast %288 : vector<1x128x128xbf16> to vector<128x128xbf16>
    %cst_219 = arith.constant dense<0.000000e+00> : vector<64x128xf32>
    %290 = tpu.matmul %287, %289, %cst_219 {dimension_numbers = #tpu.dot_dimension_numbers<[1], [0], [0], [1], [0, 0, 1, 1], [], []>} : vector<64x128xbf16>, vector<128x128xbf16>, vector<64x128xf32> -> vector<64x128xf32>
    %291 = arith.addf %285, %290 : vector<64x128xf32>
    %c3_220 = arith.constant 3 : index
    %c0_221 = arith.constant 0 : index
    %c0_222 = arith.constant 0 : index
    %c0_223 = arith.constant 0 : index
    %292 = vector.load %arg10[%c3_220, %c0_221, %c0_222, %c0_223] : memref<4x9x9x128xbf16, #tpu.memory_space<vmem>>, vector<1x8x8x128xbf16>
    %293 = vector.shape_cast %292 : vector<1x8x8x128xbf16> to vector<8x8x128xbf16>
    %294 = vector.shape_cast %293 : vector<8x8x128xbf16> to vector<64x128xbf16>
    %c0_224 = arith.constant 0 : index
    %c0_225 = arith.constant 0 : index
    %295 = vector.load %arg8[%c0_224, %c0_225] : memref<128x128xbf16, #tpu.memory_space<vmem>>, vector<128x128xbf16>
    %cst_226 = arith.constant dense<0.000000e+00> : vector<64x128xf32>
    %296 = tpu.matmul %294, %295, %cst_226 {dimension_numbers = #tpu.dot_dimension_numbers<[1], [0], [0], [1], [0, 0, 1, 1], [], []>} : vector<64x128xbf16>, vector<128x128xbf16>, vector<64x128xf32> -> vector<64x128xf32>
    %297 = arith.addf %291, %296 : vector<64x128xf32>
    %298 = vector.extract_strided_slice %297 {offsets = [0, 0], sizes = [64, 8], strides = [1, 1]} : vector<64x128xf32> to vector<64x8xf32>
    %c0_227 = arith.constant 0 : index
    %c0_228 = arith.constant 0 : index
    %c0_229 = arith.constant 0 : index
    %299 = vector.load %arg9[%c0_227, %c0_228, %c0_229] : memref<1x64x8xf32, #tpu.memory_space<vmem>>, vector<1x64x8xf32>
    %300 = vector.shape_cast %299 : vector<1x64x8xf32> to vector<64x8xf32>
    %301 = vector.shape_cast %298 : vector<64x8xf32> to vector<1x64x8xf32>
    tpu.vector_store %arg9[%c0_227, %c0_228, %c0_229], %301 {strides = array<i32>} : memref<1x64x8xf32, #tpu.memory_space<vmem>>, vector<1x64x8xf32>,
    return
  }
  func.func @transform_0(%arg0: i32) -> (i32, i32, i32, i32, i32) {
    %c0_i32 = arith.constant 0 : i32
    %c0_i32_0 = arith.constant 0 : i32
    %c0_i32_1 = arith.constant 0 : i32
    %c0_i32_2 = arith.constant 0 : i32
    %c0_i32_3 = arith.constant 0 : i32
    return %arg0, %c0_i32, %c0_i32_0, %c0_i32_1, %c0_i32_2 : i32, i32, i32, i32, i32
  }
  func.func @transform_1(%arg0: i32) -> (i32, i32, i32) {
    %c0_i32 = arith.constant 0 : i32
    %c0_i32_0 = arith.constant 0 : i32
    %c0_i32_1 = arith.constant 0 : i32
    %c0_i32_2 = arith.constant 0 : i32
    return %c0_i32, %c0_i32_0, %c0_i32_1 : i32, i32, i32
  }
  func.func @transform_2(%arg0: i32) -> (i32, i32) {
    %c0_i32 = arith.constant 0 : i32
    %c0_i32_0 = arith.constant 0 : i32
    %c0_i32_1 = arith.constant 0 : i32
    return %c0_i32, %c0_i32_0 : i32, i32
  }
  func.func @transform_3(%arg0: i32) -> (i32, i32) {
    %c0_i32 = arith.constant 0 : i32
    %c0_i32_0 = arith.constant 0 : i32
    %c0_i32_1 = arith.constant 0 : i32
    return %c0_i32, %c0_i32_0 : i32, i32
  }
  func.func @transform_4(%arg0: i32) -> (i32, i32) {
    %c0_i32 = arith.constant 0 : i32
    %c0_i32_0 = arith.constant 0 : i32
    %c0_i32_1 = arith.constant 0 : i32
    return %c0_i32, %c0_i32_0 : i32, i32
  }
  func.func @transform_5(%arg0: i32) -> (i32, i32) {
    %c0_i32 = arith.constant 0 : i32
    %c0_i32_0 = arith.constant 0 : i32
    %c0_i32_1 = arith.constant 0 : i32
    return %c0_i32, %c0_i32_0 : i32, i32
  }
  func.func @transform_6(%arg0: i32) -> (i32, i32, i32) {
    %c0_i32 = arith.constant 0 : i32
    %c0_i32_0 = arith.constant 0 : i32
    %c0_i32_1 = arith.constant 0 : i32
    %c0_i32_2 = arith.constant 0 : i32
    return %c0_i32, %c0_i32_0, %c0_i32_1 : i32, i32, i32
  }
  func.func @transform_7(%arg0: i32) -> (i32, i32) {
    %c0_i32 = arith.constant 0 : i32
    %c0_i32_0 = arith.constant 0 : i32
    %c0_i32_1 = arith.constant 0 : i32
    return %c0_i32, %c0_i32_0 : i32, i32
  }
  func.func @transform_8(%arg0: i32) -> (i32, i32, i32) {
    %c0_i32 = arith.constant 0 : i32
    %c0_i32_0 = arith.constant 0 : i32
    %c0_i32_1 = arith.constant 0 : i32
    return %arg0, %c0_i32, %c0_i32_0 : i32, i32, i32
  }
}

</mosaic_0001>

<bundles_post_ra>
// kernel: block_forward.1
= control target key start
LH: loop header
LB: loop body
LE: loop exit
PB: predicated region body
PF: predicated region fallthrough
CT: control target
= control target key end

     0   :  { %s7413_s27 = smov 0   ;;  %s9006_s0 = inlined_call_operand.vmem [shape: f32[2,4,9,9,4], index: 0, kind: input, shape index: {}]   ;;  %s9007_s1 = inlined_call_operand.vmem [shape: bf16[9,128,128], index: 1, kind: input, shape index: {}]   ;;  %s9008_s2 = inlined_call_operand.vmem [shape: f32[1,4], index: 2, kind: input, shape index: {}]   ;;  %s9009_s3 = inlined_call_operand.vmem [shape: f32[1,4], index: 3, kind: input, shape index: {}]   ;;  %s9010_s4 = inlined_call_operand.vmem [shape: f32[1,128], index: 4, kind: input, shape index: {}]   ;;  %s9011_s5 = inlined_call_operand.vmem [shape: f32[1,128], index: 5, kind: input, shape index: {}]   ;;  %s9012_s6 = inlined_call_operand.vmem [shape: bf16[9,128,128], index: 6, kind: input, shape index: {}]   ;;  %s9013_s7 = inlined_call_operand.vmem [shape: bf16[128,128], index: 7, kind: input, shape index: {}]   ;;  %s9014_s8 = inlined_call_operand.vmem [shape: f32[2,64,8], index: 8, kind: output, shape index: {}]  }
   0x1 LB: > { %s5586_s28 = sadd.s32 4294967295, %s7364_s27   ;;  %p5590_p0 = scmp.ge.s32.totalorder %s7364_s27, 1  ;;  %s7364_s27 = sphi %s7413_s27, %s18_s27  }
   0x2   : > { %p262_p1 = scmp.lt.s32.totalorder %s7364_s27, 3 }
   0x4   : > { %p263_p2 = pnand %p5590_p0, %p262_p1 }
   0x5   : > { %v7162_v0 = vld [vmem:[%s9007_s1 + $0x40] sm:$0xff] (!%p263_p2)   ;;  %p7426_p3 = scmp.lt.s32.totalorder (!%p263_p2), %s5586_s28, 1  ;;  %v7433_v1 = vld [vmem:[%s9007_s1 + $0x48] sm:$0xff] (!%p263_p2)   ;;  %v560_v2 = vlaneseq (!%p263_p2)  ;;  %v7366_v3 = vmov (!%p263_p2), 0   ;;  %v7164_v4 = vld [vmem:[%s9007_s1 + $0x50] sm:$0xff] (!%p263_p2)   ;;  %vm308_vm0 = vcmask (!%p263_p2), 1040384  }
   0x6   : > { %266 = sbr.rel (%p263_p2) target bundleno = 1104 (0x450), region = 52  ;;  %6543 = vmatprep.subr.bf16.mxu0 (!%p263_p2), %v7162_v0  ;;  %346 = vst [vmem:[#allocation2 + $0x48] sm:$0xf] (!%p263_p2), %v7366_v3  ;;  %350 = vst [vmem:[#allocation2 + $0x50] sm:$0xf] (!%p263_p2), %v7366_v3  ;;  %v7165_v6 = vld [vmem:[%s9007_s1 + $0x58] sm:$0xff] (!%p263_p2)  }
   0x7   : > { %307 = vst [vmem:[#allocation2] sm:$0xf] (!%p263_p2), %v7366_v3  ;;  %314 = vst [vmem:[#allocation2 + $0x8] sm:$0xf] (!%p263_p2), %v7366_v3  ;;  %6544 = vmatpush3.bf16.msra.mxu0 (!%p263_p2), %v7162_v0  ;;  %v561_v5 = vshrl.u32 (!%p263_p2), %v560_v2, 7  ;;  %v7367_v10 = vmov (!%p263_p2), 0.0|0.0  }
   0x8   : > { %318 = vst [vmem:[#allocation2 + $0x10] sm:$0xf] (!%p263_p2), %v7366_v3  ;;  %322 = vst [vmem:[#allocation2 + $0x18] sm:$0xf] (!%p263_p2), %v7366_v3  ;;  %6545 = vmatprep.subr.bf16.mxu0 (!%p263_p2), %v7433_v1  ;;  %vm309_vm1 = vsmask.f32 (!%p263_p2), 256  ;;  %v5596_v11 = vcombine.low (!%p263_p2), %v7367_v10, %v7367_v10 }
   0x9   : > { %326 = vst [vmem:[#allocation2 + $0x20] sm:$0xf] (!%p263_p2), %v7366_v3  ;;  %330 = vst [vmem:[#allocation2 + $0x28] sm:$0xf] (!%p263_p2), %v7366_v3  ;;  %v562_v7 = vadd.s32 (!%p263_p2), 8, %v561_v5  ;;  %v7457_v15 = vmul.u32 (!%p263_p2), 2, %v561_v5 }
   0xa   : > { %334 = vst [vmem:[#allocation2 + $0x30] sm:$0xf] (!%p263_p2), %v7366_v3  ;;  %338 = vst [vmem:[#allocation2 + $0x38] sm:$0xf] (!%p263_p2), %v7366_v3  ;;  %v347_v8 = vld [vmem:[#allocation2 + $0x4c] sm:$0x1] (!%p263_p2) }
   0xb   : > { %342 = vst [vmem:[#allocation2 + $0x40] sm:$0xf] (!%p263_p2), %v7366_v3  ;;  %354 = vst [vmem:[#allocation2 + $0x58] sm:$0xf] (!%p263_p2), %v7366_v3  ;;  %6546 = vmatpush3.bf16.msra.mxu0 (!%p263_p2), %v7433_v1  ;;  %v351_v9 = vld [vmem:[#allocation2 + $0x54] sm:$0x1] (!%p263_p2)  ;;  %v7538_v1 = vcombine.high (!%p263_p2), %v7367_v10, %v7367_v10 }
   0xc   : > { %358 = vst [vmem:[#allocation2 + $0x60] sm:$0xf] (!%p263_p2), %v7366_v3  ;;  %362 = vst [vmem:[#allocation2 + $0x68] sm:$0xf] (!%p263_p2), %v7366_v3  ;;  %6547 = vmatprep.subr.bf16.mxu0 (!%p263_p2), %v7164_v4  ;;  %v355_v13 = vld [vmem:[#allocation2 + $0x5c] sm:$0x1] (!%p263_p2) }
   0xd   : > { %366 = vst [vmem:[#allocation2 + $0x70] sm:$0xf] %v7366_v3  ;;  %370 = vst [vmem:[#allocation2 + $0x78] sm:$0xf] %v7366_v3  ;;  %s9035_s28 = smov (!%p7426_p3, %s5586_s28), 1  ;;  %v7459_v16 = vmul.u32 2, %v562_v7 }
   0xe   : > { %374 = vst [vmem:[#allocation2 + $0x80] sm:$0xf] %v7366_v3  ;;  %378 = vst [vmem:[#allocation2 + $0x88] sm:$0xf] %v7366_v3  ;;  %s7151_s16 = smul.u32 576, %s9035_s28  ;;  %v7166_v17 = vld [vmem:[%s9007_s1 + $0x60] sm:$0xff]  }
   0xf   : > { %382 = vst [vmem:[#allocation2 + $0x90] sm:$0xf] %v7366_v3  ;;  %386 = vst [vmem:[#allocation2 + $0x98] sm:$0xf] %v7366_v3  ;;  %v359_v14 = vld [vmem:[#allocation2 + $0x64] sm:$0x1]  ;;  %6548 = vmatpush3.bf16.msra.mxu0 %v7164_v4 }
  0x10   : > { %390 = vst [vmem:[#allocation2 + $0xa0] sm:$0xf] %v7366_v3  ;;  %394 = vst [vmem:[#allocation2 + $0xa8] sm:$0xf] %v7366_v3  ;;  %v363_v22 = vld [vmem:[#allocation2 + $0x6c] sm:$0x1]  ;;  %6549 = vmatprep.subr.bf16.mxu0 %v7165_v6  ;;  %s7500_s23 = scalar_lea.vmem %s9006_s0, %s7151_s16 }
  0x11   : > { %398 = vst [vmem:[#allocation2 + $0xb0] sm:$0xf] %v7366_v3  ;;  %402 = vst [vmem:[#allocation2 + $0xb8] sm:$0xf] %v7366_v3  ;;  %v367_v24 = vld [vmem:[#allocation2 + $0x74] sm:$0x1] }
  0x12   : > { %406 = vst [vmem:[#allocation2 + $0xc0] sm:$0xf] %v7366_v3  ;;  %410 = vst [vmem:[#allocation2 + $0xc8] sm:$0xf] %v7366_v3  ;;  %v371_v25 = vld [vmem:[#allocation2 + $0x7c] sm:$0x1] }
  0x13   : > { %418 = vst [vmem:[#allocation2 + $0xd8] sm:$0xf] %v7366_v3  ;;  %422 = vst [vmem:[#allocation2 + $0xe0] sm:$0xf] %v7366_v3  ;;  %vm673_vm3 = vcmask 27648   ;;  %v7167_v34 = vld [vmem:[%s9007_s1 + $0x68] sm:$0xff]   ;;  %6550 = vmatpush3.bf16.msra.mxu0 %v7165_v6 }
  0x14   : > { %426 = vst [vmem:[#allocation2 + $0xe8] sm:$0xf] %v7366_v3  ;;  %430 = vst [vmem:[#allocation2 + $0xf0] sm:$0xf] %v7366_v3  ;;  %v375_v28 = vld [vmem:[#allocation2 + $0x84] sm:$0x1]  ;;  %6551 = vmatprep.subr.bf16.mxu0 %v7166_v17 }
  0x15   : > { %434 = vst [vmem:[#allocation2 + $0xf8] sm:$0xf] %v7366_v3  ;;  %438 = vst [vmem:[#allocation2 + $0x100] sm:$0xf] %v7366_v3  ;;  %v379_v29 = vld [vmem:[#allocation2 + $0x8c] sm:$0x1] }
  0x16   : > { %442 = vst [vmem:[#allocation2 + $0x108] sm:$0xf] %v7366_v3  ;;  %446 = vst [vmem:[#allocation2 + $0x110] sm:$0xf] %v7366_v3  ;;  %v415_v32 = vld [vmem:[#allocation2 + $0xd4] sm:$0x1] }
  0x17   : > { %454 = vst [vmem:[#allocation3] sm:$0xf] %v7366_v3  ;;  %455 = vst [vmem:[#allocation3 + $0x4] sm:$0x1] %v7366_v3  ;;  %v419_v33 = vld [vmem:[#allocation2 + $0xdc] sm:$0x1]  ;;  %6552 = vmatpush3.bf16.msra.mxu0 %v7166_v17 }
  0x18   : > { %456 = vst [vmem:[#allocation3 + $0x8] sm:$0xf] %v7366_v3  ;;  %457 = vst [vmem:[#allocation3 + $0xc] sm:$0x1] %v7366_v3  ;;  %v423_v37 = vld [vmem:[#allocation2 + $0xe4] sm:$0x1]  ;;  %6553 = vmatprep.subr.bf16.mxu0 %v7167_v34 }
  0x19   : > { %458 = vst [vmem:[#allocation3 + $0x10] sm:$0xf] %v7366_v3  ;;  %459 = vst [vmem:[#allocation3 + $0x14] sm:$0x1] %v7366_v3  ;;  %v427_v38 = vld [vmem:[#allocation2 + $0xec] sm:$0x1] }
  0x1a   : > { %460 = vst [vmem:[#allocation3 + $0x18] sm:$0xf] %v7366_v3  ;;  %461 = vst [vmem:[#allocation3 + $0x1c] sm:$0x1] %v7366_v3  ;;  %v431_v41 = vld [vmem:[#allocation2 + $0xf4] sm:$0x1] }
  0x1b   : > { %462 = vst [vmem:[#allocation3 + $0x20] sm:$0xf] %v7366_v3  ;;  %463 = vst [vmem:[#allocation3 + $0x24] sm:$0x1] %v7366_v3  ;;  %v435_v42 = vld [vmem:[#allocation2 + $0xfc] sm:$0x1]  ;;  %6554 = vmatpush3.bf16.msra.mxu0 %v7167_v34 }
  0x1c   : > { %464 = vst [vmem:[#allocation3 + $0x28] sm:$0xf] %v7366_v3  ;;  %465 = vst [vmem:[#allocation3 + $0x2c] sm:$0x1] %v7366_v3  ;;  %v439_v45 = vld [vmem:[#allocation2 + $0x104] sm:$0x1] }
  0x1d   : > { %466 = vst [vmem:[#allocation3 + $0x30] sm:$0xf] %v7366_v3  ;;  %467 = vst [vmem:[#allocation3 + $0x34] sm:$0x1] %v7366_v3  ;;  %v443_v46 = vld [vmem:[#allocation2 + $0x10c] sm:$0x1] }
  0x1e   : > { %468 = vst [vmem:[#allocation3 + $0x38] sm:$0xf] %v7366_v3  ;;  %469 = vst [vmem:[#allocation3 + $0x3c] sm:$0x1] %v7366_v3  ;;  %v447_v49 = vld [vmem:[#allocation2 + $0x114] sm:$0x1] }
  0x1f   : > { %470 = vst [vmem:[#allocation3 + $0x40] sm:$0xf] %v7366_v3  ;;  %471 = vst [vmem:[#allocation3 + $0x44] sm:$0x1] %v7366_v3  ;;  %v451_v50 = vld [vmem:[#allocation2 + $0x11c] sm:$0x1] }
  0x20   : > { %472 = vst [vmem:[#allocation3 + $0x48] sm:$0xf] %v7366_v3  ;;  %473 = vst [vmem:[#allocation3 + $0x4c] sm:$0x1] %v7366_v3  ;;  %v7517_v53 = vld [vmem:[%s9008_s2] ss:$0 sm:$0xff] }
  0x21   : > { %vm7453_vm2 = vmand %vm308_vm0, %vm309_vm1  ;;  %896 = vst.msk [vmem:[#allocation2 + $0x48] sm:$0xf] %vm673_vm3, %v5596_v11  ;;  %v7522_v54 = vld [vmem:[%s9009_s3] ss:$0 sm:$0xff]  ;;  %vm675_vm4 = vcmask 24576   ;;  %v7168_v58 = vld [vmem:[%s9007_s1 + $0x70] sm:$0xff]  }
  0x22   : > { %v348_v18 = vsel %vm7453_vm2, 0, %v347_v8  ;;  %v352_v19 = vsel %vm7453_vm2, 0, %v351_v9  ;;  %v356_v20 = vsel %vm7453_vm2, 0, %v355_v13  ;;  %v360_v21 = vsel %vm7453_vm2, 0, %v359_v14  ;;  %674 = vst.msk [vmem:[#allocation2] sm:$0xf] %vm673_vm3, %v5596_v11  ;;  %6555 = vmatprep.subr.bf16.mxu0 %v7168_v58  ;;  %vm7564_vm5 = vmand %vm675_vm4, %vm309_vm1 }
  0x23   : > { %349 = vst [vmem:[#allocation2 + $0x4c] sm:$0x1] %v348_v18  ;;  %353 = vst [vmem:[#allocation2 + $0x54] sm:$0x1] %v352_v19  ;;  %v364_v23 = vsel %vm7453_vm2, 0, %v363_v22  ;;  %v368_v26 = vsel %vm7453_vm2, 0, %v367_v24  ;;  %6556 = vmatpush3.bf16.msra.mxu0 %v7168_v58 }
  0x24   : > { %357 = vst [vmem:[#allocation2 + $0x5c] sm:$0x1] %v356_v20  ;;  %361 = vst [vmem:[#allocation2 + $0x64] sm:$0x1] %v360_v21  ;;  %v372_v27 = vsel %vm7453_vm2, 0, %v371_v25  ;;  %v376_v30 = vsel %vm7453_vm2, 0, %v375_v28 }
  0x25   : > { %365 = vst [vmem:[#allocation2 + $0x6c] sm:$0x1] %v364_v23  ;;  %369 = vst [vmem:[#allocation2 + $0x74] sm:$0x1] %v368_v26  ;;  %v380_v31 = vsel %vm7453_vm2, 0, %v379_v29  ;;  %v416_v35 = vsel %vm7453_vm2, 0, %v415_v32 }
  0x26   : > { %373 = vst [vmem:[#allocation2 + $0x7c] sm:$0x1] %v372_v27  ;;  %377 = vst [vmem:[#allocation2 + $0x84] sm:$0x1] %v376_v30  ;;  %v420_v36 = vsel %vm7453_vm2, 0, %v419_v33  ;;  %v424_v39 = vsel %vm7453_vm2, 0, %v423_v37 }
  0x27   : > { %381 = vst [vmem:[#allocation2 + $0x8c] sm:$0x1] %v380_v31  ;;  %417 = vst [vmem:[#allocation2 + $0xd4] sm:$0x1] %v416_v35  ;;  %v428_v40 = vsel %vm7453_vm2, 0, %v427_v38  ;;  %v432_v43 = vsel %vm7453_vm2, 0, %v431_v41 }
  0x28   : > { %421 = vst [vmem:[#allocation2 + $0xdc] sm:$0x1] %v420_v36  ;;  %425 = vst [vmem:[#allocation2 + $0xe4] sm:$0x1] %v424_v39  ;;  %v436_v44 = vsel %vm7453_vm2, 0, %v435_v42  ;;  %v440_v47 = vsel %vm7453_vm2, 0, %v439_v45 }
  0x29   : > { %429 = vst [vmem:[#allocation2 + $0xec] sm:$0x1] %v428_v40  ;;  %433 = vst [vmem:[#allocation2 + $0xf4] sm:$0x1] %v432_v43  ;;  %v444_v48 = vsel %vm7453_vm2, 0, %v443_v46  ;;  %v448_v51 = vsel %vm7453_vm2, 0, %v447_v49 }
  0x2a   : > { %437 = vst [vmem:[#allocation2 + $0xfc] sm:$0x1] %v436_v44  ;;  %441 = vst [vmem:[#allocation2 + $0x104] sm:$0x1] %v440_v47  ;;  %v452_v52 = vsel %vm7453_vm2, 0, %v451_v50  ;;  %v5616_v55 = vld [vmem:[%s7500_s23 + $0xa0] sm:$0xff] }
  0x2b   : > { %445 = vst [vmem:[#allocation2 + $0x10c] sm:$0x1] %v444_v48  ;;  %449 = vst [vmem:[#allocation2 + $0x114] sm:$0x1] %v448_v51  ;;  %v5617_v56 = vld [vmem:[%s7500_s23 + $0xa8] sm:$0x1]  ;;  %v733_v61 = vmul.f32 %v5616_v55, %v7517_v53 }
  0x2c   : > { %453 = vst [vmem:[#allocation2 + $0x11c] sm:$0x1] %v452_v52  ;;  %v5619_v57 = vld [vmem:[%s7500_s23 + $0xb8] sm:$0x1]  ;;  %v5621_v59 = vld [vmem:[%s7500_s23 + $0xc8] sm:$0x1]  ;;  %v734_v62 = vmul.f32 %v5617_v56, %v7517_v53 }
  0x2d   : > { %v5623_v60 = vld [vmem:[%s7500_s23 + $0xd8] sm:$0x1]  ;;  %v736_v63 = vmul.f32 %v5619_v57, %v7517_v53  ;;  %v785_v0 = vadd.s32 1, %v7457_v15  ;;  %v5625_v2 = vld [vmem:[%s7500_s23 + $0xe8] sm:$0x1]  ;;  %v738_v5 = vmul.f32 %v5621_v59, %v7517_v53  ;;  %v751_v13 = vadd.f32 %v7522_v54, %v733_v61  ;;  %v7582_v44 = vld [vmem:[%s9007_s1] sm:$0xff]  }
  0x2e   : > { %v5627_v3 = vld [vmem:[%s7500_s23 + $0xf8] sm:$0x1]  ;;  %v5629_v4 = vld [vmem:[%s7500_s23 + $0x108] sm:$0x1]  ;;  %v740_v6 = vmul.f32 %v5623_v60, %v7517_v53  ;;  %v742_v8 = vmul.f32 %v5625_v2, %v7517_v53  ;;  %v752_v14 = vadd.f32 %v7522_v54, %v734_v62  ;;  %v897_v28 = vld [vmem:[#allocation2 + $0x4c] sm:$0x1] }
  0x2f   : > { %v5631_v7 = vld [vmem:[%s7500_s23 + $0x118] sm:$0x1]  ;;  %v744_v9 = vmul.f32 %v5627_v3, %v7517_v53  ;;  %v746_v11 = vmul.f32 %v5629_v4, %v7517_v53  ;;  %v754_v17 = vadd.f32 %v7522_v54, %v736_v63  ;;  %v756_v18 = vadd.f32 %v7522_v54, %v738_v5  ;;  %v1129_v33 = vld [vmem:[#allocation2 + $0xd4] sm:$0x1]  ;;  %v5689_v41 = vld [vmem:[%s7500_s23 + $0x1c8] sm:$0x1] }
  0x30   : > { %v748_v10 = vmul.f32 %v5631_v7, %v7517_v53  ;;  %v7169_v19 = vld [vmem:[%s9007_s1 + $0x78] sm:$0xff]   ;;  %v758_v20 = vadd.f32 %v7522_v54, %v740_v6  ;;  %v760_v21 = vadd.f32 %v7522_v54, %v742_v8  ;;  %v769_v25 = vmax.f32 %v751_v13, 0.0  ;;  %v5693_v46 = vld [vmem:[%s7500_s23 + $0x1e8] sm:$0x1]  ;;  %v901_v52 = vld [vmem:[#allocation2 + $0x54] sm:$0x1] }
  0x31   : > { %v762_v22 = vadd.f32 %v7522_v54, %v744_v9  ;;  %v764_v23 = vadd.f32 %v7522_v54, %v746_v11  ;;  %v770_v26 = vmax.f32 %v752_v14, 0.0  ;;  %v772_v27 = vmax.f32 %v754_v17, 0.0  ;;  %v5687_v38 = vld [vmem:[%s7500_s23 + $0x1b8] sm:$0x1]  ;;  %6557 = vmatprep.subr.bf16.mxu0 %v7169_v19  ;;  %v905_v55 = vld [vmem:[#allocation2 + $0x5c] sm:$0x1] }
  0x32   : > { %v766_v24 = vadd.f32 %v7522_v54, %v748_v10  ;;  %v774_v29 = vmax.f32 %v756_v18, 0.0  ;;  %v776_v30 = vmax.f32 %v758_v20, 0.0  ;;  %v778_v31 = vmax.f32 %v760_v21, 0.0  ;;  %v5691_v42 = vld [vmem:[%s7500_s23 + $0x1d8] sm:$0x1]  ;;  %6558 = vmatpush3.bf16.msra.mxu0 %v7169_v19  ;;  %v5624_v50 = vld [vmem:[%s7500_s23 + $0xe0] sm:$0xff] }
  0x33   : > { %v780_v32 = vmax.f32 %v762_v22, 0.0  ;;  %v782_v35 = vmax.f32 %v764_v23, 0.0  ;;  %v786_v37 = vadd.s32 1, %v7459_v16  ;;  %vm787_vm6 = vcmp.ge.s32.totalorder %v785_v0, 1  ;;  %v5695_v47 = vld [vmem:[%s7500_s23 + $0x1f8] sm:$0x1]  ;;  %6567 = vmatprep.subr.bf16.mxu0 %v7582_v44 }
  0x34   : > { %v784_v36 = vmax.f32 %v766_v24, 0.0  ;;  %vm789_vm7 = vcmp.le.s32.totalorder %v785_v0, 16  ;;  %v898_v39 = vsel %vm7564_vm5, %v7538_v1, %v897_v28  ;;  %v1130_v40 = vsel %vm7564_vm5, %v7538_v1, %v1129_v33  ;;  %v909_v56 = vld [vmem:[#allocation2 + $0x64] sm:$0x1]  ;;  %v913_v0 = vld [vmem:[#allocation2 + $0x6c] sm:$0x1] }
  0x35   : > { %v1152_v43 = vmul.f32 %v5687_v38, %v7517_v53  ;;  %vm788_vm8 = vcmp.ge.s32.totalorder %v786_v37, 1  ;;  %vm790_vm9 = vcmp.le.s32.totalorder %v786_v37, 16  ;;  %vm7584_vm10 = vmand %vm787_vm6, %vm789_vm7  ;;  %899 = vst [vmem:[#allocation2 + $0x4c] sm:$0x1] %v898_v39  ;;  %v1154_v48 = vmul.f32 %v5689_v41, %v7517_v53  ;;  %v917_v6 = vld [vmem:[#allocation2 + $0x74] sm:$0x1] }
  0x36   : > { %1131 = vst [vmem:[#allocation2 + $0xd4] sm:$0x1] %v1130_v40  ;;  %v1156_v49 = vmul.f32 %v5691_v42, %v7517_v53  ;;  %vm7592_vm11 = vmand %vm788_vm8, %vm790_vm9  ;;  %v807_v51 = vsel %vm7584_vm10, %v769_v25, 0.0  ;;  %v1158_v57 = vmul.f32 %v5693_v46, %v7517_v53  ;;  %v1160_v58 = vmul.f32 %v5695_v47, %v7517_v53  ;;  %v921_v13 = vld [vmem:[#allocation2 + $0x7c] sm:$0x1]  ;;  %s6242_s15 = sshll.u32 %s9035_s28, 6 }
  0x37   : > { %v7601_v59 = vadd.f32 %v7522_v54, %v1152_v43  ;;  %v808_v60 = vsel %vm7592_vm11, %v770_v26, 0.0  ;;  %v810_v61 = vsel %vm7592_vm11, %v772_v27, 0.0  ;;  %v812_v62 = vsel %vm7592_vm11, %v774_v29, 0.0  ;;  %v925_v10 = vld [vmem:[#allocation2 + $0x84] sm:$0x1]  ;;  %s305_s18 = scalar_lea.vmem %s9014_s8, %s6242_s15 }
  0x38   : > { %v814_v63 = vsel %vm7592_vm11, %v776_v30, 0.0  ;;  %v816_v2 = vsel %vm7592_vm11, %v778_v31, 0.0  ;;  %v818_v3 = vsel %vm7592_vm11, %v780_v32, 0.0  ;;  %v820_v4 = vsel %vm7592_vm11, %v782_v35, 0.0  ;;  %v929_v14 = vld [vmem:[#allocation2 + $0x8c] sm:$0x1] }
  0x39   : > { %v822_v5 = vsel %vm7592_vm11, %v784_v36, 0.0  ;;  %v6259_v7 = vpack.c.bf16 %v807_v51, %v807_v51  ;;  %v6260_v8 = vpack.c.bf16 %v808_v60, %v808_v60  ;;  %v6262_v9 = vpack.c.bf16 %v810_v61, %v810_v61  ;;  %v5697_v21 = vld [vmem:[%s7500_s23 + $0x208] sm:$0x1]  ;;  %v5699_v22 = vld [vmem:[%s7500_s23 + $0x218] sm:$0x1] }
  0x3a   : > { %v6264_v11 = vpack.c.bf16 %v812_v62, %v812_v62  ;;  %v6266_v17 = vpack.c.bf16 %v814_v63, %v814_v63  ;;  %v6268_v18 = vpack.c.bf16 %v816_v2, %v816_v2  ;;  %v6270_v19 = vpack.c.bf16 %v818_v3, %v818_v3  ;;  %v5701_v23 = vld [vmem:[%s7500_s23 + $0x228] sm:$0x1]  ;;  %v1305_v61 = vld [vmem:[#allocation2 + $0xec] sm:$0x1]  ;;  %v1309_v62 = vld [vmem:[#allocation2 + $0xf4] sm:$0x1] }
  0x3b   : > { %v6272_v20 = vpack.c.bf16 %v820_v4, %v820_v4  ;;  %v6274_v24 = vpack.c.bf16 %v822_v5, %v822_v5  ;;  %900 = vst.msk [vmem:[#allocation2 + $0x50] sm:$0xf] %vm673_vm3, %v6259_v7  ;;  %v902_v25 = vsel %vm7564_vm5, %v6260_v8, %v901_v52  ;;  %v906_v26 = vsel %vm7564_vm5, %v6262_v9, %v905_v55  ;;  %v1313_v63 = vld [vmem:[#allocation2 + $0xfc] sm:$0x1]  ;;  %v1317_v4 = vld [vmem:[#allocation2 + $0x104] sm:$0x1] }
  0x3c   : > { %v910_v27 = vsel %vm7564_vm5, %v6264_v11, %v909_v56  ;;  %903 = vst [vmem:[#allocation2 + $0x54] sm:$0x1] %v902_v25  ;;  %907 = vst [vmem:[#allocation2 + $0x5c] sm:$0x1] %v906_v26  ;;  %v914_v28 = vsel %vm7564_vm5, %v6266_v17, %v913_v0  ;;  %v918_v29 = vsel %vm7564_vm5, %v6268_v18, %v917_v6  ;;  %v1188_v46 = vmax.f32 %v7601_v59, 0.0  ;;  %v5622_v26 = vld [vmem:[%s7500_s23 + $0xd0] sm:$0xff] }
  0x3d   : > { %911 = vst [vmem:[#allocation2 + $0x64] sm:$0x1] %v910_v27  ;;  %v922_v30 = vsel %vm7564_vm5, %v6270_v19, %v921_v13  ;;  %v926_v31 = vsel %vm7564_vm5, %v6272_v20, %v925_v10  ;;  %915 = vst [vmem:[#allocation2 + $0x6c] sm:$0x1] %v914_v28  ;;  %v930_v32 = vsel %vm7564_vm5, %v6274_v24, %v929_v14  ;;  %v1297_v56 = vld [vmem:[#allocation2 + $0xdc] sm:$0x1] }
  0x3e   : > { %919 = vst [vmem:[#allocation2 + $0x74] sm:$0x1] %v918_v29  ;;  %923 = vst [vmem:[#allocation2 + $0x7c] sm:$0x1] %v922_v30  ;;  %v1162_v33 = vmul.f32 %v5697_v21, %v7517_v53  ;;  %v1164_v35 = vmul.f32 %v5699_v22, %v7517_v53  ;;  %v1166_v36 = vmul.f32 %v5701_v23, %v7517_v53  ;;  %v1321_v5 = vld [vmem:[#allocation2 + $0x10c] sm:$0x1] }
  0x3f   : > { %927 = vst [vmem:[#allocation2 + $0x84] sm:$0x1] %v926_v31  ;;  %931 = vst [vmem:[#allocation2 + $0x8c] sm:$0x1] %v930_v32  ;;  %v1172_v37 = vadd.f32 %v7522_v54, %v1154_v48  ;;  %v1174_v38 = vadd.f32 %v7522_v54, %v1156_v49  ;;  %v1176_v39 = vadd.f32 %v7522_v54, %v1158_v57  ;;  %v1206_v57 = vsel %vm7592_vm11, %v1188_v46, 0.0  ;;  %v5618_v14 = vld [vmem:[%s7500_s23 + $0xb0] sm:$0xff] }
  0x40   : > { %v1178_v40 = vadd.f32 %v7522_v54, %v1160_v58  ;;  %v1180_v41 = vadd.f32 %v7522_v54, %v1162_v33  ;;  %v1182_v42 = vadd.f32 %v7522_v54, %v1164_v35  ;;  %v1184_v43 = vadd.f32 %v7522_v54, %v1166_v36  ;;  %v1301_v58 = vld [vmem:[#allocation2 + $0xe4] sm:$0x1]  ;;  %v1325_v6 = vld [vmem:[#allocation2 + $0x114] sm:$0x1]  ;;  %v1329_v7 = vld [vmem:[#allocation2 + $0x11c] sm:$0x1] }
  0x41   : > { %v1190_v47 = vmax.f32 %v1172_v37, 0.0  ;;  %v1192_v51 = vmax.f32 %v1174_v38, 0.0  ;;  %v1194_v52 = vmax.f32 %v1176_v39, 0.0  ;;  %v6292_v13 = vpack.c.bf16 %v1206_v57, %v1206_v57  ;;  %v5620_v21 = vld [vmem:[%s7500_s23 + $0xc0] sm:$0xff]  ;;  %v5626_v31 = vld [vmem:[%s7500_s23 + $0xf0] sm:$0xff] }
  0x42   : > { %v1196_v55 = vmax.f32 %v1178_v40, 0.0  ;;  %v1198_v48 = vmax.f32 %v1180_v41, 0.0  ;;  %v1200_v60 = vmax.f32 %v1182_v42, 0.0  ;;  %v1202_v49 = vmax.f32 %v1184_v43, 0.0  ;;  %v7170_v10 = vld [vmem:[#allocation2 + $0x48] ss:$8 sps:$4 sm:$0xff]  }
  0x43   : > { %v1208_v0 = vsel %vm7592_vm11, %v1190_v47, 0.0  ;;  %v1210_v59 = vsel %vm7592_vm11, %v1192_v51, 0.0  ;;  %v1212_v2 = vsel %vm7592_vm11, %v1194_v52, 0.0  ;;  %v1298_v25 = vsel %vm7564_vm5, %v6292_v13, %v1297_v56  ;;  %6559 = vmatprep.mubr.bf16.mxu0 %v7170_v10  ;;  %v5628_v37 = vld [vmem:[%s7500_s23 + $0x100] sm:$0xff]  ;;  %v478_v42 = vld [vmem:[%s7500_s23 + $0x10] sm:$0xff] }
  0x44   : > { %v1214_v3 = vsel %vm7592_vm11, %v1196_v55, 0.0  ;;  %v1216_v8 = vsel %vm7592_vm11, %v1198_v48, 0.0  ;;  %v1218_v9 = vsel %vm7592_vm11, %v1200_v60, 0.0  ;;  %v1220_v11 = vsel %vm7592_vm11, %v1202_v49, 0.0  ;;  %1299 = vst [vmem:[#allocation2 + $0xdc] sm:$0x1] %v1298_v25 }
  0x45   : > { %v6294_v17 = vpack.c.bf16 %v1208_v0, %v1208_v0  ;;  %v6296_v18 = vpack.c.bf16 %v1210_v59, %v1210_v59  ;;  %v6298_v19 = vpack.c.bf16 %v1212_v2, %v1212_v2  ;;  %v6300_v20 = vpack.c.bf16 %v1214_v3, %v1214_v3  ;;  %v480_v48 = vld [vmem:[%s7500_s23 + $0x20] sm:$0xff] }
  0x46   : > { %v6302_v22 = vpack.c.bf16 %v1216_v8, %v1216_v8  ;;  %v6304_v23 = vpack.c.bf16 %v1218_v9, %v1218_v9  ;;  %v6306_v24 = vpack.c.bf16 %v1220_v11, %v1220_v11  ;;  %v1330_v36 = vsel %vm7564_vm5, %v7538_v1, %v1329_v7 }
  0x47   : > { %v1302_v27 = vsel %vm7564_vm5, %v6294_v17, %v1301_v58  ;;  %v1306_v28 = vsel %vm7564_vm5, %v6296_v18, %v1305_v61  ;;  %v1310_v29 = vsel %vm7564_vm5, %v6298_v19, %v1309_v62  ;;  %v1314_v30 = vsel %vm7564_vm5, %v6300_v20, %v1313_v63  ;;  %1331 = vst [vmem:[#allocation2 + $0x11c] sm:$0x1] %v1330_v36 }
  0x48   : > { %1303 = vst [vmem:[#allocation2 + $0xe4] sm:$0x1] %v1302_v27  ;;  %1307 = vst [vmem:[#allocation2 + $0xec] sm:$0x1] %v1306_v28  ;;  %v1318_v32 = vsel %vm7564_vm5, %v6302_v22, %v1317_v4  ;;  %v1322_v33 = vsel %vm7564_vm5, %v6304_v23, %v1321_v5  ;;  %v1326_v35 = vsel %vm7564_vm5, %v6306_v24, %v1325_v6  ;;  %vm565_vm12 = vcmp.ge.s32.totalorder %v7457_v15, 1  ;;  %v482_v4 = vld [vmem:[%s7500_s23 + $0x30] sm:$0xff] }
  0x49   : > { %1311 = vst [vmem:[#allocation2 + $0xf4] sm:$0x1] %v1310_v29  ;;  %1315 = vst [vmem:[#allocation2 + $0xfc] sm:$0x1] %v1314_v30  ;;  %v735_v38 = vmul.f32 %v5618_v14, %v7517_v53  ;;  %v737_v39 = vmul.f32 %v5620_v21, %v7517_v53  ;;  %v739_v40 = vmul.f32 %v5622_v26, %v7517_v53  ;;  %vm567_vm13 = vcmp.le.s32.totalorder %v7457_v15, 16  ;;  %v484_v24 = vld [vmem:[%s7500_s23 + $0x40] sm:$0xff] }
  0x4a   : > { %1319 = vst [vmem:[#allocation2 + $0x104] sm:$0x1] %v1318_v32  ;;  %1323 = vst [vmem:[#allocation2 + $0x10c] sm:$0x1] %v1322_v33  ;;  %v741_v41 = vmul.f32 %v5624_v50, %v7517_v53  ;;  %v743_v43 = vmul.f32 %v5626_v31, %v7517_v53  ;;  %v745_v46 = vmul.f32 %v5628_v37, %v7517_v53  ;;  %v486_v26 = vld [vmem:[%s7500_s23 + $0x50] sm:$0xff]  ;;  %v488_v29 = vld [vmem:[%s7500_s23 + $0x60] sm:$0xff] }
  0x4b   : > { %1327 = vst [vmem:[#allocation2 + $0x114] sm:$0x1] %v1326_v35  ;;  %v502_v47 = vmul.f32 %v7517_v53, %v478_v42  ;;  %v753_v51 = vadd.f32 %v7522_v54, %v735_v38  ;;  %v755_v52 = vadd.f32 %v7522_v54, %v737_v39  ;;  %v757_v55 = vadd.f32 %v7522_v54, %v739_v40  ;;  %vm7712_vm14 = vmand %vm565_vm12, %vm567_vm13  ;;  %v490_v30 = vld [vmem:[%s7500_s23 + $0x70] sm:$0xff]  ;;  %v311_v38 = vld [vmem:[#allocation2 + $0x4] sm:$0x1] }
  0x4c   : > { %v759_v56 = vadd.f32 %v7522_v54, %v741_v41  ;;  %v761_v60 = vadd.f32 %v7522_v54, %v743_v43  ;;  %v763_v49 = vadd.f32 %v7522_v54, %v745_v46  ;;  %v504_v5 = vmul.f32 %v7517_v53, %v480_v48  ;;  %v7173_v39 = vld [vmem:[%s9007_s1 + $0x8] sm:$0xff]   ;;  %v479_v43 = vld [vmem:[%s7500_s23 + $0x18] sm:$0x1] }
  0x4d   : > { %v526_v57 = vadd.f32 %v7522_v54, %v502_v47  ;;  %v771_v58 = vmax.f32 %v753_v51, 0.0  ;;  %v773_v61 = vmax.f32 %v755_v52, 0.0  ;;  %v775_v62 = vmax.f32 %v757_v55, 0.0 }
  0x4e   : > { %v777_v63 = vmax.f32 %v759_v56, 0.0  ;;  %v779_v0 = vmax.f32 %v761_v60, 0.0  ;;  %v781_v59 = vmax.f32 %v763_v49, 0.0  ;;  %v506_v19 = vmul.f32 %v7517_v53, %v482_v4  ;;  %v315_v49 = vld [vmem:[#allocation2 + $0xc] sm:$0x1] }
  0x4f   : > { %v544_v2 = vmax.f32 %v526_v57, 0.0  ;;  %v809_v6 = vsel %vm7584_vm10, %v771_v58, 0.0  ;;  %v811_v7 = vsel %vm7584_vm10, %v773_v61, 0.0  ;;  %v813_v8 = vsel %vm7584_vm10, %v775_v62, 0.0  ;;  %v7174_v62 = vld [vmem:[%s9007_s1 + $0x10] sm:$0xff]  }
  0x50   : > { %v815_v9 = vsel %vm7584_vm10, %v777_v63, 0.0  ;;  %v6261_v15 = vpack.c.bf16 %v809_v6, %v809_v6  ;;  %v6263_v11 = vpack.c.bf16 %v811_v7, %v811_v7  ;;  %v6265_v13 = vpack.c.bf16 %v813_v8, %v813_v8 }
  0x51   : > { %v6267_v10 = vpack.c.bf16 %v815_v9, %v815_v9  ;;  %v817_v14 = vsel %vm7584_vm10, %v779_v0, 0.0  ;;  %v819_v17 = vsel %vm7584_vm10, %v781_v59, 0.0  ;;  %v585_v18 = vsel %vm7712_vm14, %v544_v2, 0.0  ;;  %v319_v9 = vld [vmem:[#allocation2 + $0x14] sm:$0x1] }
  0x52   : > { %904 = vst.msk [vmem:[#allocation2 + $0x58] sm:$0xf] %vm673_vm3, %v6261_v15  ;;  %908 = vst.msk [vmem:[#allocation2 + $0x60] sm:$0xf] %vm673_vm3, %v6263_v11  ;;  %v6269_v20 = vpack.c.bf16 %v817_v14, %v817_v14  ;;  %v6271_v21 = vpack.c.bf16 %v819_v17, %v819_v17  ;;  %v6243_v22 = vpack.c.bf16 %v585_v18, %v585_v18  ;;  %vm566_vm15 = vcmp.ge.s32.totalorder %v7459_v16, 1 }
  0x53   : > { %912 = vst.msk [vmem:[#allocation2 + $0x68] sm:$0xf] %vm673_vm3, %v6265_v13  ;;  %916 = vst.msk [vmem:[#allocation2 + $0x70] sm:$0xf] %vm673_vm3, %v6267_v10  ;;  %v528_v23 = vadd.f32 %v7522_v54, %v504_v5  ;;  %v530_v25 = vadd.f32 %v7522_v54, %v506_v19  ;;  %v508_v50 = vmul.f32 %v7517_v53, %v484_v24  ;;  %vm568_vm0 = vcmp.le.s32.totalorder %v7459_v16, 16  ;;  %v7175_v10 = vld [vmem:[%s9007_s1 + $0x18] sm:$0xff]  }
  0x54   : > { %920 = vst.msk [vmem:[#allocation2 + $0x78] sm:$0xf] %vm673_vm3, %v6269_v20  ;;  %924 = vst.msk [vmem:[#allocation2 + $0x80] sm:$0xf] %vm673_vm3, %v6271_v21  ;;  %v510_v28 = vmul.f32 %v7517_v53, %v486_v26  ;;  %v512_v33 = vmul.f32 %v7517_v53, %v488_v29  ;;  %v514_v35 = vmul.f32 %v7517_v53, %v490_v30  ;;  %v312_v51 = vsel %vm7453_vm2, 0, %v311_v38  ;;  %v7225_v5 = vld [vmem:[%s9007_s1 + $0x178] sm:$0xff]  }
  0x55   : > { %680 = vst.msk [vmem:[#allocation2 + $0x8] sm:$0xf] %vm673_vm3, %v6243_v22  ;;  %v546_v27 = vmax.f32 %v528_v23, 0.0  ;;  %v548_v31 = vmax.f32 %v530_v25, 0.0  ;;  %v532_v32 = vadd.f32 %v7522_v54, %v508_v50  ;;  %313 = vst [vmem:[#allocation2 + $0x4] sm:$0x1] %v312_v51  ;;  %v503_v48 = vmul.f32 %v7517_v53, %v479_v43 }
  0x56   : > { %v534_v37 = vadd.f32 %v7522_v54, %v510_v28  ;;  %v536_v55 = vadd.f32 %v7522_v54, %v512_v33  ;;  %v538_v56 = vadd.f32 %v7522_v54, %v514_v35  ;;  %v316_v4 = vsel %vm7453_vm2, 0, %v315_v49  ;;  %vm7784_vm1 = vmand %vm566_vm15, %vm568_vm0  ;;  %v1657_v18 = vld [vmem:[#allocation2] sm:$0xf]  ;;  %v323_v21 = vld [vmem:[#allocation2 + $0x1c] sm:$0x1] }
  0x57   : > { %v587_v36 = vsel %vm7712_vm14, %v546_v27, 0.0  ;;  %v589_v40 = vsel %vm7712_vm14, %v548_v31, 0.0  ;;  %v550_v42 = vmax.f32 %v532_v32, 0.0  ;;  %v527_v57 = vadd.f32 %v7522_v54, %v503_v48  ;;  %317 = vst [vmem:[#allocation2 + $0xc] sm:$0x1] %v316_v4 }
  0x58   : > { %v6245_v41 = vpack.c.bf16 %v587_v36, %v587_v36  ;;  %v6247_v46 = vpack.c.bf16 %v589_v40, %v589_v40  ;;  %v552_v47 = vmax.f32 %v534_v37, 0.0  ;;  %v554_v59 = vmax.f32 %v536_v55, 0.0  ;;  %v481_v23 = vld [vmem:[%s7500_s23 + $0x28] sm:$0x1]  ;;  %v483_v24 = vld [vmem:[%s7500_s23 + $0x38] sm:$0x1] }
  0x59   : > { %v7172_v52 = vld [vmem:[#allocation2 + $0x58] ss:$8 sps:$4 sm:$0xff]   ;;  %v591_v58 = vsel %vm7712_vm14, %v550_v42, 0.0  ;;  %v556_v2 = vmax.f32 %v538_v56, 0.0  ;;  %v320_v20 = vsel %vm7453_vm2, 0, %v319_v9  ;;  %v324_v22 = vsel %vm7453_vm2, 0, %v323_v21 }
  0x5a   : > { %684 = vst.msk [vmem:[#allocation2 + $0x10] sm:$0xf] %vm673_vm3, %v6245_v41  ;;  %v7178_v60 = vld [vmem:[#allocation2 + $0x68] ss:$8 sps:$4 sm:$0xff]   ;;  %688 = vst.msk [vmem:[#allocation2 + $0x18] sm:$0xf] %vm673_vm3, %v6247_v46  ;;  %6560 = vmatmul.mubr.bf16.vlgmr.msra.gmra.mrb[0].mxu0 %v7172_v52  ;;  %v6249_v63 = vpack.c.bf16 %v591_v58, %v591_v58  ;;  %v505_v26 = vmul.f32 %v7517_v53, %v481_v23  ;;  %v507_v50 = vmul.f32 %v7517_v53, %v483_v24 }
  0x5b   : > { %6568 = vmatpush3.bf16.msra.mxu0 %v7582_v44  ;;  %6563 = vmatprep.mubr.bf16.mxu0 %v7178_v60  ;;  %v593_v61 = vsel %vm7712_vm14, %v552_v47, 0.0  ;;  %v545_v44 = vmax.f32 %v527_v57, 0.0  ;;  %v7180_v6 = vld [vmem:[#allocation2 + $0x78] ss:$8 sps:$4 sm:$0xff]   ;;  %v595_v7 = vsel %vm7712_vm14, %v554_v59, 0.0  ;;  %v597_v8 = vsel %vm7712_vm14, %v556_v2, 0.0 }
  0x5c   : > { %6569 = vmatprep.subr.bf16.mxu0 %v7173_v39  ;;  %v6251_v0 = vpack.c.bf16 %v593_v61, %v593_v61  ;;  %692 = vst.msk [vmem:[#allocation2 + $0x20] sm:$0xf] %vm673_vm3, %v6249_v63  ;;  %v7182_v15 = vld [vmem:[#allocation2] ss:$8 sps:$4 sm:$0xff]   ;;  %v6253_v16 = vpack.c.bf16 %v595_v7, %v595_v7  ;;  %v6255_v11 = vpack.c.bf16 %v597_v8, %v597_v8  ;;  %v677_v13 = vld [vmem:[#allocation2 + $0x4] sm:$0x1] }
  0x5d   : > { %v586_v14 = vsel %vm7784_vm1, %v545_v44, 0.0  ;;  %v678_v17 = vsel %vm7564_vm5, %v7538_v1, %v677_v13  ;;  %v1659_v19 = vld [vmem:[#allocation2 + $0x8] sm:$0xf]  ;;  %321 = vst [vmem:[#allocation2 + $0x14] sm:$0x1] %v320_v20  ;;  %v7176_v1 = vld [vmem:[%s9007_s1 + $0x20] sm:$0xff]   ;;  %v529_v33 = vadd.f32 %v7522_v54, %v505_v26  ;;  %v531_v35 = vadd.f32 %v7522_v54, %v507_v50 }
  0x5e   : > { %696 = vst.msk [vmem:[#allocation2 + $0x28] sm:$0xf] %vm673_vm3, %v6251_v0  ;;  %700 = vst.msk [vmem:[#allocation2 + $0x30] sm:$0xf] %vm673_vm3, %v6253_v16  ;;  %v6244_v25 = vpack.c.bf16 %v586_v14, %v586_v14  ;;  %v1677_v28 = vshrl.u32 %v1657_v18, 16  ;;  %v1680_v29 = vshll.u32 %v1657_v18, 16 }
  0x5f   : > { %6570 = vmatpush3.bf16.msra.mxu0 %v7173_v39  ;;  %704 = vst.msk [vmem:[#allocation2 + $0x38] sm:$0xf] %vm673_vm3, %v6255_v11  ;;  %679 = vst [vmem:[#allocation2 + $0x4] sm:$0x1] %v678_v17  ;;  %v1691_v31 = vshrl.u32 %v1659_v19, 16  ;;  %v1694_v32 = vshll.u32 %v1659_v19, 16 }
  0x60   : > { %6571 = vmatprep.subr.bf16.mxu0 %v7174_v62  ;;  %325 = vst [vmem:[#allocation2 + $0x1c] sm:$0x1] %v324_v22  ;;  %v681_v36 = vld [vmem:[#allocation2 + $0xc] sm:$0x1]  ;;  %v547_v41 = vmax.f32 %v529_v33, 0.0  ;;  %v549_v42 = vmax.f32 %v531_v35, 0.0 }
  0x61   : > { %v1661_v27 = vld [vmem:[#allocation2 + $0x10] sm:$0xf]  ;;  %v1663_v30 = vld [vmem:[#allocation2 + $0x18] sm:$0xf]  ;;  %v7177_v39 = vld [vmem:[%s9007_s1 + $0x28] sm:$0xff]   ;;  %v682_v40 = vsel %vm7564_vm5, %v6244_v25, %v681_v36  ;;  %v1679_v46 = vrot.slane %v1677_v28, 4 }
  0x62   : > { %6564 = vmatmul.mubr.bf16.gmra.mrb[4].mxu0 %v7180_v6  ;;  %v1705_v37 = vshrl.u32 %v1661_v27, 16  ;;  %v1708_v38 = vshll.u32 %v1661_v27, 16  ;;  %v1719_v43 = vshrl.u32 %v1663_v30, 16  ;;  %683 = vst [vmem:[#allocation2 + $0xc] sm:$0x1] %v682_v40  ;;  %v1682_v47 = vrot.slane %v1680_v29, 5 }
  0x63   : > { %6572 = vmatpush3.bf16.msra.mxu0 %v7174_v62  ;;  %6583 = vmatprep.mubr.bf16.mxu0 %v7182_v15  ;;  %v1693_v51 = vrot.slane %v1691_v31, 4  ;;  %v1696_v52 = vrot.slane %v1694_v32, 5  ;;  %v588_v55 = vsel %vm7784_vm1, %v547_v41, 0.0  ;;  %v590_v56 = vsel %vm7784_vm1, %v549_v42, 0.0  ;;  %v7179_v60 = vld [vmem:[%s9007_s1 + $0x30] sm:$0xff]   ;;  %v7181_v15 = vld [vmem:[%s9007_s1 + $0x38] sm:$0xff]  }
  0x64   : > { %6573 = vmatprep.subr.bf16.mxu0 %v7175_v10  ;;  %v685_v48 = vld [vmem:[#allocation2 + $0x14] sm:$0x1]  ;;  %v6246_v49 = vpack.c.bf16 %v588_v55, %v588_v55  ;;  %v6248_v57 = vpack.c.bf16 %v590_v56, %v590_v56  ;;  %v7829_v61 = vrot.slane %v1705_v37, 4  ;;  %v7831_v62 = vrot.slane %v1708_v38, 5  ;;  %v327_v7 = vld [vmem:[#allocation2 + $0x24] sm:$0x1] }
  0x65   : > { %v7833_v63 = vrot.slane %v1719_v43, 4  ;;  %v1722_v0 = vshll.u32 %v1663_v30, 16  ;;  %vm1673_vm4 = vsmask.f32 3328  ;;  %v1683_v44 = vor.u32 %v1682_v47, %v1679_v46  ;;  %v331_v8 = vld [vmem:[#allocation2 + $0x2c] sm:$0x1] }
  0x66   : > { %v1658_v59 = vld [vmem:[#allocation2 + $0x4] sm:$0x1]  ;;  %v686_v2 = vsel %vm7564_vm5, %v6246_v49, %v685_v48  ;;  %v1697_v6 = vor.u32 %v1696_v52, %v1693_v51  ;;  %v485_v9 = vld [vmem:[%s7500_s23 + $0x48] sm:$0x1]  ;;  %v328_v13 = vsel %vm7453_vm2, 0, %v327_v7  ;;  %v5652_v38 = vld [vmem:[%s7500_s23 + $0x130] sm:$0xff]  ;;  %v1711_v42 = vor.u32 %v7831_v62, %v7829_v61 }
  0x67   : > { %6574 = vmatpush3.bf16.msra.mxu0 %v7175_v10  ;;  %v689_v58 = vld [vmem:[#allocation2 + $0x1c] sm:$0x1]  ;;  %687 = vst [vmem:[#allocation2 + $0x14] sm:$0x1] %v686_v2  ;;  %v1686_v11 = vshll.u32 %v1658_v59, 16  ;;  %v332_v10 = vsel %vm7453_vm2, 0, %v331_v8  ;;  %v509_v14 = vmul.f32 %v7517_v53, %v485_v9 }
  0x68   : > { %6575 = vmatprep.subr.bf16.mxu0 %v7176_v1  ;;  %v690_v4 = vsel %vm7564_vm5, %v6248_v57, %v689_v58  ;;  %v7848_v17 = vrot.slane %v1722_v0, 5  ;;  %329 = vst [vmem:[#allocation2 + $0x24] sm:$0x1] %v328_v13  ;;  %333 = vst [vmem:[#allocation2 + $0x2c] sm:$0x1] %v332_v10  ;;  %v5650_v20 = vld [vmem:[%s7500_s23 + $0x120] sm:$0xff]  ;;  %v953_v0 = vmul.f32 %v5652_v38, %v7517_v53 }
  0x69   : > { %691 = vst [vmem:[#allocation2 + $0x1c] sm:$0x1] %v690_v4  ;;  %v1660_v16 = vld [vmem:[#allocation2 + $0xc] sm:$0x1]  ;;  %v487_v18 = vld [vmem:[%s7500_s23 + $0x58] sm:$0x1]  ;;  %v533_v22 = vadd.f32 %v7522_v54, %v509_v14 }
  0x6a   : > { %v1665_v19 = vld [vmem:[#allocation2 + $0x20] sm:$0xf]  ;;  %v511_v21 = vmul.f32 %v7517_v53, %v487_v18  ;;  %v1667_v23 = vld [vmem:[#allocation2 + $0x28] sm:$0xf]  ;;  %vm1674_vm6 = vsmask.f32 7440  ;;  %v1725_v43 = vor.u32 %v7848_v17, %v7833_v63 }
  0x6b   : > { %6576 = vmatpush3.bf16.msra.mxu0 %v7176_v1  ;;  %v1733_v24 = vshrl.u32 %v1665_v19, 16  ;;  %v1736_v1 = vshll.u32 %v1665_v19, 16  ;;  %v1700_v25 = vshll.u32 %v1660_v16, 16  ;;  %v1747_v26 = vshrl.u32 %v1667_v23, 16  ;;  %v7183_v50 = vld [vmem:[%s9007_s1 + $0x80] sm:$0xff]   ;;  %vm7881_vm7 = vmor %vm1673_vm4, %vm1674_vm6  ;;  %v7185_v59 = vld [vmem:[%s9007_s1 + $0x88] sm:$0xff]  }
  0x6c   : > { %6577 = vmatprep.subr.bf16.mxu0 %v7177_v39  ;;  %v7857_v27 = vrot.slane %v1683_v44, 4  ;;  %v7859_v28 = vrot.slane %v1697_v6, 4  ;;  %v535_v29 = vadd.f32 %v7522_v54, %v511_v21  ;;  %v551_v30 = vmax.f32 %v533_v22, 0.0  ;;  %v335_v31 = vld [vmem:[#allocation2 + $0x34] sm:$0x1]  ;;  %v5654_v22 = vld [vmem:[%s7500_s23 + $0x140] sm:$0xff] }
  0x6d   : > { %v7184_v32 = vld [vmem:[#allocation2 + $0x10] ss:$8 sps:$4 sm:$0xff]   ;;  %v7862_v33 = vrot.slane %v1686_v11, 5  ;;  %v1735_v36 = vrot.slane %v1733_v24, 4  ;;  %v1750_v37 = vshll.u32 %v1667_v23, 16  ;;  %v1738_v47 = vrot.slane %v1736_v1, 5 }
  0x6e   : > { %v1662_v35 = vld [vmem:[#allocation2 + $0x14] sm:$0x1]  ;;  %v7190_v40 = vld [vmem:[#allocation2 + $0x20] ss:$8 sps:$4 sm:$0xff]   ;;  %v553_v46 = vmax.f32 %v535_v29, 0.0  ;;  %v7870_v52 = vrot.slane %v1700_v25, 5 }
  0x6f   : > { %6578 = vmatpush3.bf16.msra.mxu0 %v7177_v39  ;;  %v951_v39 = vmul.f32 %v5650_v20, %v7517_v53  ;;  %v339_v51 = vld [vmem:[#allocation2 + $0x3c] sm:$0x1]  ;;  %v592_v55 = vsel %vm7784_vm1, %v551_v30, 0.0  ;;  %v7874_v56 = vrot.slane %v1747_v26, 4  ;;  %v336_v48 = vsel %vm7453_vm2, 0, %v335_v31  ;;  %v7186_v11 = vld [vmem:[%s9007_s1 + $0x90] sm:$0xff]  }
  0x70   : > { %6579 = vmatprep.subr.bf16.mxu0 %v7179_v60  ;;  %v1664_v41 = vld [vmem:[#allocation2 + $0x1c] sm:$0x1]  ;;  %v1714_v57 = vshll.u32 %v1662_v35, 16  ;;  %v594_v58 = vsel %vm7784_vm1, %v553_v46, 0.0  ;;  %v6250_v61 = vpack.c.bf16 %v592_v55, %v592_v55  ;;  %v693_v62 = vld [vmem:[#allocation2 + $0x24] sm:$0x1]  ;;  %v1739_v9 = vor.u32 %v1738_v47, %v1735_v36 }
  0x71   : > { %337 = vst [vmem:[#allocation2 + $0x34] sm:$0x1] %v336_v48  ;;  %v491_v63 = vld [vmem:[%s7500_s23 + $0x78] sm:$0x1]  ;;  %v1728_v2 = vshll.u32 %v1664_v41, 16  ;;  %v6252_v4 = vpack.c.bf16 %v594_v58, %v594_v58  ;;  %v340_v6 = vsel %vm7453_vm2, 0, %v339_v51  ;;  %v969_v7 = vadd.f32 %v7522_v54, %v951_v39 }
  0x72   : > { %v697_v44 = vld [vmem:[#allocation2 + $0x2c] sm:$0x1]  ;;  %v694_v8 = vsel %vm7564_vm5, %v6250_v61, %v693_v62  ;;  %341 = vst [vmem:[#allocation2 + $0x3c] sm:$0x1] %v340_v6  ;;  %v1689_v54 = vsel %vm7881_vm7, %v7857_v27, %v7862_v33  ;;  %v7905_v13 = vrot.slane %v1711_v42, 4  ;;  %v1703_v17 = vsel %vm7881_vm7, %v7859_v28, %v7870_v52  ;;  %v5656_v23 = vld [vmem:[%s7500_s23 + $0x150] sm:$0xff] }
  0x73   : > { %6580 = vmatpush3.bf16.msra.mxu0 %v7179_v60  ;;  %v489_v60 = vld [vmem:[%s7500_s23 + $0x68] sm:$0x1]  ;;  %695 = vst [vmem:[#allocation2 + $0x24] sm:$0x1] %v694_v8  ;;  %v698_v10 = vsel %vm7564_vm5, %v6252_v4, %v697_v44  ;;  %v7919_v18 = vrot.slane %v1714_v57, 5  ;;  %v7921_v19 = vrot.slane %v1725_v43, 4  ;;  %v5778_v39 = vcombine.low %v1689_v54, %v1703_v17 }
  0x74   : > { %6581 = vmatprep.subr.bf16.mxu0 %v7181_v15  ;;  %v513_v16 = vmul.f32 %v7517_v53, %v489_v60  ;;  %v7912_v53 = vld [vmem:[%s9008_s2] ss:$0 sm:$0xff]  ;;  %699 = vst [vmem:[#allocation2 + $0x2c] sm:$0x1] %v698_v10  ;;  %v7192_v24 = vld [vmem:[#allocation2 + $0x30] ss:$8 sps:$4 sm:$0xff]  }
  0x75   : > { %v515_v14 = vmul.f32 %v7912_v53, %v491_v63  ;;  %v7926_v20 = vld [vmem:[%s9009_s3] ss:$0 sm:$0xff]  ;;  %v7931_v1 = vrot.slane %v1728_v2, 5  ;;  %v7935_v27 = vrot.slane %v1739_v9, 4  ;;  %v1669_v30 = vld [vmem:[#allocation2 + $0x30] sm:$0xf]  ;;  %v955_v38 = vmul.f32 %v7912_v53, %v5654_v22 }
  0x76   : > { %v537_v21 = vadd.f32 %v7926_v20, %v513_v16  ;;  %v971_v26 = vadd.f32 %v7926_v20, %v953_v0  ;;  %v7187_v31 = vld [vmem:[%s9007_s1 + $0x98] sm:$0xff]   ;;  %v5658_v42 = vld [vmem:[%s7500_s23 + $0x160] sm:$0xff]  ;;  %v957_v52 = vmul.f32 %v7912_v53, %v5656_v23  ;;  %v1761_v48 = vshrl.u32 %v1669_v30, 16  ;;  %v5660_v63 = vld [vmem:[%s7500_s23 + $0x170] sm:$0xff] }
  0x77   : > { %6582 = vmatpush3.bf16.msra.mxu0 %v7181_v15  ;;  %v1752_v15 = vrot.slane %v1750_v37, 5  ;;  %v539_v25 = vadd.f32 %v7926_v20, %v515_v14  ;;  %v7941_v35 = vld [vmem:[#allocation2 + $0x38] sm:$0xf]  ;;  %v1764_v58 = vshll.u32 %v1669_v30, 16  ;;  %v973_v61 = vadd.f32 %v7926_v20, %v955_v38  ;;  %v7188_v0 = vld [vmem:[%s9007_s1 + $0xa0] sm:$0xff]   ;;  %v5664_v10 = vld [vmem:[%s7500_s23 + $0x190] sm:$0xff] }
  0x78   : > { %6591 = vmatprep.subr.bf16.mxu0 %v7183_v50  ;;  %v555_v29 = vmax.f32 %v537_v21, 0.0  ;;  %v701_v33 = vld [vmem:[#allocation2 + $0x34] sm:$0x1]  ;;  %v989_v36 = vmax.f32 %v971_v26, 0.0  ;;  %v975_v62 = vadd.f32 %v7926_v20, %v957_v52  ;;  %v1775_v2 = vshrl.u32 %v7941_v35, 16  ;;  %v5662_v9 = vld [vmem:[%s7500_s23 + $0x180] sm:$0xff] }
  0x79   : > { %v1753_v28 = vor.u32 %v1752_v15, %v7874_v56  ;;  %v705_v47 = vld [vmem:[#allocation2 + $0x3c] sm:$0x1]  ;;  %v959_v4 = vmul.f32 %v7912_v53, %v5658_v42  ;;  %v961_v44 = vmul.f32 %v7912_v53, %v5660_v63  ;;  %v1778_v6 = vshll.u32 %v7941_v35, 16  ;;  %v7189_v17 = vld [vmem:[%s9007_s1 + $0xa8] sm:$0xff]   ;;  %v7342_v49 = vld [vmem:[%s9012_s6 + $0x220] sm:$0xff]  }
  0x7a   : > { %6584 = vmatmul.mubr.bf16.vlgmr.msra.gmra.mrb[0].mxu0 %v7184_v32  ;;  %v557_v32 = vmax.f32 %v539_v25, 0.0  ;;  %v1007_v51 = vsel %vm7712_vm14, %v989_v36, 0.0  ;;  %v993_v8 = vmax.f32 %v975_v62, 0.0  ;;  %v1666_v15 = vld [vmem:[#allocation2 + $0x24] sm:$0x1]  ;;  %v7973_v16 = vrot.slane %v1761_v48, 4 }
  0x7b   : > { %6592 = vmatpush3.bf16.msra.mxu0 %v7183_v50  ;;  %6587 = vmatprep.mubr.bf16.mxu0 %v7190_v40  ;;  %v987_v50 = vmax.f32 %v969_v7, 0.0  ;;  %v596_v40 = vsel %vm7784_vm1, %v555_v29, 0.0  ;;  %v7954_v55 = vrot.slane %v1753_v28, 4  ;;  %v6277_v60 = vpack.c.bf16 %v1007_v51, %v1007_v51  ;;  %v5686_v25 = vld [vmem:[%s7500_s23 + $0x1b0] sm:$0xff]  ;;  %v5688_v29 = vld [vmem:[%s7500_s23 + $0x1c0] sm:$0xff] }
  0x7c   : > { %6593 = vmatprep.subr.bf16.mxu0 %v7185_v59  ;;  %v598_v43 = vsel %vm7784_vm1, %v557_v32, 0.0  ;;  %v6254_v46 = vpack.c.bf16 %v596_v40, %v596_v40  ;;  %v991_v7 = vmax.f32 %v973_v61, 0.0  ;;  %v979_v54 = vadd.f32 %v7926_v20, %v961_v44  ;;  %v1668_v30 = vld [vmem:[#allocation2 + $0x2c] sm:$0x1]  ;;  %v5690_v36 = vld [vmem:[%s7500_s23 + $0x1d0] sm:$0xff] }
  0x7d   : > { %v1005_v37 = vsel %vm7712_vm14, %v987_v50, 0.0  ;;  %v6256_v56 = vpack.c.bf16 %v598_v43, %v598_v43  ;;  %1100 = vst.msk [vmem:[#allocation2 + $0x98] sm:$0xf] %vm673_vm3, %v6277_v60  ;;  %v963_v14 = vmul.f32 %v7912_v53, %v5662_v9  ;;  %v7982_v21 = vrot.slane %v1764_v58, 5  ;;  %v7191_v48 = vld [vmem:[%s9007_s1 + $0xb0] sm:$0xff]  }
  0x7e   : > { %v6275_v41 = vpack.c.bf16 %v1005_v37, %v1005_v37  ;;  %v702_v57 = vsel %vm7564_vm5, %v6254_v46, %v701_v33  ;;  %v1009_v22 = vsel %vm7712_vm14, %v991_v7, 0.0  ;;  %v1011_v23 = vsel %vm7712_vm14, %v993_v8, 0.0 }
  0x7f   : > { %6594 = vmatpush3.bf16.msra.mxu0 %v7185_v59  ;;  %703 = vst [vmem:[#allocation2 + $0x34] sm:$0x1] %v702_v57  ;;  %v706_v59 = vsel %vm7564_vm5, %v6256_v56, %v705_v47  ;;  %v6279_v26 = vpack.c.bf16 %v1009_v22, %v1009_v22  ;;  %v6281_v50 = vpack.c.bf16 %v1011_v23, %v1011_v23  ;;  %v997_v32 = vmax.f32 %v979_v54, 0.0 }
  0x80   : > { %6595 = vmatprep.subr.bf16.mxu0 %v7186_v11  ;;  %1096 = vst.msk [vmem:[#allocation2 + $0x90] sm:$0xf] %vm673_vm3, %v6275_v41  ;;  %707 = vst [vmem:[#allocation2 + $0x3c] sm:$0x1] %v706_v59  ;;  %v981_v33 = vadd.f32 %v7926_v20, %v963_v14  ;;  %v1151_v37 = vmul.f32 %v7912_v53, %v5686_v25  ;;  %v1153_v38 = vmul.f32 %v7912_v53, %v5688_v29  ;;  %vm3839_vm9 = vcmask 1042432  }
  0x81   : > { %1104 = vst.msk [vmem:[#allocation2 + $0xa0] sm:$0xf] %vm673_vm3, %v6279_v26  ;;  %1108 = vst.msk [vmem:[#allocation2 + $0xa8] sm:$0xf] %vm673_vm3, %v6281_v50  ;;  %v1155_v40 = vmul.f32 %v7912_v53, %v5690_v36  ;;  %v1742_v41 = vshll.u32 %v1666_v15, 16  ;;  %v8002_v42 = vrot.slane %v1775_v2, 4  ;;  %v1767_v63 = vor.u32 %v7982_v21, %v7973_v16 }
  0x82   : > { %6588 = vmatmul.mubr.bf16.gmra.mrb[4].mxu0 %v7192_v24  ;;  %v965_v24 = vmul.f32 %v7912_v53, %v5664_v10  ;;  %v8004_v43 = vrot.slane %v1778_v6, 5  ;;  %v1015_v47 = vsel %vm7712_vm14, %v997_v32, 0.0  ;;  %v999_v51 = vmax.f32 %v981_v33, 0.0  ;;  %v5694_v26 = vld [vmem:[%s7500_s23 + $0x1f0] sm:$0xff]  ;;  %v5696_v50 = vld [vmem:[%s7500_s23 + $0x200] sm:$0xff] }
  0x83   : > { %6596 = vmatpush3.bf16.msra.mxu0 %v7186_v11  ;;  %6607 = vmatprep.mubr.bf16.mxu0 %v5778_v39  ;;  %v977_v11 = vadd.f32 %v7926_v20, %v959_v4  ;;  %v5692_v39 = vld [vmem:[%s7500_s23 + $0x1e0] sm:$0xff]  ;;  %v1756_v60 = vshll.u32 %v1668_v30, 16  ;;  %v6285_v57 = vpack.c.bf16 %v1015_v47, %v1015_v47  ;;  %v1169_v58 = vadd.f32 %v7926_v20, %v1151_v37  ;;  %v7193_v4 = vld [vmem:[%s9007_s1 + $0xb8] sm:$0xff]   ;;  %v383_v47 = vld [vmem:[#allocation2 + $0x94] sm:$0x1] }
  0x84   : > { %6597 = vmatprep.subr.bf16.mxu0 %v7187_v31  ;;  %v983_v35 = vadd.f32 %v7926_v20, %v965_v24  ;;  %v1157_v56 = vmul.f32 %v7912_v53, %v5692_v39  ;;  %v1171_v61 = vadd.f32 %v7926_v20, %v1153_v38  ;;  %v1173_v2 = vadd.f32 %v7926_v20, %v1155_v40  ;;  %v5698_v38 = vld [vmem:[%s7500_s23 + $0x210] sm:$0xff]  ;;  %v5700_v39 = vld [vmem:[%s7500_s23 + $0x220] sm:$0xff] }
  0x85   : > { %v995_v28 = vmax.f32 %v977_v11, 0.0  ;;  %v1744_v44 = vrot.slane %v1742_v41, 5  ;;  %1116 = vst.msk [vmem:[#allocation2 + $0xb8] sm:$0xf] %vm673_vm3, %v6285_v57  ;;  %v1187_v9 = vmax.f32 %v1169_v58, 0.0  ;;  %v1717_v15 = vsel %vm7881_vm7, %v7905_v13, %v7919_v18 }
  0x86   : > { %v1001_v52 = vmax.f32 %v983_v35, 0.0  ;;  %v1670_v62 = vld [vmem:[#allocation2 + $0x34] sm:$0x1]  ;;  %v1189_v16 = vmax.f32 %v1171_v61, 0.0  ;;  %v1175_v11 = vadd.f32 %v7926_v20, %v1157_v56  ;;  %v1191_v54 = vmax.f32 %v1173_v2, 0.0 }
  0x87   : > { %6598 = vmatpush3.bf16.msra.mxu0 %v7187_v31  ;;  %v1013_v31 = vsel %vm7712_vm14, %v995_v28, 0.0  ;;  %v1672_v6 = vld [vmem:[#allocation2 + $0x3c] sm:$0x1]  ;;  %v1731_v10 = vsel %vm7881_vm7, %v7921_v19, %v7931_v1  ;;  %v1758_v14 = vrot.slane %v1756_v60, 5  ;;  %v1770_v21 = vshll.u32 %v1670_v62, 16  ;;  %v7194_v28 = vld [vmem:[%s9007_s1 + $0xc0] sm:$0xff]  }
  0x88   : > { %6599 = vmatprep.subr.bf16.mxu0 %v7188_v0  ;;  %v6283_v46 = vpack.c.bf16 %v1013_v31, %v1013_v31  ;;  %v1019_v59 = vsel %vm7712_vm14, %v1001_v52, 0.0  ;;  %v8039_v13 = vrot.slane %v1767_v63, 4  ;;  %v1205_v18 = vsel %vm7584_vm10, %v1187_v9, 0.0  ;;  %v387_v61 = vld [vmem:[#allocation2 + $0x9c] sm:$0x1] }
  0x89   : > { %v6289_v8 = vpack.c.bf16 %v1019_v59, %v1019_v59  ;;  %v1207_v22 = vsel %vm7584_vm10, %v1189_v16, 0.0  ;;  %v1193_v23 = vmax.f32 %v1175_v11, 0.0  ;;  %v1784_v24 = vshll.u32 %v1672_v6, 16  ;;  %v5651_v2 = vld [vmem:[%s7500_s23 + $0x128] sm:$0x1]  ;;  %v7196_v11 = vld [vmem:[%s9007_s1 + $0xd0] sm:$0xff]  }
  0x8a   : > { %1112 = vst.msk [vmem:[#allocation2 + $0xb0] sm:$0xf] %vm673_vm3, %v6283_v46  ;;  %v6291_v19 = vpack.c.bf16 %v1205_v18, %v1205_v18  ;;  %v6293_v1 = vpack.c.bf16 %v1207_v22, %v1207_v22  ;;  %v1209_v25 = vsel %vm7584_vm10, %v1191_v54, 0.0  ;;  %v1159_v32 = vmul.f32 %v7912_v53, %v5694_v26  ;;  %v7202_v22 = vld [vmem:[#allocation2 + $0x90] ss:$8 sps:$4 sm:$0xff]  }
  0x8b   : > { %6600 = vmatpush3.bf16.msra.mxu0 %v7188_v0  ;;  %v1017_v0 = vsel %vm7712_vm14, %v999_v51, 0.0  ;;  %1124 = vst.msk [vmem:[#allocation2 + $0xc8] sm:$0xf] %vm673_vm3, %v6289_v8  ;;  %v1211_v29 = vsel %vm7584_vm10, %v1193_v23, 0.0  ;;  %v6295_v30 = vpack.c.bf16 %v1209_v25, %v1209_v25  ;;  %v1161_v33 = vmul.f32 %v7912_v53, %v5696_v50 }
  0x8c   : > { %6601 = vmatprep.subr.bf16.mxu0 %v7189_v17  ;;  %v6287_v7 = vpack.c.bf16 %v1017_v0, %v1017_v0  ;;  %v1745_v35 = vsel %vm7881_vm7, %v7935_v27, %v1744_v44  ;;  %v1759_v36 = vsel %vm7881_vm7, %v7954_v55, %v1758_v14  ;;  %v1772_v31 = vrot.slane %v1770_v21, 5  ;;  %1296 = vst.msk [vmem:[#allocation2 + $0xd8] sm:$0xf] %vm673_vm3, %v6291_v19  ;;  %v391_v19 = vld [vmem:[#allocation2 + $0xa4] sm:$0x1] }
  0x8d   : > { %1300 = vst.msk [vmem:[#allocation2 + $0xe0] sm:$0xf] %vm673_vm3, %v6293_v1  ;;  %v6297_v37 = vpack.c.bf16 %v1211_v29, %v1211_v29  ;;  %1304 = vst.msk [vmem:[#allocation2 + $0xe8] sm:$0xf] %vm673_vm3, %v6295_v30  ;;  %v1177_v40 = vadd.f32 %v7926_v20, %v1159_v32  ;;  %v1179_v41 = vadd.f32 %v7926_v20, %v1161_v33  ;;  %v1786_v46 = vrot.slane %v1784_v24, 5  ;;  %v7197_v1 = vld [vmem:[%s9007_s1 + $0xd8] sm:$0xff]  }
  0x8e   : > { %1120 = vst.msk [vmem:[#allocation2 + $0xc0] sm:$0xf] %vm673_vm3, %v6287_v7  ;;  %v1163_v27 = vmul.f32 %v7912_v53, %v5698_v38  ;;  %v5780_v51 = vcombine.low %v1745_v35, %v1759_v36  ;;  %v384_v58 = vsel %vm7453_vm2, 0, %v383_v47  ;;  %v1773_v62 = vsel %vm7881_vm7, %v8039_v13, %v1772_v31  ;;  %v5653_v7 = vld [vmem:[%s7500_s23 + $0x138] sm:$0x1] }
  0x8f   : > { %6602 = vmatpush3.bf16.msra.mxu0 %v7189_v17  ;;  %v1781_v17 = vor.u32 %v8004_v43, %v8002_v42  ;;  %v1165_v42 = vmul.f32 %v7912_v53, %v5700_v39  ;;  %v5779_v43 = vcombine.low %v1717_v15, %v1731_v10  ;;  %1308 = vst.msk [vmem:[#allocation2 + $0xf0] sm:$0xf] %vm673_vm3, %v6297_v37  ;;  %v1195_v60 = vmax.f32 %v1177_v40, 0.0  ;;  %v395_v32 = vld [vmem:[#allocation2 + $0xac] sm:$0x1]  ;;  %v7198_v40 = vld [vmem:[%s9007_s1 + $0xe0] sm:$0xff]  }
  0x90   : > { %6603 = vmatprep.subr.bf16.mxu0 %v7191_v48  ;;  %v1181_v52 = vadd.f32 %v7926_v20, %v1163_v27  ;;  %v1197_v57 = vmax.f32 %v1179_v41, 0.0  ;;  %385 = vst [vmem:[#allocation2 + $0x94] sm:$0x1] %v384_v58  ;;  %v388_v59 = vsel %vm7453_vm2, 0, %v387_v61  ;;  %v952_v8 = vmul.f32 %v7912_v53, %v5651_v2  ;;  %v5655_v36 = vld [vmem:[%s7500_s23 + $0x148] sm:$0x1] }
  0x91   : > { %v1782_v55 = vrot.slane %v1781_v17, 4  ;;  %v1183_v56 = vadd.f32 %v7926_v20, %v1165_v42  ;;  %v1213_v44 = vsel %vm7584_vm10, %v1195_v60, 0.0  ;;  %389 = vst [vmem:[#allocation2 + $0x9c] sm:$0x1] %v388_v59  ;;  %v954_v16 = vmul.f32 %v7912_v53, %v5653_v7  ;;  %v5657_v31 = vld [vmem:[%s7500_s23 + $0x158] sm:$0x1] }
  0x92   : > { %v1199_v63 = vmax.f32 %v1181_v52, 0.0  ;;  %v1215_v6 = vsel %vm7584_vm10, %v1197_v57, 0.0  ;;  %v6299_v9 = vpack.c.bf16 %v1213_v44, %v1213_v44  ;;  %v970_v14 = vadd.f32 %v7926_v20, %v952_v8  ;;  %v7200_v57 = vld [vmem:[%s9007_s1 + $0xf0] sm:$0xff]   ;;  %v5659_v2 = vld [vmem:[%s7500_s23 + $0x168] sm:$0x1]  ;;  %v7201_v44 = vld [vmem:[%s9007_s1 + $0xf8] sm:$0xff]  }
  0x93   : > { %6604 = vmatpush3.bf16.msra.mxu0 %v7191_v48  ;;  %v7195_v48 = vld [vmem:[%s9007_s1 + $0xc8] sm:$0xff]   ;;  %v1201_v0 = vmax.f32 %v1183_v56, 0.0  ;;  %v6301_v15 = vpack.c.bf16 %v1215_v6, %v1215_v6  ;;  %v972_v13 = vadd.f32 %v7926_v20, %v954_v16  ;;  %v392_v30 = vsel %vm7453_vm2, 0, %v391_v19 }
  0x94   : > { %6605 = vmatprep.subr.bf16.mxu0 %v7193_v4  ;;  %v1217_v54 = vsel %vm7584_vm10, %v1199_v63, 0.0  ;;  %1312 = vst.msk [vmem:[#allocation2 + $0xf8] sm:$0xf] %vm673_vm3, %v6299_v9  ;;  %v988_v23 = vmax.f32 %v970_v14, 0.0  ;;  %393 = vst [vmem:[#allocation2 + $0xa4] sm:$0x1] %v392_v30  ;;  %v956_v38 = vmul.f32 %v7912_v53, %v5655_v36  ;;  %v958_v39 = vmul.f32 %v7912_v53, %v5657_v31 }
  0x95   : > { %v1219_v10 = vsel %vm7584_vm10, %v1201_v0, 0.0  ;;  %1316 = vst.msk [vmem:[#allocation2 + $0x100] sm:$0xf] %vm673_vm3, %v6301_v15  ;;  %v6303_v21 = vpack.c.bf16 %v1217_v54, %v1217_v54  ;;  %v990_v24 = vmax.f32 %v972_v13, 0.0  ;;  %v396_v35 = vsel %vm7453_vm2, 0, %v395_v32 }
  0x96   : > { %v6305_v17 = vpack.c.bf16 %v1219_v10, %v1219_v10  ;;  %v1006_v25 = vsel %vm7784_vm1, %v988_v23, 0.0  ;;  %397 = vst [vmem:[#allocation2 + $0xac] sm:$0x1] %v396_v35  ;;  %v974_v27 = vadd.f32 %v7926_v20, %v956_v38  ;;  %v976_v42 = vadd.f32 %v7926_v20, %v958_v39  ;;  %v403_v0 = vld [vmem:[#allocation2 + $0xbc] sm:$0x1]  ;;  %v7203_v10 = vld [vmem:[%s9007_s1 + $0x100] sm:$0xff]  }
  0x97   : > { %6606 = vmatpush3.bf16.msra.mxu0 %v7193_v4  ;;  %v1787_v4 = vsel %vm7881_vm7, %v1782_v55, %v1786_v46  ;;  %1320 = vst.msk [vmem:[#allocation2 + $0x108] sm:$0xf] %vm673_vm3, %v6303_v21  ;;  %v1097_v26 = vld [vmem:[#allocation2 + $0x94] sm:$0x1]  ;;  %v1008_v50 = vsel %vm7784_vm1, %v990_v24, 0.0  ;;  %v7199_v46 = vld [vmem:[%s9007_s1 + $0xe8] sm:$0xff]   ;;  %v960_v6 = vmul.f32 %v7912_v53, %v5659_v2 }
  0x98   : > { %6615 = vmatprep.subr.bf16.mxu0 %v7194_v28  ;;  %v5781_v18 = vcombine.low %v1773_v62, %v1787_v4  ;;  %1324 = vst.msk [vmem:[#allocation2 + $0x110] sm:$0xf] %vm673_vm3, %v6305_v17  ;;  %v1101_v29 = vld [vmem:[#allocation2 + $0x9c] sm:$0x1]  ;;  %v6278_v33 = vpack.c.bf16 %v1008_v50, %v1008_v50  ;;  %v994_v55 = vmax.f32 %v976_v42, 0.0  ;;  %v404_v59 = vsel %vm7453_vm2, 0, %v403_v0 }
  0x99   : > { %v399_v62 = vld [vmem:[#allocation2 + $0xb4] sm:$0x1]  ;;  %v5661_v4 = vld [vmem:[%s7500_s23 + $0x178] sm:$0x1]  ;;  %405 = vst [vmem:[#allocation2 + $0xbc] sm:$0x1] %v404_v59  ;;  %v978_v8 = vadd.f32 %v7926_v20, %v960_v6 }
  0x9a   : > { %6608 = vmatmul.mubr.bf16.vlgmr.msra.gmra.mrb[0].mxu0 %v5779_v43  ;;  %v1102_v41 = vsel %vm7564_vm5, %v6278_v33, %v1101_v29  ;;  %v992_v43 = vmax.f32 %v974_v27, 0.0  ;;  %v400_v63 = vsel %vm7453_vm2, 0, %v399_v62  ;;  %v962_v7 = vmul.f32 %v7912_v53, %v5661_v4  ;;  %v407_v15 = vld [vmem:[#allocation2 + $0xc4] sm:$0x1]  ;;  %v5663_v54 = vld [vmem:[%s7500_s23 + $0x188] sm:$0x1] }
  0x9b   : > { %6616 = vmatpush3.bf16.msra.mxu0 %v7194_v28  ;;  %6611 = vmatprep.mubr.bf16.mxu0 %v5780_v51  ;;  %v6276_v28 = vpack.c.bf16 %v1006_v25, %v1006_v25  ;;  %1103 = vst [vmem:[#allocation2 + $0x9c] sm:$0x1] %v1102_v41  ;;  %v1012_v51 = vsel %vm7784_vm1, %v994_v55, 0.0  ;;  %v1105_v52 = vld [vmem:[#allocation2 + $0xa4] sm:$0x1]  ;;  %v408_v16 = vsel %vm7453_vm2, 0, %v407_v15  ;;  %v964_v17 = vmul.f32 %v7912_v53, %v5663_v54 }
  0x9c   : > { %6617 = vmatprep.subr.bf16.mxu0 %v7195_v48  ;;  %v1010_v47 = vsel %vm7784_vm1, %v992_v43, 0.0  ;;  %401 = vst [vmem:[#allocation2 + $0xb4] sm:$0x1] %v400_v63  ;;  %v980_v9 = vadd.f32 %v7926_v20, %v962_v7  ;;  %v996_v14 = vmax.f32 %v978_v8, 0.0  ;;  %409 = vst [vmem:[#allocation2 + $0xc4] sm:$0x1] %v408_v16 }
  0x9d   : > { %v1098_v37 = vsel %vm7564_vm5, %v6276_v28, %v1097_v26  ;;  %v6280_v56 = vpack.c.bf16 %v1010_v47, %v1010_v47  ;;  %v1109_v60 = vld [vmem:[#allocation2 + $0xac] sm:$0x1]  ;;  %v7204_v13 = vld [vmem:[#allocation2 + $0xa0] ss:$8 sps:$4 sm:$0xff]   ;;  %v7210_v25 = vld [vmem:[#allocation2 + $0xb0] ss:$8 sps:$4 sm:$0xff]   ;;  %v982_v30 = vadd.f32 %v7926_v20, %v964_v17 }
  0x9e   : > { %1099 = vst [vmem:[#allocation2 + $0x94] sm:$0x1] %v1098_v37  ;;  %v998_v21 = vmax.f32 %v980_v9, 0.0  ;;  %v7205_v29 = vld [vmem:[%s9007_s1 + $0x108] sm:$0xff]   ;;  %v7206_v37 = vld [vmem:[%s9007_s1 + $0x110] sm:$0xff]   ;;  %v7207_v42 = vld [vmem:[%s9007_s1 + $0x118] sm:$0xff]  }
  0x9f   : > { %6618 = vmatpush3.bf16.msra.mxu0 %v7195_v48  ;;  %v6282_v48 = vpack.c.bf16 %v1012_v51, %v1012_v51  ;;  %v1106_v58 = vsel %vm7564_vm5, %v6280_v56, %v1105_v52  ;;  %v1000_v36 = vmax.f32 %v982_v30, 0.0  ;;  %v7212_v43 = vld [vmem:[#allocation2 + $0xc0] ss:$8 sps:$4 sm:$0xff]   ;;  %v2282_v56 = vld [vmem:[#allocation2 + $0x90] sm:$0xf]  ;;  %v7213_v16 = vld [vmem:[%s9007_s1 + $0x138] sm:$0xff]  }
  0xa0   : > { %6619 = vmatprep.subr.bf16.mxu0 %v7196_v11  ;;  %1107 = vst [vmem:[#allocation2 + $0xa4] sm:$0x1] %v1106_v58  ;;  %v1016_v23 = vsel %vm7784_vm1, %v998_v21, 0.0  ;;  %v1117_v28 = vld [vmem:[#allocation2 + $0xbc] sm:$0x1]  ;;  %v7208_v52 = vld [vmem:[%s9007_s1 + $0x120] sm:$0xff]  }
  0xa1   : > { %v1110_v61 = vsel %vm7564_vm5, %v6282_v48, %v1109_v60  ;;  %v6286_v50 = vpack.c.bf16 %v1016_v23, %v1016_v23  ;;  %v1018_v39 = vsel %vm7784_vm1, %v1000_v36, 0.0  ;;  %v7214_v55 = vld [vmem:[#allocation2 + $0xd8] ss:$8 sps:$4 sm:$0xff]   ;;  %v2302_v62 = vshll.u32 %v2282_v56, 16  ;;  %v7211_v2 = vld [vmem:[%s9007_s1 + $0x130] sm:$0xff]   ;;  %v7217_v36 = vld [vmem:[%s9007_s1 + $0x148] sm:$0xff]  }
  0xa2   : > { %6612 = vmatmul.mubr.bf16.gmra.mrb[4].mxu0 %v5781_v18  ;;  %1111 = vst [vmem:[#allocation2 + $0xac] sm:$0x1] %v1110_v61  ;;  %v5665_v18 = vld [vmem:[%s7500_s23 + $0x198] sm:$0x1]  ;;  %v6288_v41 = vpack.c.bf16 %v1018_v39, %v1018_v39  ;;  %v492_v48 = vld [vmem:[%s7500_s23 + $0x80] sm:$0xff]  ;;  %v7209_v61 = vld [vmem:[%s9007_s1 + $0x128] sm:$0xff]  }
  0xa3   : > { %6620 = vmatpush3.bf16.msra.mxu0 %v7196_v11  ;;  %6631 = vmatprep.mubr.bf16.mxu0 %v7202_v22  ;;  %v411_v11 = vld [vmem:[#allocation2 + $0xcc] sm:$0x1]  ;;  %v1014_v22 = vsel %vm7784_vm1, %v996_v14, 0.0  ;;  %v1113_v24 = vld [vmem:[#allocation2 + $0xb4] sm:$0x1]  ;;  %v1118_v35 = vsel %vm7564_vm5, %v6286_v50, %v1117_v28  ;;  %v516_v58 = vmul.f32 %v7912_v53, %v492_v48  ;;  %v2304_v6 = vrot.slane %v2302_v62, 5 }
  0xa4   : > { %6621 = vmatprep.subr.bf16.mxu0 %v7197_v1  ;;  %v412_v19 = vsel %vm7453_vm2, 0, %v411_v11  ;;  %v6284_v26 = vpack.c.bf16 %v1014_v22, %v1014_v22  ;;  %1119 = vst [vmem:[#allocation2 + $0xbc] sm:$0x1] %v1118_v35  ;;  %v1121_v38 = vld [vmem:[#allocation2 + $0xc4] sm:$0x1]  ;;  %v5630_v14 = vld [vmem:[%s7500_s23 + $0x110] sm:$0xff] }
  0xa5   : > { %413 = vst [vmem:[#allocation2 + $0xcc] sm:$0x1] %v412_v19  ;;  %v1122_v47 = vsel %vm7564_vm5, %v6288_v41, %v1121_v38  ;;  %v2284_v60 = vld [vmem:[#allocation2 + $0x98] sm:$0xf]  ;;  %v540_v63 = vadd.f32 %v7926_v20, %v516_v58  ;;  %v2283_v11 = vld [vmem:[#allocation2 + $0x94] sm:$0x1]  ;;  %v747_v3 = vmul.f32 %v7912_v53, %v5630_v14 }
  0xa6   : > { %v1114_v33 = vsel %vm7564_vm5, %v6284_v26, %v1113_v24  ;;  %1123 = vst [vmem:[#allocation2 + $0xc4] sm:$0x1] %v1122_v47  ;;  %v2313_v0 = vshrl.u32 %v2284_v60, 16  ;;  %v2316_v59 = vshll.u32 %v2284_v60, 16  ;;  %v2285_v54 = vld [vmem:[#allocation2 + $0x9c] sm:$0x1] }
  0xa7   : > { %6622 = vmatpush3.bf16.msra.mxu0 %v7197_v1  ;;  %v966_v1 = vmul.f32 %v7912_v53, %v5665_v18  ;;  %1115 = vst [vmem:[#allocation2 + $0xb4] sm:$0x1] %v1114_v33  ;;  %v7215_v18 = vld [vmem:[%s9007_s1 + $0x140] sm:$0xff]   ;;  %v2322_v22 = vshll.u32 %v2285_v54, 16  ;;  %v2288_v23 = vld [vmem:[#allocation2 + $0xa8] sm:$0xf]  ;;  %v765_v24 = vadd.f32 %v7926_v20, %v747_v3 }
  0xa8   : > { %6623 = vmatprep.subr.bf16.mxu0 %v7198_v40  ;;  %v2315_v8 = vrot.slane %v2313_v0, 4  ;;  %v2318_v9 = vrot.slane %v2316_v59, 5  ;;  %v7216_v19 = vld [vmem:[#allocation2 + $0xe8] ss:$8 sps:$4 sm:$0xff]   ;;  %v2341_v33 = vshrl.u32 %v2288_v23, 16  ;;  %v2344_v35 = vshll.u32 %v2288_v23, 16 }
  0xa9   : > { %v984_v32 = vadd.f32 %v7926_v20, %v966_v1  ;;  %v7222_v1 = vld [vmem:[#allocation2 + $0xf8] ss:$8 sps:$4 sm:$0xff]   ;;  %v783_v30 = vmax.f32 %v765_v24, 0.0  ;;  %v2289_v48 = vld [vmem:[#allocation2 + $0xac] sm:$0x1]  ;;  %vm5522_vm11 = vcmask 64512  }
  0xaa   : > { %v2319_v17 = vor.u32 %v2318_v9, %v2315_v8  ;;  %v7224_v58 = vld [vmem:[#allocation2 + $0x108] ss:$8 sps:$4 sm:$0xff]   ;;  %v343_v62 = vld [vmem:[#allocation2 + $0x44] sm:$0x1] }
  0xab   : > { %6624 = vmatpush3.bf16.msra.mxu0 %v7198_v40  ;;  %v1002_v31 = vmax.f32 %v984_v32, 0.0  ;;  %v821_v38 = vsel %vm7584_vm10, %v783_v30, 0.0 }
  0xac   : > { %6625 = vmatprep.subr.bf16.mxu0 %v7199_v46  ;;  %v2320_v50 = vrot.slane %v2319_v17, 4  ;;  %v6273_v41 = vpack.c.bf16 %v821_v38, %v821_v38 }
  0xad   : > { %v1020_v40 = vsel %vm7784_vm1, %v1002_v31, 0.0  ;;  %v2324_v31 = vrot.slane %v2322_v22, 5 }
  0xae   : > { %v6290_v27 = vpack.c.bf16 %v1020_v40, %v1020_v40  ;;  %928 = vst.msk [vmem:[#allocation2 + $0x88] sm:$0xf] %vm673_vm3, %v6273_v41  ;;  %v2291_v3 = vld [vmem:[#allocation2 + $0xb4] sm:$0x1] }
  0xaf   : > { %6626 = vmatpush3.bf16.msra.mxu0 %v7199_v46  ;;  %v1125_v46 = vld [vmem:[#allocation2 + $0xcc] sm:$0x1]  ;;  %v2325_v47 = vsel %vm7881_vm7, %v2320_v50, %v2324_v31  ;;  %v2364_v30 = vshll.u32 %v2291_v3, 16  ;;  %v7240_v3 = vld [vmem:[%s9007_s1 + $0x1e0] sm:$0xff]  }
  0xb0   : > { %6627 = vmatprep.subr.bf16.mxu0 %v7200_v57  ;;  %v1126_v51 = vsel %vm7564_vm5, %v6290_v27, %v1125_v46  ;;  %v7218_v46 = vld [vmem:[%s9007_s1 + $0x150] sm:$0xff]  }
  0xb1   : > { %1127 = vst [vmem:[#allocation2 + $0xcc] sm:$0x1] %v1126_v51 }
  0xb3   : > { %6628 = vmatpush3.bf16.msra.mxu0 %v7200_v57  ;;  %v2299_v57 = vshrl.u32 %v2282_v56, 16  ;;  %v2287_v56 = vld [vmem:[#allocation2 + $0xa4] sm:$0x1] }
  0xb4   : > { %6629 = vmatprep.subr.bf16.mxu0 %v7201_v44 }
  0xb5   : > { %v2301_v4 = vrot.slane %v2299_v57, 4 }
  0xb7   : > { %6630 = vmatpush3.bf16.msra.mxu0 %v7201_v44  ;;  %v558_v44 = vmax.f32 %v540_v63, 0.0  ;;  %v2305_v21 = vor.u32 %v2304_v6, %v2301_v4  ;;  %v493_v4 = vld [vmem:[%s7500_s23 + $0x88] sm:$0x1]  ;;  %v2336_v6 = vshll.u32 %v2287_v56, 16 }
  0xb8   : > { %6639 = vmatprep.subr.bf16.mxu0 %v7203_v10 }
  0xb9   : > { %v599_v7 = vsel %vm7712_vm14, %v558_v44, 0.0  ;;  %v2306_v26 = vrot.slane %v2305_v21, 4  ;;  %v7219_v44 = vld [vmem:[%s9007_s1 + $0x158] sm:$0xff]   ;;  %v2338_v22 = vrot.slane %v2336_v6, 5  ;;  %v7230_v6 = vld [vmem:[%s9007_s1 + $0x1a0] sm:$0xff]  }
  0xba   : > { %6632 = vmatmul.mubr.bf16.vlgmr.msra.gmra.mrb[0].mxu0 %v7204_v13  ;;  %v6257_v15 = vpack.c.bf16 %v599_v7, %v599_v7  ;;  %v2308_v13 = vshll.u32 %v2283_v11, 16  ;;  %v2350_v7 = vshll.u32 %v2289_v48, 16  ;;  %v344_v11 = vsel %vm7453_vm2, 0, %v343_v62 }
  0xbb   : > { %6640 = vmatpush3.bf16.msra.mxu0 %v7203_v10  ;;  %6635 = vmatprep.mubr.bf16.mxu0 %v7210_v25  ;;  %v2286_v10 = vld [vmem:[#allocation2 + $0xa0] sm:$0xf]  ;;  %v2290_v25 = vld [vmem:[#allocation2 + $0xb0] sm:$0xf]  ;;  %345 = vst [vmem:[#allocation2 + $0x44] sm:$0x1] %v344_v11 }
  0xbc   : > { %6641 = vmatprep.subr.bf16.mxu0 %v7205_v29  ;;  %708 = vst.msk [vmem:[#allocation2 + $0x40] sm:$0xf] %vm673_vm3, %v6257_v15  ;;  %v2327_v28 = vshrl.u32 %v2286_v10, 16  ;;  %v2310_v53 = vrot.slane %v2308_v13, 5  ;;  %v2330_v32 = vshll.u32 %v2286_v10, 16  ;;  %v2355_v20 = vshrl.u32 %v2290_v25, 16 }
  0xbd   : > { %v7356_v10 = vld [vmem:[%s9008_s2] ss:$0 sm:$0xff]  ;;  %v2293_v13 = vld [vmem:[#allocation2 + $0xbc] sm:$0x1]  ;;  %v2352_v23 = vrot.slane %v2350_v7, 5  ;;  %v7231_v7 = vld [vmem:[%s9007_s1 + $0x1a8] sm:$0xff]  }
  0xbe   : > { %v2329_v27 = vrot.slane %v2327_v28, 4  ;;  %v2311_v45 = vsel %vm7881_vm7, %v2306_v26, %v2310_v53  ;;  %v2357_v51 = vrot.slane %v2355_v20, 4  ;;  %v517_v14 = vmul.f32 %v7356_v10, %v493_v4  ;;  %v7229_v4 = vld [vmem:[%s9007_s1 + $0x198] sm:$0xff]   ;;  %v7242_v11 = vld [vmem:[#allocation2 + $0x28] ss:$8 sps:$4 sm:$0xff]  }
  0xbf   : > { %6642 = vmatpush3.bf16.msra.mxu0 %v7205_v29  ;;  %v2292_v29 = vld [vmem:[#allocation2 + $0xb8] sm:$0xf]  ;;  %v5862_v63 = vcombine.low %v2311_v45, %v2325_v47  ;;  %v2378_v53 = vshll.u32 %v2293_v13, 16  ;;  %v7226_v45 = vld [vmem:[%s9007_s1 + $0x180] sm:$0xff]   ;;  %v7238_v10 = vld [vmem:[%s9007_s1 + $0x1d0] sm:$0xff]   ;;  %vm3337_vm3 = vcmask 1043456  }
  0xc0   : > { %6643 = vmatprep.subr.bf16.mxu0 %v7206_v37  ;;  %v2369_v39 = vshrl.u32 %v2292_v29, 16  ;;  %v2372_v40 = vshll.u32 %v2292_v29, 16  ;;  %v7221_v29 = vld [vmem:[%s9007_s1 + $0x168] sm:$0xff]  }
  0xc1   : > { %v2380_v41 = vrot.slane %v2378_v53, 5  ;;  %v7241_v13 = vld [vmem:[%s9007_s1 + $0x1e8] sm:$0xff]  }
  0xc2   : > { %6636 = vmatmul.mubr.bf16.gmra.mrb[4].mxu0 %v7212_v43  ;;  %v2343_v43 = vrot.slane %v2341_v33, 4  ;;  %v2371_v60 = vrot.slane %v2369_v39, 4  ;;  %v2374_v57 = vrot.slane %v2372_v40, 5  ;;  %v709_v38 = vld [vmem:[#allocation2 + $0x44] sm:$0x1]  ;;  %v7223_v39 = vld [vmem:[%s9007_s1 + $0x170] sm:$0xff]  }
  0xc3   : > { %6644 = vmatpush3.bf16.msra.mxu0 %v7206_v37  ;;  %6655 = vmatprep.mubr.bf16.mxu0 %v7214_v55  ;;  %v2358_v37 = vshll.u32 %v2290_v25, 16  ;;  %v2346_v55 = vrot.slane %v2344_v35, 5  ;;  %v2295_v35 = vld [vmem:[#allocation2 + $0xc4] sm:$0x1]  ;;  %v2366_v40 = vrot.slane %v2364_v30, 5 }
  0xc4   : > { %6645 = vmatprep.subr.bf16.mxu0 %v7207_v42  ;;  %v2375_v9 = vor.u32 %v2374_v57, %v2371_v60  ;;  %v7227_v57 = vld [vmem:[%s9007_s1 + $0x188] sm:$0xff]  }
  0xc5   : > { %v2347_v59 = vor.u32 %v2346_v55, %v2343_v43  ;;  %v2907_v53 = vld [vmem:[#allocation2 + $0xc] sm:$0x1] }
  0xc6   : > { %v2376_v26 = vrot.slane %v2375_v9, 4  ;;  %v7233_v9 = vld [vmem:[%s9007_s1 + $0x1b8] sm:$0xff]  }
  0xc7   : > { %6646 = vmatpush3.bf16.msra.mxu0 %v7207_v42  ;;  %v2332_v42 = vrot.slane %v2330_v32, 5  ;;  %v2348_v17 = vrot.slane %v2347_v59, 4 }
  0xc8   : > { %6647 = vmatprep.subr.bf16.mxu0 %v7208_v52 }
  0xc9   : > { %v2333_v0 = vor.u32 %v2332_v42, %v2329_v27  ;;  %v2392_v42 = vshll.u32 %v2295_v35, 16  ;;  %v2353_v47 = vsel %vm7881_vm7, %v2348_v17, %v2352_v23  ;;  %v7239_v17 = vld [vmem:[%s9007_s1 + $0x1d8] sm:$0xff]   ;;  %v7243_v23 = vld [vmem:[%s9007_s1 + $0x1f0] sm:$0xff]  }
  0xcb   : > { %6648 = vmatpush3.bf16.msra.mxu0 %v7208_v52  ;;  %v2360_v52 = vrot.slane %v2358_v37, 5  ;;  %v2334_v21 = vrot.slane %v2333_v0, 4 }
  0xcc   : > { %6649 = vmatprep.subr.bf16.mxu0 %v7209_v61 }
  0xcd   : > { %v2361_v8 = vor.u32 %v2360_v52, %v2357_v51  ;;  %v2339_v34 = vsel %vm7881_vm7, %v2334_v21, %v2338_v22  ;;  %v2381_v52 = vsel %vm7881_vm7, %v2376_v26, %v2380_v41  ;;  %v7246_v21 = vld [vmem:[#allocation2 + $0x50] ss:$8 sps:$4 sm:$0xff]  }
  0xce   : > { %v5863_v60 = vcombine.low %v2339_v34, %v2353_v47  ;;  %v2908_v22 = vld [vmem:[#allocation2 + $0x10] sm:$0xf]  ;;  %v7245_v26 = vld [vmem:[%s9007_s1 + $0x1f8] sm:$0xff]   ;;  %v2912_v47 = vld [vmem:[#allocation2 + $0x20] sm:$0xf] }
  0xcf   : > { %6650 = vmatpush3.bf16.msra.mxu0 %v7209_v61  ;;  %v2294_v61 = vld [vmem:[#allocation2 + $0xc0] sm:$0xf]  ;;  %v2362_v25 = vrot.slane %v2361_v8, 4  ;;  %v7232_v8 = vld [vmem:[%s9007_s1 + $0x1b0] sm:$0xff]   ;;  %v2910_v34 = vld [vmem:[#allocation2 + $0x18] sm:$0xf] }
  0xd0   : > { %6651 = vmatprep.subr.bf16.mxu0 %v7211_v2  ;;  %v2383_v15 = vshrl.u32 %v2294_v61, 16 }
  0xd1   : > { %v2367_v51 = vsel %vm7881_vm7, %v2362_v25, %v2366_v40  ;;  %v2940_v25 = vshll.u32 %v2908_v22, 16 }
  0xd2   : > { %v2385_v50 = vrot.slane %v2383_v15, 4  ;;  %v5864_v62 = vcombine.low %v2367_v51, %v2381_v52  ;;  %v7235_v15 = vld [vmem:[%s9007_s1 + $0x1c0] sm:$0xff]   ;;  %v7251_v51 = vld [vmem:[%s9007_s1 + $0x218] sm:$0xff]   ;;  %v2914_v52 = vld [vmem:[#allocation2 + $0x28] sm:$0xf] }
  0xd3   : > { %6652 = vmatpush3.bf16.msra.mxu0 %v7211_v2  ;;  %v2296_v2 = vld [vmem:[#allocation2 + $0xc8] sm:$0xf]  ;;  %v2942_v30 = vrot.slane %v2940_v25, 5  ;;  %v7256_v25 = vld [vmem:[%s9007_s1 + $0x230] sm:$0xff]  }
  0xd4   : > { %6653 = vmatprep.subr.bf16.mxu0 %v7213_v16  ;;  %v2397_v54 = vshrl.u32 %v2296_v2, 16  ;;  %v2400_v24 = vshll.u32 %v2296_v2, 16  ;;  %v7234_v2 = vld [vmem:[#allocation2 + $0x8] ss:$8 sps:$4 sm:$0xff]  }
  0xd6   : > { %v2399_v32 = vrot.slane %v2397_v54, 4  ;;  %v2402_v31 = vrot.slane %v2400_v24, 5  ;;  %v7237_v54 = vld [vmem:[%s9007_s1 + $0x1c8] sm:$0xff]  }
  0xd7   : > { %6654 = vmatpush3.bf16.msra.mxu0 %v7213_v16  ;;  %v2386_v16 = vshll.u32 %v2294_v61, 16 }
  0xd8   : > { %6663 = vmatprep.subr.bf16.mxu0 %v7215_v18 }
  0xd9   : > { %v2388_v28 = vrot.slane %v2386_v16, 5  ;;  %v7236_v16 = vld [vmem:[#allocation2 + $0x18] ss:$8 sps:$4 sm:$0xff]  }
  0xda   : > { %6656 = vmatmul.mubr.bf16.vlgmr.msra.gmra.mrb[0].mxu0 %v7216_v19  ;;  %v7357_v19 = vld [vmem:[%s9009_s3] ss:$0 sm:$0xff] }
  0xdb   : > { %6664 = vmatpush3.bf16.msra.mxu0 %v7215_v18  ;;  %6659 = vmatprep.mubr.bf16.mxu0 %v7222_v1  ;;  %v7220_v18 = vld [vmem:[%s9007_s1 + $0x160] sm:$0xff]   ;;  %v541_v1 = vadd.f32 %v7357_v19, %v517_v14  ;;  %v2389_v55 = vor.u32 %v2388_v28, %v2385_v50 }
  0xdc   : > { %6665 = vmatprep.subr.bf16.mxu0 %v7217_v36  ;;  %v7244_v14 = vld [vmem:[#allocation2 + $0x38] ss:$8 sps:$4 sm:$0xff]  }
  0xdd   : > { %v559_v33 = vmax.f32 %v541_v1, 0.0  ;;  %v2390_v56 = vrot.slane %v2389_v55, 4  ;;  %v2937_v1 = vshrl.u32 %v2908_v22, 16 }
  0xdf   : > { %6666 = vmatpush3.bf16.msra.mxu0 %v7217_v36  ;;  %v2297_v36 = vld [vmem:[#allocation2 + $0xcc] sm:$0x1]  ;;  %v600_v20 = vsel %vm7784_vm1, %v559_v33, 0.0  ;;  %v7247_v33 = vld [vmem:[%s9007_s1 + $0x200] sm:$0xff]  }
  0xe0   : > { %6667 = vmatprep.subr.bf16.mxu0 %v7218_v46  ;;  %v6258_v37 = vpack.c.bf16 %v600_v20, %v600_v20  ;;  %v2406_v43 = vshll.u32 %v2297_v36, 16  ;;  %v2932_v36 = vshll.u32 %v2907_v53, 16 }
  0xe2   : > { %6660 = vmatmul.mubr.bf16.gmra.mrb[4].mxu0 %v7224_v58  ;;  %v710_v27 = vsel %vm7564_vm5, %v6258_v37, %v709_v38  ;;  %v2394_v58 = vrot.slane %v2392_v42, 5  ;;  %v2408_v61 = vrot.slane %v2406_v43, 5  ;;  %v7248_v37 = vld [vmem:[#allocation2 + $0x60] ss:$8 sps:$4 sm:$0xff]   ;;  %v7254_v38 = vld [vmem:[#allocation2 + $0x70] ss:$8 sps:$4 sm:$0xff]  }
  0xe3   : > { %6668 = vmatpush3.bf16.msra.mxu0 %v7218_v46  ;;  %6679 = vmatprep.mubr.bf16.mxu0 %v5862_v63  ;;  %711 = vst [vmem:[#allocation2 + $0x44] sm:$0x1] %v710_v27  ;;  %v2403_v46 = vor.u32 %v2402_v31, %v2399_v32  ;;  %v7228_v63 = vld [vmem:[%s9007_s1 + $0x190] sm:$0xff]   ;;  %v2934_v41 = vrot.slane %v2932_v36, 5  ;;  %v2919_v36 = vld [vmem:[#allocation2 + $0x3c] sm:$0x1] }
  0xe4   : > { %6669 = vmatprep.subr.bf16.mxu0 %v7219_v44  ;;  %v2395_v0 = vsel %vm7881_vm7, %v2390_v56, %v2394_v58  ;;  %v2909_v32 = vld [vmem:[#allocation2 + $0x14] sm:$0x1]  ;;  %v2916_v56 = vld [vmem:[#allocation2 + $0x30] sm:$0xf]  ;;  %v2968_v58 = vshll.u32 %v2912_v47, 16 }
  0xe5   : > { %v2404_v48 = vrot.slane %v2403_v46, 4  ;;  %v2946_v20 = vshll.u32 %v2909_v32, 16  ;;  %v7250_v43 = vld [vmem:[%s9007_s1 + $0x210] sm:$0xff]   ;;  %v7255_v46 = vld [vmem:[#allocation2 + $0x80] ss:$8 sps:$4 sm:$0xff]  }
  0xe6   : > { %vm3338_vm5 = vsmask.f32 7938 }
  0xe7   : > { %6670 = vmatpush3.bf16.msra.mxu0 %v7219_v44  ;;  %v2409_v59 = vsel %vm7881_vm7, %v2404_v48, %v2408_v61  ;;  %v2948_v42 = vrot.slane %v2946_v20, 5  ;;  %v2951_v48 = vshrl.u32 %v2910_v34, 16  ;;  %v7252_v61 = vld [vmem:[%s9007_s1 + $0x220] sm:$0xff]   ;;  %vm8427_vm8 = vmand %vm3337_vm3, %vm3338_vm5 }
  0xe8   : > { %6671 = vmatprep.subr.bf16.mxu0 %v7220_v18  ;;  %v5865_v44 = vcombine.low %v2395_v0, %v2409_v59  ;;  %v2993_v0 = vshrl.u32 %v2916_v56, 16  ;;  %v2996_v59 = vshll.u32 %v2916_v56, 16 }
  0xeb   : > { %6672 = vmatpush3.bf16.msra.mxu0 %v7220_v18  ;;  %v2906_v18 = vld [vmem:[#allocation2 + $0x8] sm:$0xf] }
  0xec   : > { %6673 = vmatprep.subr.bf16.mxu0 %v7221_v29  ;;  %v2923_v24 = vshrl.u32 %v2906_v18, 16  ;;  %v2926_v19 = vshll.u32 %v2906_v18, 16 }
  0xee   : > { %v2925_v50 = vrot.slane %v2923_v24, 4  ;;  %v2928_v28 = vrot.slane %v2926_v19, 5 }
  0xef   : > { %6674 = vmatpush3.bf16.msra.mxu0 %v7221_v29  ;;  %v2939_v29 = vrot.slane %v2937_v1, 4 }
  0xf0   : > { %6675 = vmatprep.subr.bf16.mxu0 %v7223_v39  ;;  %v2929_v35 = vor.u32 %v2928_v28, %v2925_v50 }
  0xf1   : > { %v2943_v31 = vor.u32 %v2942_v30, %v2939_v29  ;;  %v7257_v30 = vld [vmem:[%s9007_s1 + $0x238] sm:$0xff]  }
  0xf2   : > { %v2930_v40 = vrot.slane %v2929_v35, 4 }
  0xf3   : > { %6676 = vmatpush3.bf16.msra.mxu0 %v7223_v39  ;;  %v7249_v39 = vld [vmem:[%s9007_s1 + $0x208] sm:$0xff]   ;;  %v2944_v27 = vrot.slane %v2943_v31, 4 }
  0xf4   : > { %6677 = vmatprep.subr.bf16.mxu0 %v7225_v5 }
  0xf5   : > { %v2949_v55 = vsel %vm7881_vm7, %v2944_v27, %v2948_v42  ;;  %v2921_v42 = vld [vmem:[#allocation2 + $0x44] sm:$0x1] }
  0xf7   : > { %6678 = vmatpush3.bf16.msra.mxu0 %v7225_v5  ;;  %v2935_v5 = vsel %vm7881_vm7, %v2930_v40, %v2934_v41 }
  0xf8   : > { %6687 = vmatprep.subr.bf16.mxu0 %v7226_v45 }
  0xfa   : > { %6680 = vmatmul.mubr.bf16.vlgmr.msra.gmra.mrb[0].mxu0 %v5863_v60  ;;  %v2954_v60 = vshll.u32 %v2910_v34, 16  ;;  %v3030_v34 = vshll.u32 %v2921_v42, 16  ;;  %v3355_v42 = vld [vmem:[#allocation3 + $0x1c] sm:$0x1] }
  0xfb   : > { %6688 = vmatpush3.bf16.msra.mxu0 %v7226_v45  ;;  %6683 = vmatprep.mubr.bf16.mxu0 %v5864_v62  ;;  %v5946_v45 = vcombine.low %v2935_v5, %v2949_v55  ;;  %v2979_v62 = vshrl.u32 %v2914_v52, 16  ;;  %v3016_v5 = vshll.u32 %v2919_v36, 16 }
  0xfc   : > { %6689 = vmatprep.subr.bf16.mxu0 %v7227_v57 }
  0xfd   : > { %v3018_v56 = vrot.slane %v3016_v5, 5 }
  0xff   : > { %6690 = vmatpush3.bf16.msra.mxu0 %v7227_v57  ;;  %v2965_v57 = vshrl.u32 %v2912_v47, 16 }
 0x100   : > { %6691 = vmatprep.subr.bf16.mxu0 %v7228_v63 }
 0x102   : > { %6684 = vmatmul.mubr.bf16.gmra.mrb[4].mxu0 %v5865_v44  ;;  %v2956_v44 = vrot.slane %v2954_v60, 5 }
 0x103   : > { %6692 = vmatpush3.bf16.msra.mxu0 %v7228_v63  ;;  %6703 = vmatprep.mubr.bf16.mxu0 %v7234_v2  ;;  %v2982_v63 = vshll.u32 %v2914_v52, 16  ;;  %v7253_v2 = vld [vmem:[%s9007_s1 + $0x228] sm:$0xff]  }
 0x104   : > { %6693 = vmatprep.subr.bf16.mxu0 %v7229_v4 }
 0x107   : > { %6694 = vmatpush3.bf16.msra.mxu0 %v7229_v4  ;;  %v2953_v4 = vrot.slane %v2951_v48, 4 }
 0x108   : > { %6695 = vmatprep.subr.bf16.mxu0 %v7230_v6 }
 0x10b   : > { %6696 = vmatpush3.bf16.msra.mxu0 %v7230_v6  ;;  %v2967_v6 = vrot.slane %v2965_v57, 4 }
 0x10c   : > { %6697 = vmatprep.subr.bf16.mxu0 %v7231_v7 }
 0x10f   : > { %6698 = vmatpush3.bf16.msra.mxu0 %v7231_v7  ;;  %v2970_v7 = vrot.slane %v2968_v58, 5  ;;  %v3032_v58 = vrot.slane %v3030_v34, 5 }
 0x110   : > { %6699 = vmatprep.subr.bf16.mxu0 %v7232_v8 }
 0x111   : > { %v2971_v18 = vor.u32 %v2970_v7, %v2967_v6  ;;  %v7263_v6 = vld [vmem:[%s9012_s6 + $0x68] sm:$0xff]   ;;  %v7264_v7 = vld [vmem:[%s9012_s6 + $0x70] sm:$0xff]  }
 0x113   : > { %6700 = vmatpush3.bf16.msra.mxu0 %v7232_v8  ;;  %v2911_v8 = vld [vmem:[#allocation2 + $0x1c] sm:$0x1] }
 0x114   : > { %6701 = vmatprep.subr.bf16.mxu0 %v7233_v9 }
 0x117   : > { %6702 = vmatpush3.bf16.msra.mxu0 %v7233_v9  ;;  %v2913_v9 = vld [vmem:[#allocation2 + $0x24] sm:$0x1] }
 0x118   : > { %6711 = vmatprep.subr.bf16.mxu0 %v7235_v15  ;;  %v2974_v22 = vshll.u32 %v2913_v9, 16  ;;  %v8388_v9 = vld [vmem:[%s9012_s6] sm:$0xff]  }
 0x11a   : > { %6704 = vmatmul.mubr.bf16.vlgmr.msra.gmra.mrb[0].mxu0 %v7236_v16  ;;  %v2981_v16 = vrot.slane %v2979_v62, 4  ;;  %v2976_v35 = vrot.slane %v2974_v22, 5 }
 0x11b   : > { %6712 = vmatpush3.bf16.msra.mxu0 %v7235_v15  ;;  %6707 = vmatprep.mubr.bf16.mxu0 %v7242_v11  ;;  %v2918_v15 = vld [vmem:[#allocation2 + $0x38] sm:$0xf]  ;;  %v2984_v11 = vrot.slane %v2982_v63, 5 }
 0x11c   : > { %6713 = vmatprep.subr.bf16.mxu0 %v7237_v54  ;;  %v3010_v24 = vshll.u32 %v2918_v15, 16 }
 0x11e   : > { %v3012_v20 = vrot.slane %v3010_v24, 5 }
 0x11f   : > { %6714 = vmatpush3.bf16.msra.mxu0 %v7237_v54  ;;  %v2995_v54 = vrot.slane %v2993_v0, 4  ;;  %v7258_v0 = vld [vmem:[%s9012_s6 + $0x40] sm:$0xff]  }
 0x120   : > { %6715 = vmatprep.subr.bf16.mxu0 %v7238_v10  ;;  %6759 = vmatprep.subr.bf16.mxu1 %v7258_v0 }
 0x121   : > { %6760 = vmatpush3.bf16.msra.mxu1 %v7258_v0 }
 0x122   : > { %6708 = vmatmul.mubr.bf16.gmra.mrb[4].mxu0 %v7244_v14  ;;  %v2920_v14 = vld [vmem:[#allocation2 + $0x40] sm:$0xf] }
 0x123   : > { %6716 = vmatpush3.bf16.msra.mxu0 %v7238_v10  ;;  %6727 = vmatprep.mubr.bf16.mxu0 %v7246_v21  ;;  %v2998_v10 = vrot.slane %v2996_v59, 5  ;;  %v2915_v21 = vld [vmem:[#allocation2 + $0x2c] sm:$0x1]  ;;  %v3021_v19 = vshrl.u32 %v2920_v14, 16  ;;  %v3024_v1 = vshll.u32 %v2920_v14, 16 }
 0x124   : > { %6717 = vmatprep.subr.bf16.mxu0 %v7239_v17  ;;  %v2988_v50 = vshll.u32 %v2915_v21, 16  ;;  %v7259_v59 = vld [vmem:[%s9012_s6 + $0x48] sm:$0xff]  }
 0x125   : > { %v2999_v28 = vor.u32 %v2998_v10, %v2995_v54  ;;  %6761 = vmatprep.subr.bf16.mxu1 %v7259_v59 }
 0x126   : > { %v2990_v40 = vrot.slane %v2988_v50, 5  ;;  %6762 = vmatpush3.bf16.msra.mxu1 %v7259_v59 }
 0x127   : > { %6718 = vmatpush3.bf16.msra.mxu0 %v7239_v17  ;;  %v2917_v17 = vld [vmem:[#allocation2 + $0x34] sm:$0x1]  ;;  %v3000_v41 = vrot.slane %v2999_v28, 4 }
 0x128   : > { %6719 = vmatprep.subr.bf16.mxu0 %v7240_v3  ;;  %v3002_v29 = vshll.u32 %v2917_v17, 16 }
 0x12a   : > { %v3004_v27 = vrot.slane %v3002_v29, 5 }
 0x12b   : > { %6720 = vmatpush3.bf16.msra.mxu0 %v7240_v3  ;;  %v2957_v3 = vor.u32 %v2956_v44, %v2953_v4  ;;  %v7261_v4 = vld [vmem:[%s9012_s6 + $0x58] sm:$0xff]   ;;  %v7262_v44 = vld [vmem:[%s9012_s6 + $0x60] sm:$0xff]  }
 0x12c   : > { %6721 = vmatprep.subr.bf16.mxu0 %v7241_v13 }
 0x12d   : > { %v2958_v53 = vrot.slane %v2957_v3, 4 }
 0x12f   : > { %6722 = vmatpush3.bf16.msra.mxu0 %v7241_v13  ;;  %v2960_v13 = vshll.u32 %v2911_v8, 16  ;;  %v7265_v8 = vld [vmem:[%s9012_s6 + $0x78] sm:$0xff]  }
 0x130   : > { %6723 = vmatprep.subr.bf16.mxu0 %v7243_v23 }
 0x131   : > { %v2962_v32 = vrot.slane %v2960_v13, 5 }
 0x133   : > { %6724 = vmatpush3.bf16.msra.mxu0 %v7243_v23  ;;  %v3007_v23 = vshrl.u32 %v2918_v15, 16  ;;  %v8391_v15 = vld [vmem:[#allocation3] sm:$0xf] }
 0x134   : > { %6725 = vmatprep.subr.bf16.mxu0 %v7245_v26  ;;  %v3421_v10 = vshrl.u32 %v8391_v15, 16  ;;  %v3424_v14 = vshll.u32 %v8391_v15, 16 }
 0x135   : > { %v3009_v31 = vrot.slane %v3007_v23, 4 }
 0x137   : > { %6726 = vmatpush3.bf16.msra.mxu0 %v7245_v26  ;;  %v2985_v26 = vor.u32 %v2984_v11, %v2981_v16  ;;  %v8396_v16 = vld [vmem:[%s9010_s4] ss:$0 sm:$0xff] }
 0x138   : > { %6735 = vmatprep.subr.bf16.mxu0 %v7247_v33  ;;  %v8401_v11 = vld [vmem:[%s9011_s5] ss:$0 sm:$0xff] }
 0x13a   : > { %6728 = vmatmul.mubr.bf16.vlgmr.msra.gmra.mrb[0].mxu0 %v7248_v37  ;;  %v3023_v37 = vrot.slane %v3021_v19, 4 }
 0x13b   : > { %6736 = vmatpush3.bf16.msra.mxu0 %v7247_v33  ;;  %6731 = vmatprep.mubr.bf16.mxu0 %v7254_v38  ;;  %v2972_v33 = vrot.slane %v2971_v18, 4  ;;  %v3026_v38 = vrot.slane %v3024_v1, 5  ;;  %v8411_v1 = vrot.slane %v3421_v10, 4 }
 0x13c   : > { %6737 = vmatprep.subr.bf16.mxu0 %v7249_v39 }
 0x13d   : > { %v2977_v55 = vsel %vm7881_vm7, %v2972_v33, %v2976_v35 }
 0x13f   : > { %6738 = vmatpush3.bf16.msra.mxu0 %v7249_v39  ;;  %v2986_v39 = vrot.slane %v2985_v26, 4 }
 0x140   : > { %6739 = vmatprep.subr.bf16.mxu0 %v7250_v43 }
 0x141   : > { %v2991_v47 = vsel %vm7881_vm7, %v2986_v39, %v2990_v40 }
 0x142   : > { %6732 = vmatmul.mubr.bf16.gmra.mrb[4].mxu0 %v7255_v46  ;;  %v3013_v46 = vor.u32 %v3012_v20, %v3009_v31 }
 0x143   : > { %6740 = vmatpush3.bf16.msra.mxu0 %v7250_v43  ;;  %6751 = vmatprep.mubr.bf16.mxu0 %v5946_v45  ;;  %v2963_v43 = vsel %vm7881_vm7, %v2958_v53, %v2962_v32  ;;  %v3027_v45 = vor.u32 %v3026_v38, %v3023_v37  ;;  %v8417_v32 = vld [vmem:[#allocation3 + $0x4] sm:$0x1] }
 0x144   : > { %6741 = vmatprep.subr.bf16.mxu0 %v7251_v51  ;;  %v5947_v52 = vcombine.low %v2963_v43, %v2977_v55  ;;  %v3014_v60 = vrot.slane %v3013_v46, 4  ;;  %v3430_v20 = vshll.u32 %v8417_v32, 16 }
 0x145   : > { %v3028_v57 = vrot.slane %v3027_v45, 4 }
 0x147   : > { %6742 = vmatpush3.bf16.msra.mxu0 %v7251_v51  ;;  %v3005_v51 = vsel %vm7881_vm7, %v3000_v41, %v3004_v27  ;;  %v3033_v62 = vsel %vm7881_vm7, %v3028_v57, %v3032_v58  ;;  %v3352_v27 = vld [vmem:[#allocation3 + $0x18] sm:$0xf]  ;;  %v3343_v58 = vld [vmem:[#allocation3 + $0xc] sm:$0x1] }
 0x148   : > { %6743 = vmatprep.subr.bf16.mxu0 %v7252_v61  ;;  %v5948_v48 = vcombine.low %v2991_v47, %v3005_v51  ;;  %v3340_v47 = vld [vmem:[#allocation3 + $0x8] sm:$0xf] }
 0x14b   : > { %6744 = vmatpush3.bf16.msra.mxu0 %v7252_v61  ;;  %v3019_v61 = vsel %vm7881_vm7, %v3014_v60, %v3018_v56 }
 0x14c   : > { %6745 = vmatprep.subr.bf16.mxu0 %v7253_v2  ;;  %v5949_v63 = vcombine.low %v3019_v61, %v3033_v62 }
 0x14f   : > { %6746 = vmatpush3.bf16.msra.mxu0 %v7253_v2  ;;  %v7260_v2 = vld [vmem:[%s9012_s6 + $0x50] sm:$0xff]  }
 0x150   : > { %6747 = vmatprep.subr.bf16.mxu0 %v7256_v25  ;;  %6763 = vmatprep.subr.bf16.mxu1 %v7260_v2 }
 0x151   : > { %6764 = vmatpush3.bf16.msra.mxu1 %v7260_v2 }
 0x152   : > { %6765 = vmatprep.subr.bf16.mxu1 %v7261_v4 }
 0x153   : > { %6748 = vmatpush3.bf16.msra.mxu0 %v7256_v25  ;;  %v8413_v25 = vrot.slane %v3424_v14, 5 }
 0x154   : > { %6749 = vmatprep.subr.bf16.mxu0 %v7257_v30 }
 0x155   : > { %6766 = vmatpush3.bf16.msra.mxu1 %v7261_v4  ;;  %v3427_v31 = vor.u32 %v8413_v25, %v8411_v1  ;;  %v3358_v4 = vld [vmem:[#allocation3 + $0x20] sm:$0xf] }
 0x156   : > { %6767 = vmatprep.subr.bf16.mxu1 %v7262_v44 }
 0x157   : > { %6750 = vmatpush3.bf16.msra.mxu0 %v7257_v30 }
 0x159   : > { %6768 = vmatpush3.bf16.msra.mxu1 %v7262_v44 }
 0x15a   : > { %6752 = vmatmul.mubr.bf16.vlgmr.msra.gmra.mrb[0].mxu0 %v5947_v52  ;;  %6769 = vmatprep.subr.bf16.mxu1 %v7263_v6 }
 0x15b   : > { %6755 = vmatprep.mubr.bf16.mxu0 %v5948_v48 }
 0x15d   : > { %6770 = vmatpush3.bf16.msra.mxu1 %v7263_v6 }
 0x15e   : > { %6771 = vmatprep.subr.bf16.mxu1 %v7264_v7 }
 0x161   : > { %6772 = vmatpush3.bf16.msra.mxu1 %v7264_v7 }
 0x162   : > { %6756 = vmatmul.mubr.bf16.gmra.mrb[4].mxu0 %v5949_v63  ;;  %6773 = vmatprep.subr.bf16.mxu1 %v7265_v8 }
 0x165   : > { %6774 = vmatpush3.bf16.msra.mxu1 %v7265_v8  ;;  %v3361_v8 = vld [vmem:[#allocation3 + $0x24] sm:$0x1] }
 0x166   : > { %6783 = vmatprep.subr.bf16.mxu1 %v8388_v9 }
 0x22d   : > { %v6753_v54 = vpop.f32.mrb[0].mxu0 }
 0x22e   : > { %v3196_v21 = vmul.f32 %v6753_v54, %v8396_v16  ;;  %v3149_v17 = vpop.f32.mrb[1].mxu0 }
 0x22f   : > { %v3194_v3 = vmul.f32 %v8396_v16, %v3149_v17  ;;  %v6754_v13 = vpop.f32.mrb[2].mxu0 }
 0x230   : > { %v3210_v18 = vadd.f32 %v8401_v11, %v3196_v21  ;;  %v3197_v22 = vmul.f32 %v6754_v13, %v8396_v16  ;;  %v3152_v23 = vpop.f32.mrb[3].mxu0  ;;  %v3346_v13 = vld [vmem:[#allocation3 + $0x10] sm:$0xf] }
 0x231   : > { %v3208_v24 = vadd.f32 %v8401_v11, %v3194_v3  ;;  %v3195_v19 = vmul.f32 %v8396_v16, %v3152_v23 }
 0x232   : > { %v3218_v26 = vmax.f32 %v3210_v18, 0.0  ;;  %v3211_v50 = vadd.f32 %v8401_v11, %v3197_v22  ;;  %v3349_v18 = vld [vmem:[#allocation3 + $0x14] sm:$0x1] }
 0x233   : > { %v3216_v28 = vmax.f32 %v3208_v24, 0.0  ;;  %v3209_v29 = vadd.f32 %v8401_v11, %v3195_v19 }
 0x234   : > { %v6309_v30 = vpack.c.bf16 %v3218_v26, %v3218_v26  ;;  %v3219_v53 = vmax.f32 %v3211_v50, 0.0 }
 0x235   : > { %v6307_v33 = vpack.c.bf16 %v3216_v28, %v3216_v28  ;;  %v3217_v35 = vmax.f32 %v3209_v29, 0.0  ;;  %v6757_v36 = vpop.f32.mrb[4].mxu0 }
 0x236   : > { %v3273_v37 = vshrl.u32 %v6309_v30, 16  ;;  %v3276_v38 = vshll.u32 %v6309_v30, 16  ;;  %v6310_v39 = vpack.c.bf16 %v3219_v53, %v3219_v53  ;;  %v3200_v40 = vmul.f32 %v6757_v36, %v8396_v16  ;;  %v3165_v41 = vpop.f32.mrb[5].mxu0 }
 0x237   : > { %v3257_v43 = vshrl.u32 %v6307_v33, 16  ;;  %v3260_v5 = vshll.u32 %v6307_v33, 16  ;;  %v6308_v55 = vpack.c.bf16 %v3217_v35, %v3217_v35  ;;  %v3198_v46 = vmul.f32 %v8396_v16, %v3165_v41  ;;  %v6758_v45 = vpop.f32.mrb[6].mxu0 }
 0x238   : > { %v3275_v34 = vrot.slane %v3273_v37, 7  ;;  %v3281_v51 = vshrl.u32 %v6310_v39, 16  ;;  %v3284_v52 = vshll.u32 %v6310_v39, 16  ;;  %v3214_v56 = vadd.f32 %v8401_v11, %v3200_v40  ;;  %v3168_v48 = vpop.f32.mrb[7].mxu0 }
 0x239   : > { %v3259_v57 = vrot.slane %v3257_v43, 7  ;;  %v3265_v61 = vshrl.u32 %v6308_v55, 16  ;;  %v3268_v62 = vshll.u32 %v6308_v55, 16  ;;  %v3212_v63 = vadd.f32 %v8401_v11, %v3198_v46  ;;  %v3379_v43 = vld [vmem:[#allocation3 + $0x3c] sm:$0x1] }
 0x23a   : > { %v3278_v0 = vor.u32 %v3276_v38, %v3275_v34  ;;  %v3279_v59 = vrot.slane %v3275_v34, 4  ;;  %v3283_v2 = vrot.slane %v3281_v51, 7  ;;  %v3222_v44 = vmax.f32 %v3214_v56, 0.0  ;;  %v3376_v38 = vld [vmem:[#allocation3 + $0x38] sm:$0xf] }
 0x23b   : > { %v3262_v6 = vor.u32 %v3260_v5, %v3259_v57  ;;  %v3263_v7 = vrot.slane %v3259_v57, 4  ;;  %v3267_v54 = vrot.slane %v3265_v61, 7  ;;  %v3220_v10 = vmax.f32 %v3212_v63, 0.0  ;;  %v3364_v46 = vld [vmem:[#allocation3 + $0x28] sm:$0xf] }
 0x23c   : > { %v3353_v14 = vsel %vm8427_vm8, %v3278_v0, %v3352_v27  ;;  %v3356_v21 = vsel %vm7453_vm2, %v3279_v59, %v3355_v42  ;;  %v3286_v17 = vor.u32 %v3284_v52, %v3283_v2  ;;  %v3287_v3 = vrot.slane %v3283_v2, 4 }
 0x23d   : > { %3354 = vst [vmem:[#allocation3 + $0x18] sm:$0xf] %v3353_v14  ;;  %3357 = vst [vmem:[#allocation3 + $0x1c] sm:$0x1] %v3356_v21  ;;  %v3341_v22 = vsel %vm8427_vm8, %v3262_v6, %v3340_v47  ;;  %v3344_v23 = vsel %vm7453_vm2, %v3263_v7, %v3343_v58  ;;  %v3270_v24 = vor.u32 %v3268_v62, %v3267_v54  ;;  %v3271_v19 = vrot.slane %v3267_v54, 4 }
 0x23e   : > { %3342 = vst [vmem:[#allocation3 + $0x8] sm:$0xf] %v3341_v22  ;;  %3345 = vst [vmem:[#allocation3 + $0xc] sm:$0x1] %v3344_v23  ;;  %v3359_v26 = vsel %vm8427_vm8, %v3286_v17, %v3358_v4  ;;  %v3362_v50 = vsel %vm7453_vm2, %v3287_v3, %v3361_v8  ;;  %v6313_v28 = vpack.c.bf16 %v3222_v44, %v3222_v44  ;;  %v8455_v41 = vrot.slane %v3427_v31, 4 }
 0x23f   : > { %v6311_v29 = vpack.c.bf16 %v3220_v10, %v3220_v10  ;;  %3360 = vst [vmem:[#allocation3 + $0x20] sm:$0xf] %v3359_v26  ;;  %3363 = vst [vmem:[#allocation3 + $0x24] sm:$0x1] %v3362_v50  ;;  %v3347_v30 = vsel %vm8427_vm8, %v3270_v24, %v3346_v13  ;;  %v3350_v53 = vsel %vm7453_vm2, %v3271_v19, %v3349_v18  ;;  %v8459_v27 = vrot.slane %v3430_v20, 5 }
 0x240   : > { %v3201_v33 = vmul.f32 %v6758_v45, %v8396_v16  ;;  %v3199_v35 = vmul.f32 %v8396_v16, %v3168_v48  ;;  %3348 = vst [vmem:[#allocation3 + $0x10] sm:$0xf] %v3347_v30  ;;  %3351 = vst [vmem:[#allocation3 + $0x14] sm:$0x1] %v3350_v53  ;;  %v3305_v36 = vshrl.u32 %v6313_v28, 16  ;;  %v3308_v16 = vshll.u32 %v6313_v28, 16 }
 0x241   : > { %v3289_v37 = vshrl.u32 %v6311_v29, 16  ;;  %v3292_v55 = vshll.u32 %v6311_v29, 16  ;;  %v3367_v45 = vld [vmem:[#allocation3 + $0x2c] sm:$0x1]  ;;  %v3433_v57 = vsel %vm7881_vm7, %v8455_v41, %v8459_v27  ;;  %v3382_v6 = vld [vmem:[#allocation3 + $0x40] sm:$0xf] }
 0x242   : > { %v3215_v39 = vadd.f32 %v8401_v11, %v3201_v33  ;;  %v3213_v40 = vadd.f32 %v8401_v11, %v3199_v35  ;;  %v3307_v42 = vrot.slane %v3305_v36, 7  ;;  %v3385_v7 = vld [vmem:[#allocation3 + $0x44] sm:$0x1]  ;;  %v3370_v54 = vld [vmem:[#allocation3 + $0x30] sm:$0xf] }
 0x243   : > { %v3291_v5 = vrot.slane %v3289_v37, 7  ;;  %v3373_v18 = vld [vmem:[#allocation3 + $0x34] sm:$0x1] }
 0x244   : > { %v3223_v34 = vmax.f32 %v3215_v39, 0.0  ;;  %v3221_v47 = vmax.f32 %v3213_v40, 0.0  ;;  %v3310_v51 = vor.u32 %v3308_v16, %v3307_v42  ;;  %v3311_v11 = vrot.slane %v3307_v42, 4  ;;  %v8461_v1 = vld [vmem:[#allocation3 + $0x18] sm:$0xf] }
 0x245   : > { %v3294_v52 = vor.u32 %v3292_v55, %v3291_v5  ;;  %v3295_v56 = vrot.slane %v3291_v5, 4  ;;  %v8463_v48 = vld [vmem:[#allocation3 + $0x8] sm:$0xf]  ;;  %v8465_v20 = vld [vmem:[#allocation3 + $0xc] sm:$0x1]  ;;  %v3463_v44 = vshrl.u32 %v8461_v1, 16 }
 0x246   : > { %v6314_v25 = vpack.c.bf16 %v3223_v34, %v3223_v34  ;;  %v6312_v31 = vpack.c.bf16 %v3221_v47, %v3221_v47  ;;  %v3377_v58 = vsel %vm8427_vm8, %v3310_v51, %v3376_v38  ;;  %v3380_v61 = vsel %vm7453_vm2, %v3311_v11, %v3379_v43  ;;  %v8489_v26 = vld [vmem:[#allocation3 + $0x1c] sm:$0x1]  ;;  %v8493_v35 = vld [vmem:[#allocation3 + $0x20] sm:$0xf] }
 0x247   : > { %v3365_v62 = vsel %vm8427_vm8, %v3294_v52, %v3364_v46  ;;  %v3368_v63 = vsel %vm7453_vm2, %v3295_v56, %v3367_v45  ;;  %3378 = vst [vmem:[#allocation3 + $0x38] sm:$0xf] %v3377_v58  ;;  %3381 = vst [vmem:[#allocation3 + $0x3c] sm:$0x1] %v3380_v61  ;;  %v8479_v4 = vld [vmem:[#allocation3 + $0x10] sm:$0xf] }
 0x248   : > { %3366 = vst [vmem:[#allocation3 + $0x28] sm:$0xf] %v3365_v62  ;;  %3369 = vst [vmem:[#allocation3 + $0x2c] sm:$0x1] %v3368_v63  ;;  %v3313_v0 = vshrl.u32 %v6314_v25, 16  ;;  %v3316_v59 = vshll.u32 %v6314_v25, 16 }
 0x249   : > { %v3297_v2 = vshrl.u32 %v6312_v31, 16  ;;  %v3300_v8 = vshll.u32 %v6312_v31, 16  ;;  %v3435_v10 = vshrl.u32 %v8463_v48, 16  ;;  %v3438_v14 = vshll.u32 %v8463_v48, 16  ;;  %v8485_v17 = vld [vmem:[#allocation3 + $0x14] sm:$0x1] }
 0x24a   : > { %v3444_v21 = vshll.u32 %v8465_v20, 16  ;;  %v3315_v3 = vrot.slane %v3313_v0, 7  ;;  %v3449_v22 = vshrl.u32 %v8479_v4, 16  ;;  %v3452_v23 = vshll.u32 %v8479_v4, 16  ;;  %v8509_v56 = vld [vmem:[#allocation3 + $0x24] sm:$0x1] }
 0x24b   : > { %v3299_v13 = vrot.slane %v3297_v2, 7  ;;  %v3437_v24 = vrot.slane %v3435_v10, 4  ;;  %v3440_v19 = vrot.slane %v3438_v14, 5  ;;  %v3458_v50 = vshll.u32 %v8485_v17, 16 }
 0x24c   : > { %v3466_v28 = vshll.u32 %v8461_v1, 16  ;;  %v3318_v29 = vor.u32 %v3316_v59, %v3315_v3  ;;  %v3319_v30 = vrot.slane %v3315_v3, 4  ;;  %v3446_v37 = vrot.slane %v3444_v21, 5 }
 0x24d   : > { %v3302_v53 = vor.u32 %v3300_v8, %v3299_v13  ;;  %v3303_v33 = vrot.slane %v3299_v13, 4  ;;  %v3441_v36 = vor.u32 %v3440_v19, %v3437_v24  ;;  %v3451_v38 = vrot.slane %v3449_v22, 4 }
 0x24e   : > { %v3454_v39 = vrot.slane %v3452_v23, 5  ;;  %v3383_v40 = vsel %vm8427_vm8, %v3318_v29, %v3382_v6  ;;  %v3386_v42 = vsel %vm7453_vm2, %v3319_v30, %v3385_v7  ;;  %v3465_v46 = vrot.slane %v3463_v44, 4  ;;  %v8512_v31 = vld [vmem:[#allocation3 + $0x38] sm:$0xf]  ;;  %v7267_v6 = vld [vmem:[%s9012_s6 + $0x8] sm:$0xff]  }
 0x24f   : > { %v3371_v16 = vsel %vm8427_vm8, %v3302_v53, %v3370_v54  ;;  %v3374_v43 = vsel %vm7453_vm2, %v3303_v33, %v3373_v18  ;;  %3384 = vst [vmem:[#allocation3 + $0x40] sm:$0xf] %v3383_v40  ;;  %3387 = vst [vmem:[#allocation3 + $0x44] sm:$0x1] %v3386_v42  ;;  %v3442_v5 = vrot.slane %v3441_v36, 4  ;;  %v3468_v45 = vrot.slane %v3466_v28, 5 }
 0x250   : > { %3372 = vst [vmem:[#allocation3 + $0x30] sm:$0xf] %v3371_v16  ;;  %3375 = vst [vmem:[#allocation3 + $0x34] sm:$0x1] %v3374_v43  ;;  %v3455_v55 = vor.u32 %v3454_v39, %v3451_v38  ;;  %v3460_v34 = vrot.slane %v3458_v50, 5  ;;  %v3472_v47 = vshll.u32 %v8489_v26, 16 }
 0x251   : > { %v8504_v51 = vld [vmem:[#allocation3 + $0x28] sm:$0xf]  ;;  %v3477_v11 = vshrl.u32 %v8493_v35, 16  ;;  %v3447_v12 = vsel %vm7881_vm7, %v3442_v5, %v3446_v37  ;;  %v3469_v52 = vor.u32 %v3468_v45, %v3465_v46  ;;  %v3480_v25 = vshll.u32 %v8493_v35, 16  ;;  %v8521_v59 = vld [vmem:[#allocation3 + $0x2c] sm:$0x1] }
 0x252   : > { %v3456_v60 = vrot.slane %v3455_v55, 4  ;;  %v5984_v58 = vcombine.low %v3433_v57, %v3447_v12  ;;  %v3474_v61 = vrot.slane %v3472_v47, 5  ;;  %vm3840_vm2 = vcmask 1046532   ;;  %v8529_v57 = vld [vmem:[#allocation3 + $0x3c] sm:$0x1]  ;;  %v7268_v43 = vld [vmem:[%s9012_s6 + $0x10] sm:$0xff]  }
 0x253   : > { %v3479_v62 = vrot.slane %v3477_v11, 4  ;;  %v3470_v0 = vrot.slane %v3469_v52, 4  ;;  %v3482_v2 = vrot.slane %v3480_v25, 5  ;;  %v3491_v44 = vshrl.u32 %v8504_v51, 16  ;;  %v3817_v28 = vld [vmem:[#allocation3 + $0x10] sm:$0xe]  ;;  %vm8551_vm10 = vmor %vm3839_vm9, %vm3840_vm2 }
 0x254   : > { %v3461_v63 = vsel %vm7881_vm7, %v3456_v60, %v3460_v34  ;;  %6775 = vmatprep.mubr.bf16.mxu1 %v5984_v58  ;;  %v3486_v41 = vshll.u32 %v8509_v56, 16  ;;  %v3494_v27 = vshll.u32 %v8504_v51, 16  ;;  %v3519_v7 = vshrl.u32 %v8512_v31, 16  ;;  %v3818_v40 = vld [vmem:[#allocation3 + $0x18] sm:$0xe] }
 0x255   : > { %v3475_v8 = vsel %vm7881_vm7, %v3470_v0, %v3474_v61  ;;  %v3483_v54 = vor.u32 %v3482_v2, %v3479_v62  ;;  %v3493_v10 = vrot.slane %v3491_v44, 4  ;;  %v3522_v14 = vshll.u32 %v8512_v31, 16  ;;  %v7270_v58 = vld [vmem:[%s9012_s6 + $0x18] sm:$0xff]   ;;  %v7353_v46 = vld [vmem:[#allocation2 + $0x108] ss:$8 sps:$4 sm:$0xff]  }
 0x256   : > { %v5985_v21 = vcombine.low %v3461_v63, %v3475_v8  ;;  %v3496_v3 = vrot.slane %v3494_v27, 5  ;;  %v3500_v13 = vshll.u32 %v8521_v59, 16  ;;  %v3852_v23 = vrot.slane %v8485_v17, 5  ;;  %v3822_v63 = vld [vmem:[#allocation3 + $0x38] sm:$0xe] }
 0x257   : > { %v8536_v18 = vld [vmem:[#allocation3 + $0x30] sm:$0xf]  ;;  %v3418_v22 = vld [vmem:[#allocation3 + $0x34] sm:$0x1]  ;;  %v3484_v24 = vrot.slane %v3483_v54, 4  ;;  %v3488_v29 = vrot.slane %v3486_v41, 5 }
 0x258   : > { %v3505_v19 = vshrl.u32 %v8536_v18, 16  ;;  %v3508_v50 = vshll.u32 %v8536_v18, 16  ;;  %6776 = vmatmul.mubr.bf16.vlgmr.msra.gmra.mrb[0].mxu1 %v5985_v21  ;;  %v3497_v30 = vor.u32 %v3496_v3, %v3493_v10  ;;  %v3521_v53 = vrot.slane %v3519_v7, 4  ;;  %v3821_v25 = vld [vmem:[#allocation3 + $0x30] sm:$0xe]  ;;  %v7271_v10 = vld [vmem:[%s9012_s6 + $0x20] sm:$0xff]  }
 0x259   : > { %v3524_v33 = vrot.slane %v3522_v14, 5  ;;  %6784 = vmatpush3.bf16.msra.mxu1 %v8388_v9  ;;  %v3514_v38 = vshll.u32 %v3418_v22, 16  ;;  %v3528_v39 = vshll.u32 %v8529_v57, 16  ;;  %v3856_v17 = vrot.slane %v8489_v26, 5  ;;  %v7274_v3 = vld [vmem:[%s9012_s6 + $0x38] sm:$0xff]  }
 0x25a   : > { %v3507_v36 = vrot.slane %v3505_v19, 4  ;;  %v3510_v37 = vrot.slane %v3508_v50, 5  ;;  %6785 = vmatprep.subr.bf16.mxu1 %v7267_v6  ;;  %v3498_v42 = vrot.slane %v3497_v30, 4  ;;  %v3502_v16 = vrot.slane %v3500_v13, 5  ;;  %v7276_v13 = vld [vmem:[%s9012_s6 + $0x80] sm:$0xff]   ;;  %v7278_v19 = vld [vmem:[%s9012_s6 + $0x88] sm:$0xff]  }
 0x25b   : > { %v3525_v5 = vor.u32 %v3524_v33, %v3521_v53  ;;  %v3489_v55 = vsel %vm7881_vm7, %v3484_v24, %v3488_v29  ;;  %v6010_v34 = vrot.slane %v3817_v28, 9  ;;  %v6011_v47 = vrot.slane %v3818_v40, 9  ;;  %v7282_v33 = vld [vmem:[%s9012_s6 + $0xa0] sm:$0xff]  }
 0x25c   : > { %v3511_v9 = vor.u32 %v3510_v37, %v3507_v36  ;;  %v3503_v26 = vsel %vm7881_vm7, %v3498_v42, %v3502_v16  ;;  %v3516_v60 = vrot.slane %v3514_v38, 5  ;;  %v3530_v52 = vrot.slane %v3528_v39, 5  ;;  %v3820_v36 = vld [vmem:[#allocation3 + $0x28] sm:$0xe]  ;;  %v7285_v37 = vld [vmem:[%s9012_s6 + $0xb8] sm:$0xff]  }
 0x25d   : > { %v3526_v45 = vrot.slane %v3525_v5, 4  ;;  %6786 = vmatpush3.bf16.msra.mxu1 %v7267_v6  ;;  %v5986_v11 = vcombine.low %v3489_v55, %v3503_v26  ;;  %v8562_v61 = vsel %vm8551_vm10, %v6010_v34, %v3852_v23  ;;  %v8566_v62 = vsel %vm8551_vm10, %v6011_v47, %v3856_v17  ;;  %v3816_v23 = vld [vmem:[#allocation3 + $0x8] sm:$0xe]  ;;  %v3819_v38 = vld [vmem:[#allocation3 + $0x20] sm:$0xe] }
 0x25e   : > { %v3512_v12 = vrot.slane %v3511_v9, 4  ;;  %6787 = vmatprep.subr.bf16.mxu1 %v7268_v43  ;;  %v6033_v44 = vcombine.low %v8562_v61, %v8566_v62  ;;  %v6014_v41 = vrot.slane %v3821_v25, 9  ;;  %v3868_v27 = vrot.slane %v3418_v22, 5  ;;  %v3815_v22 = vld [vmem:[#allocation3] sm:$0xe]  ;;  %v7290_v9 = vld [vmem:[%s9012_s6 + $0xd8] sm:$0xff]  }
 0x25f   : > { %6779 = vmatprep.mubr.bf16.mxu1 %v5986_v11  ;;  %v3531_v2 = vsel %vm7881_vm7, %v3526_v45, %v3530_v52  ;;  %v5996_v7 = vcombine.low %v8391_v15, %v8463_v48  ;;  %v6015_v8 = vrot.slane %v3822_v63, 9  ;;  %v3872_v54 = vrot.slane %v8529_v57, 5  ;;  %v7272_v48 = vld [vmem:[%s9012_s6 + $0x28] sm:$0xff]   ;;  %v7273_v57 = vld [vmem:[%s9012_s6 + $0x30] sm:$0xff]   ;;  %v7286_v17 = vld [vmem:[%s9012_s6 + $0xc0] sm:$0xff]  }
 0x260   : > { %v3517_v0 = vsel %vm7881_vm7, %v3512_v12, %v3516_v60  ;;  %v8582_v14 = vsel %vm8551_vm10, %v6014_v41, %v3868_v27  ;;  %v5997_v24 = vcombine.low %v8479_v4, %v8461_v1  ;;  %v5998_v50 = vcombine.low %v8493_v35, %v8504_v51  ;;  %v7280_v1 = vld [vmem:[%s9012_s6 + $0x90] sm:$0xff]   ;;  %v7291_v45 = vld [vmem:[%s9012_s6 + $0xe0] sm:$0xff]   ;;  %v7292_v34 = vld [vmem:[%s9012_s6 + $0xe8] sm:$0xff]  }
 0x261   : > { %v5987_v6 = vcombine.low %v3517_v0, %v3531_v2  ;;  %6788 = vmatpush3.bf16.msra.mxu1 %v7268_v43  ;;  %v8586_v21 = vsel %vm8551_vm10, %v6015_v8, %v3872_v54  ;;  %v3844_v28 = vrot.slane %v8417_v32, 5  ;;  %v3848_v29 = vrot.slane %v8465_v20, 5  ;;  %v7281_v20 = vld [vmem:[%s9012_s6 + $0x98] sm:$0xff]   ;;  %v7289_v26 = vld [vmem:[#allocation3 + $0x8] ss:$8 sps:$4 sm:$0xff]   ;;  %v7296_v0 = vld [vmem:[%s9012_s6 + $0x100] sm:$0xff]  }
 0x262   : > { %6789 = vmatprep.subr.bf16.mxu1 %v7270_v58  ;;  %v6035_v15 = vcombine.low %v8582_v14, %v8586_v21  ;;  %v6008_v30 = vrot.slane %v3815_v22, 9  ;;  %v6009_v53 = vrot.slane %v3816_v23, 9  ;;  %v5999_v32 = vcombine.low %v8536_v18, %v8512_v31  ;;  %v7283_v31 = vld [vmem:[%s9012_s6 + $0xa8] sm:$0xff]   ;;  %v7284_v18 = vld [vmem:[%s9012_s6 + $0xb0] sm:$0xff]   ;;  %v7294_v25 = vld [vmem:[%s9012_s6 + $0xf8] sm:$0xff]  }
 0x263   : > { %6780 = vmatmul.mubr.bf16.gmra.mrb[4].mxu1 %v5987_v6  ;;  %v6013_v39 = vrot.slane %v3820_v36, 9  ;;  %v3864_v40 = vrot.slane %v8521_v59, 5  ;;  %v6012_v42 = vrot.slane %v3819_v38, 9  ;;  %v3860_v16 = vrot.slane %v8509_v56, 5  ;;  %v7287_v59 = vld [vmem:[%s9012_s6 + $0xc8] sm:$0xff]   ;;  %v7288_v56 = vld [vmem:[%s9012_s6 + $0xd0] sm:$0xff]  }
 0x264   : > { %6799 = vmatprep.mubr.bf16.mxu1 %v5996_v7  ;;  %v3845_v4 = vsel %vm8551_vm10, %v6008_v30, %v3844_v28  ;;  %v3849_v35 = vsel %vm8551_vm10, %v6009_v53, %v3848_v29  ;;  %v4200_v47 = vld [vmem:[#allocation3 + $0x10] sm:$0xf]  ;;  %v4198_v12 = vld [vmem:[#allocation3 + $0x8] sm:$0xf]  ;;  %v8674_v6 = vld [vmem:[#allocation3 + $0x14] sm:$0x1] }
 0x265   : > { %6790 = vmatpush3.bf16.msra.mxu1 %v7270_v58  ;;  %v6032_v51 = vcombine.low %v3845_v4, %v3849_v35  ;;  %v3865_v43 = vsel %vm8551_vm10, %v6013_v39, %v3864_v40  ;;  %v3861_v5 = vsel %vm8551_vm10, %v6012_v42, %v3860_v16  ;;  %v7293_v11 = vld [vmem:[%s9012_s6 + $0xf0] sm:$0xff]   ;;  %v4229_v60 = vshrl.u32 %v4200_v47, 16  ;;  %v8676_v27 = vld [vmem:[#allocation3 + $0xc] sm:$0x1]  ;;  %v7295_v7 = vld [vmem:[#allocation3 + $0x18] ss:$8 sps:$4 sm:$0xff]  }
 0x266   : > { %6791 = vmatprep.subr.bf16.mxu1 %v7271_v10  ;;  %v6034_v55 = vcombine.low %v3861_v5, %v3865_v43  ;;  %v4232_v52 = vshll.u32 %v4200_v47, 16  ;;  %v4215_v58 = vshrl.u32 %v4198_v12, 16  ;;  %v4218_v61 = vshll.u32 %v4198_v12, 16  ;;  %v7298_v8 = vld [vmem:[%s9012_s6 + $0x108] sm:$0xff]   ;;  %v7301_v28 = vld [vmem:[%s9012_s6 + $0x118] sm:$0xff]   ;;  %v8710_v53 = vld [vmem:[%s9013_s7 + $0x10] sm:$0xff]  }
 0x267   : > { %v4231_v62 = vrot.slane %v4229_v60, 4  ;;  %v7297_v14 = vld [vmem:[#allocation3 + $0x28] ss:$8 sps:$4 sm:$0xff]   ;;  %v4224_v21 = vshll.u32 %v8676_v27, 16  ;;  %v4204_v30 = vld [vmem:[#allocation3 + $0x20] sm:$0xf] }
 0x268   : > { %v4234_v63 = vrot.slane %v4232_v52, 5  ;;  %v4217_v2 = vrot.slane %v4215_v58, 4  ;;  %v8695_v22 = vld [vmem:[%s9013_s7 + $0x8] sm:$0xff]   ;;  %v7302_v4 = vld [vmem:[%s9012_s6 + $0x120] sm:$0xff]   ;;  %v4202_v35 = vld [vmem:[#allocation3 + $0x18] sm:$0xf] }
 0x269   : > { %6792 = vmatpush3.bf16.msra.mxu1 %v7271_v10  ;;  %v4238_v10 = vshll.u32 %v8674_v6, 16  ;;  %v4226_v23 = vrot.slane %v4224_v21, 5  ;;  %v4243_v36 = vshrl.u32 %v4202_v35, 16  ;;  %v7303_v38 = vld [vmem:[%s9012_s6 + $0x128] sm:$0xff]   ;;  %v4210_v47 = vld [vmem:[#allocation3 + $0x38] sm:$0xf] }
 0x26a   : > { %6793 = vmatprep.subr.bf16.mxu1 %v7272_v48  ;;  %v4235_v41 = vor.u32 %v4234_v63, %v4231_v62  ;;  %v8743_v60 = vld [vmem:[#allocation3 + $0x34] sm:$0x1]  ;;  %v8746_v58 = vld [vmem:[#allocation3 + $0x1c] sm:$0x1] }
 0x26d   : > { %6794 = vmatpush3.bf16.msra.mxu1 %v7272_v48  ;;  %v8686_v48 = vld [vmem:[%s9013_s7] sm:$0xff]  }
 0x26e   : > { %6795 = vmatprep.subr.bf16.mxu1 %v7273_v57  ;;  %6975 = vmatprep.subr.bf16.mxu0 %v8686_v48 }
 0x26f   : > { %6976 = vmatpush3.bf16.msra.mxu0 %v8686_v48 }
 0x270   : > { %6977 = vmatprep.subr.bf16.mxu0 %v8695_v22 }
 0x271   : > { %6796 = vmatpush3.bf16.msra.mxu1 %v7273_v57  ;;  %v7300_v57 = vld [vmem:[%s9012_s6 + $0x110] sm:$0xff]  }
 0x272   : > { %6797 = vmatprep.subr.bf16.mxu1 %v7274_v3 }
 0x273   : > { %6978 = vmatpush3.bf16.msra.mxu0 %v8695_v22 }
 0x274   : > { %6979 = vmatprep.subr.bf16.mxu0 %v8710_v53 }
 0x275   : > { %6798 = vmatpush3.bf16.msra.mxu1 %v7274_v3 }
 0x276   : > { %6807 = vmatprep.subr.bf16.mxu1 %v7276_v13 }
 0x277   : > { %6980 = vmatpush3.bf16.msra.mxu0 %v8710_v53 }
 0x278   : > { %6800 = vmatmul.mubr.bf16.vlgmr.msra.gmra.mrb[0].mxu1 %v5997_v24 }
 0x279   : > { %6803 = vmatprep.mubr.bf16.mxu1 %v5998_v50  ;;  %6808 = vmatpush3.bf16.msra.mxu1 %v7276_v13  ;;  %v4240_v13 = vrot.slane %v4238_v10, 5  ;;  %v4252_v10 = vshll.u32 %v8746_v58, 16 }
 0x27a   : > { %6809 = vmatprep.subr.bf16.mxu1 %v7278_v19 }
 0x27d   : > { %6810 = vmatpush3.bf16.msra.mxu1 %v7278_v19  ;;  %v7299_v19 = vld [vmem:[#allocation3 + $0x38] ss:$8 sps:$4 sm:$0xff]  }
 0x27e   : > { %6811 = vmatprep.subr.bf16.mxu1 %v7280_v1 }
 0x280   : > { %6804 = vmatmul.mubr.bf16.gmra.mrb[4].mxu1 %v5999_v32  ;;  %v8719_v32 = vld [vmem:[%s9013_s7 + $0x18] sm:$0xff]  }
 0x281   : > { %6812 = vmatpush3.bf16.msra.mxu1 %v7280_v1  ;;  %6823 = vmatprep.mubr.bf16.mxu1 %v6032_v51  ;;  %v4208_v1 = vld [vmem:[#allocation3 + $0x30] sm:$0xf]  ;;  %v4260_v51 = vshll.u32 %v4204_v30, 16 }
 0x282   : > { %6813 = vmatprep.subr.bf16.mxu1 %v7281_v20  ;;  %6981 = vmatprep.subr.bf16.mxu0 %v8719_v32 }
 0x283   : > { %v4262_v16 = vrot.slane %v4260_v51, 5  ;;  %6982 = vmatpush3.bf16.msra.mxu0 %v8719_v32 }
 0x285   : > { %6814 = vmatpush3.bf16.msra.mxu1 %v7281_v20  ;;  %v4257_v20 = vshrl.u32 %v4204_v30, 16  ;;  %v8768_v30 = vld [vmem:[#allocation3 + $0x44] sm:$0x1] }
 0x286   : > { %6815 = vmatprep.subr.bf16.mxu1 %v7282_v33 }
 0x287   : > { %v4259_v42 = vrot.slane %v4257_v20, 4 }
 0x289   : > { %6816 = vmatpush3.bf16.msra.mxu1 %v7282_v33  ;;  %v4206_v33 = vld [vmem:[#allocation3 + $0x28] sm:$0xf]  ;;  %v4263_v12 = vor.u32 %v4262_v16, %v4259_v42 }
 0x28a   : > { %6817 = vmatprep.subr.bf16.mxu1 %v7283_v31  ;;  %v4271_v39 = vshrl.u32 %v4206_v33, 16  ;;  %v4274_v40 = vshll.u32 %v4206_v33, 16  ;;  %v7307_v16 = vld [vmem:[%s9012_s6 + $0x148] sm:$0xff]  }
 0x28d   : > { %6818 = vmatpush3.bf16.msra.mxu1 %v7283_v31  ;;  %v4285_v31 = vshrl.u32 %v4208_v1, 16 }
 0x28e   : > { %6819 = vmatprep.subr.bf16.mxu1 %v7284_v18 }
 0x28f   : > { %v4287_v43 = vrot.slane %v4285_v31, 4  ;;  %v8780_v31 = vld [vmem:[#allocation3 + $0x3c] sm:$0x1] }
 0x291   : > { %6820 = vmatpush3.bf16.msra.mxu1 %v7284_v18  ;;  %v4288_v18 = vshll.u32 %v4208_v1, 16  ;;  %v8773_v1 = vld [vmem:[%s9013_s7 + $0x38] sm:$0xff]  }
 0x292   : > { %6821 = vmatprep.subr.bf16.mxu1 %v7285_v37 }
 0x293   : > { %v4290_v5 = vrot.slane %v4288_v18, 5 }
 0x295   : > { %6822 = vmatpush3.bf16.msra.mxu1 %v7285_v37  ;;  %v4246_v37 = vshll.u32 %v4202_v35, 16 }
 0x296   : > { %6831 = vmatprep.subr.bf16.mxu1 %v7286_v17 }
 0x298   : > { %6824 = vmatmul.mubr.bf16.vlgmr.msra.gmra.mrb[0].mxu1 %v6033_v44  ;;  %v4220_v44 = vrot.slane %v4218_v61, 5  ;;  %v4291_v61 = vor.u32 %v4290_v5, %v4287_v43  ;;  %v4308_v5 = vshll.u32 %v8780_v31, 16 }
 0x299   : > { %6827 = vmatprep.mubr.bf16.mxu1 %v6034_v55  ;;  %6832 = vmatpush3.bf16.msra.mxu1 %v7286_v17  ;;  %v8729_v17 = vld [vmem:[%s9013_s7 + $0x20] sm:$0xff]  }
 0x29a   : > { %6833 = vmatprep.subr.bf16.mxu1 %v7287_v59  ;;  %v4221_v54 = vor.u32 %v4220_v44, %v4217_v2  ;;  %6983 = vmatprep.subr.bf16.mxu0 %v8729_v17  ;;  %v8733_v55 = vld [vmem:[#allocation3 + $0x24] sm:$0x1]  ;;  %v4299_v2 = vshrl.u32 %v4210_v47, 16  ;;  %v4302_v44 = vshll.u32 %v4210_v47, 16 }
 0x29b   : > { %6984 = vmatpush3.bf16.msra.mxu0 %v8729_v17  ;;  %v4266_v63 = vshll.u32 %v8733_v55, 16 }
 0x29c   : > { %v4222_v3 = vrot.slane %v4221_v54, 4  ;;  %v8759_v54 = vld [vmem:[%s9013_s7 + $0x30] sm:$0xff]  }
 0x29d   : > { %6834 = vmatpush3.bf16.msra.mxu1 %v7287_v59  ;;  %v4212_v59 = vld [vmem:[#allocation3 + $0x40] sm:$0xf] }
 0x29e   : > { %6835 = vmatprep.subr.bf16.mxu1 %v7288_v56  ;;  %v4227_v50 = vsel %vm7881_vm7, %v4222_v3, %v4226_v23  ;;  %v4313_v52 = vshrl.u32 %v4212_v59, 16  ;;  %v4292_v3 = vrot.slane %v4291_v61, 4  ;;  %v4268_v23 = vrot.slane %v4266_v63, 5 }
 0x29f   : > { %v4310_v61 = vrot.slane %v4308_v5, 5 }
 0x2a0   : > { %6828 = vmatmul.mubr.bf16.gmra.mrb[4].mxu1 %v6035_v15  ;;  %v4236_v15 = vrot.slane %v4235_v41, 4  ;;  %v7305_v41 = vld [vmem:[%s9012_s6 + $0x138] sm:$0xff]   ;;  %v4315_v21 = vrot.slane %v4313_v52, 4 }
 0x2a1   : > { %6836 = vmatpush3.bf16.msra.mxu1 %v7288_v56  ;;  %6847 = vmatprep.mubr.bf16.mxu1 %v7289_v26  ;;  %v4245_v56 = vrot.slane %v4243_v36, 4  ;;  %v7304_v26 = vld [vmem:[%s9012_s6 + $0x130] sm:$0xff]  }
 0x2a2   : > { %6837 = vmatprep.subr.bf16.mxu1 %v7290_v9  ;;  %v4241_v24 = vsel %vm7881_vm7, %v4236_v15, %v4240_v13 }
 0x2a3   : > { %v6088_v29 = vcombine.low %v4227_v50, %v4241_v24  ;;  %v4301_v24 = vrot.slane %v4299_v2, 4  ;;  %v7306_v50 = vld [vmem:[%s9012_s6 + $0x140] sm:$0xff]  }
 0x2a5   : > { %6838 = vmatpush3.bf16.msra.mxu1 %v7290_v9  ;;  %v4248_v9 = vrot.slane %v4246_v37, 5  ;;  %v4322_v37 = vshll.u32 %v8768_v30, 16 }
 0x2a6   : > { %6839 = vmatprep.subr.bf16.mxu1 %v7291_v45 }
 0x2a7   : > { %v4249_v62 = vor.u32 %v4248_v9, %v4245_v56  ;;  %v4480_v56 = vld [vmem:[#allocation3 + $0x8] sm:$0xe]  ;;  %v4324_v47 = vrot.slane %v4322_v37, 5 }
 0x2a8   : > { %v6100_v52 = vrot.slane %v4480_v56, 9  ;;  %v7320_v56 = vld [vmem:[%s9012_s6 + $0x1a8] sm:$0xff]  }
 0x2a9   : > { %6840 = vmatpush3.bf16.msra.mxu1 %v7291_v45  ;;  %v4273_v45 = vrot.slane %v4271_v39, 4  ;;  %v4250_v13 = vrot.slane %v4249_v62, 4  ;;  %v7350_v39 = vld [vmem:[#allocation2 + $0xd8] ss:$8 sps:$4 sm:$0xff]  }
 0x2aa   : > { %6841 = vmatprep.subr.bf16.mxu1 %v7292_v34  ;;  %6991 = vmatprep.mubr.bf16.mxu0 %v7350_v39 }
 0x2ad   : > { %6842 = vmatpush3.bf16.msra.mxu1 %v7292_v34  ;;  %v4276_v34 = vrot.slane %v4274_v40, 5 }
 0x2ae   : > { %6843 = vmatprep.subr.bf16.mxu1 %v7293_v11 }
 0x2b1   : > { %6844 = vmatpush3.bf16.msra.mxu1 %v7293_v11  ;;  %v8741_v11 = vld [vmem:[%s9013_s7 + $0x28] sm:$0xff]  }
 0x2b2   : > { %6845 = vmatprep.subr.bf16.mxu1 %v7294_v25  ;;  %6985 = vmatprep.subr.bf16.mxu0 %v8741_v11 }
 0x2b3   : > { %6986 = vmatpush3.bf16.msra.mxu0 %v8741_v11 }
 0x2b4   : > { %6987 = vmatprep.subr.bf16.mxu0 %v8759_v54 }
 0x2b5   : > { %6846 = vmatpush3.bf16.msra.mxu1 %v7294_v25  ;;  %v4316_v25 = vshll.u32 %v4212_v59, 16 }
 0x2b6   : > { %6855 = vmatprep.subr.bf16.mxu1 %v7296_v0 }
 0x2b7   : > { %v4318_v15 = vrot.slane %v4316_v25, 5  ;;  %6988 = vmatpush3.bf16.msra.mxu0 %v8759_v54  ;;  %v4506_v25 = vrot.slane %v8676_v27, 5  ;;  %v7309_v27 = vld [vmem:[%s9012_s6 + $0x158] sm:$0xff]  }
 0x2b8   : > { %6848 = vmatmul.mubr.bf16.vlgmr.msra.gmra.mrb[0].mxu1 %v7295_v7  ;;  %v4277_v7 = vor.u32 %v4276_v34, %v4273_v45  ;;  %6989 = vmatprep.subr.bf16.mxu0 %v8773_v1  ;;  %v7351_v45 = vld [vmem:[#allocation2 + $0xe8] ss:$8 sps:$4 sm:$0xff]  }
 0x2b9   : > { %6851 = vmatprep.mubr.bf16.mxu1 %v7297_v14  ;;  %6856 = vmatpush3.bf16.msra.mxu1 %v7296_v0  ;;  %v8750_v0 = vld [vmem:[#allocation3 + $0x2c] sm:$0x1]  ;;  %v4264_v14 = vrot.slane %v4263_v12, 4  ;;  %v4319_v20 = vor.u32 %v4318_v15, %v4315_v21  ;;  %v7308_v12 = vld [vmem:[%s9012_s6 + $0x150] sm:$0xff]   ;;  %v7313_v15 = vld [vmem:[%s9012_s6 + $0x178] sm:$0xff]  }
 0x2ba   : > { %6857 = vmatprep.subr.bf16.mxu1 %v7298_v8  ;;  %v4485_v21 = vld [vmem:[#allocation3 + $0x30] sm:$0xe] }
 0x2bb   : > { %v4269_v35 = vsel %vm7881_vm7, %v4264_v14, %v4268_v23  ;;  %v4320_v59 = vrot.slane %v4319_v20, 4  ;;  %6990 = vmatpush3.bf16.msra.mxu0 %v8773_v1  ;;  %v4483_v14 = vld [vmem:[#allocation3 + $0x20] sm:$0xe]  ;;  %v4484_v23 = vld [vmem:[#allocation3 + $0x28] sm:$0xe] }
 0x2bd   : > { %6858 = vmatpush3.bf16.msra.mxu1 %v7298_v8  ;;  %v4294_v8 = vshll.u32 %v8743_v60, 16  ;;  %v4325_v62 = vsel %vm7881_vm7, %v4320_v59, %v4324_v47  ;;  %v7317_v59 = vld [vmem:[#allocation3 + $0x10] ss:$8 sps:$4 sm:$0xff]  }
 0x2be   : > { %6859 = vmatprep.subr.bf16.mxu1 %v7300_v57  ;;  %6992 = vmatmul.mubr.bf16.vlgmr.msra.gmra.mrb[8].mxu0 %v7351_v45  ;;  %v4863_v45 = vld [vmem:[#allocation3 + $0x18] sm:$0xf] }
 0x2c0   : > { %6852 = vmatmul.mubr.bf16.gmra.mrb[4].mxu1 %v7299_v19  ;;  %v4304_v19 = vrot.slane %v4302_v44, 5  ;;  %v4507_v44 = vsel %vm8551_vm10, %v6100_v52, %v4506_v25  ;;  %v4892_v52 = vshrl.u32 %v4863_v45, 16  ;;  %v4895_v25 = vshll.u32 %v4863_v45, 16  ;;  %v8894_v45 = vld [vmem:[#allocation3 + $0x2c] sm:$0x1] }
 0x2c1   : > { %6860 = vmatpush3.bf16.msra.mxu1 %v7300_v57  ;;  %6871 = vmatprep.mubr.bf16.mxu1 %v6088_v29  ;;  %v4280_v57 = vshll.u32 %v8750_v0, 16  ;;  %v4296_v29 = vrot.slane %v4294_v8, 5  ;;  %v7311_v8 = vld [vmem:[%s9012_s6 + $0x168] sm:$0xff]  }
 0x2c2   : > { %6861 = vmatprep.subr.bf16.mxu1 %v7301_v28  ;;  %v4305_v36 = vor.u32 %v4304_v19, %v4301_v24  ;;  %v6105_v24 = vrot.slane %v4485_v21, 9  ;;  %v4526_v19 = vrot.slane %v8743_v60, 5  ;;  %v7325_v21 = vld [vmem:[#allocation3 + $0x30] ss:$8 sps:$4 sm:$0xff]  }
 0x2c3   : > { %v4282_v51 = vrot.slane %v4280_v57, 5  ;;  %v4297_v33 = vsel %vm7881_vm7, %v4292_v3, %v4296_v29  ;;  %v4482_v57 = vld [vmem:[#allocation3 + $0x18] sm:$0xe]  ;;  %v6103_v3 = vrot.slane %v4483_v14, 9  ;;  %v7314_v29 = vld [vmem:[%s9012_s6 + $0x180] sm:$0xff]  }
 0x2c4   : > { %v4306_v34 = vrot.slane %v4305_v36, 4 }
 0x2c5   : > { %6862 = vmatpush3.bf16.msra.mxu1 %v7301_v28  ;;  %v4278_v28 = vrot.slane %v4277_v7, 4  ;;  %v7310_v7 = vld [vmem:[%s9012_s6 + $0x160] sm:$0xff]  }
 0x2c6   : > { %6863 = vmatprep.subr.bf16.mxu1 %v7302_v4  ;;  %v4311_v63 = vsel %vm7881_vm7, %v4306_v34, %v4310_v61 }
 0x2c7   : > { %v4283_v42 = vsel %vm7881_vm7, %v4278_v28, %v4282_v51  ;;  %v6091_v2 = vcombine.low %v4311_v63, %v4325_v62  ;;  %v4514_v28 = vrot.slane %v8746_v58, 5  ;;  %v4487_v51 = vld [vmem:[#allocation3 + $0x40] sm:$0xe]  ;;  %v4894_v63 = vrot.slane %v4892_v52, 4 }
 0x2c8   : > { %v6090_v43 = vcombine.low %v4283_v42, %v4297_v33  ;;  %v6107_v37 = vrot.slane %v4487_v51, 9  ;;  %v7316_v42 = vld [vmem:[%s9012_s6 + $0x190] sm:$0xff]   ;;  %v4865_v51 = vld [vmem:[#allocation3 + $0x20] sm:$0xf] }
 0x2c9   : > { %6864 = vmatpush3.bf16.msra.mxu1 %v7302_v4  ;;  %v4254_v4 = vrot.slane %v4252_v10, 5  ;;  %v7312_v10 = vld [vmem:[%s9012_s6 + $0x170] sm:$0xff]  }
 0x2ca   : > { %6865 = vmatprep.subr.bf16.mxu1 %v7303_v38 }
 0x2cb   : > { %v4255_v18 = vsel %vm7881_vm7, %v4250_v13, %v4254_v4  ;;  %v4518_v13 = vrot.slane %v8733_v55, 5  ;;  %v6104_v4 = vrot.slane %v4484_v23, 9  ;;  %v4527_v55 = vsel %vm8551_vm10, %v6105_v24, %v4526_v19 }
 0x2cc   : > { %v6089_v40 = vcombine.low %v4255_v18, %v4269_v35  ;;  %v4522_v35 = vrot.slane %v8750_v0, 5  ;;  %v7315_v0 = vld [vmem:[%s9012_s6 + $0x188] sm:$0xff]   ;;  %v4486_v18 = vld [vmem:[#allocation3 + $0x38] sm:$0xe] }
 0x2cd   : > { %6866 = vmatpush3.bf16.msra.mxu1 %v7303_v38  ;;  %v4481_v38 = vld [vmem:[#allocation3 + $0x10] sm:$0xe]  ;;  %v4519_v20 = vsel %vm8551_vm10, %v6103_v3, %v4518_v13  ;;  %v6106_v39 = vrot.slane %v4486_v18, 9 }
 0x2ce   : > { %6867 = vmatprep.subr.bf16.mxu1 %v7304_v26  ;;  %v6101_v9 = vrot.slane %v4481_v38, 9  ;;  %v4523_v33 = vsel %vm8551_vm10, %v6104_v4, %v4522_v35  ;;  %v4534_v38 = vrot.slane %v8768_v30, 5  ;;  %v7318_v30 = vld [vmem:[%s9012_s6 + $0x198] sm:$0xff]   ;;  %v7328_v3 = vld [vmem:[%s9012_s6 + $0x1d0] sm:$0xff]   ;;  %v4867_v35 = vld [vmem:[#allocation3 + $0x28] sm:$0xf] }
 0x2cf   : > { %v6126_v36 = vcombine.low %v4523_v33, %v4527_v55  ;;  %v7330_v55 = vld [vmem:[%s9012_s6 + $0x1e0] sm:$0xff]   ;;  %v4871_v33 = vld [vmem:[#allocation3 + $0x38] sm:$0xf] }
 0x2d1   : > { %6868 = vmatpush3.bf16.msra.mxu1 %v7304_v26  ;;  %v4510_v26 = vrot.slane %v8674_v6, 5 }
 0x2d2   : > { %6869 = vmatprep.subr.bf16.mxu1 %v7305_v41 }
 0x2d3   : > { %v4511_v6 = vsel %vm8551_vm10, %v6101_v9, %v4510_v26  ;;  %v4861_v9 = vld [vmem:[#allocation3 + $0x10] sm:$0xf] }
 0x2d4   : > { %v7321_v26 = vld [vmem:[%s9012_s6 + $0x1b0] sm:$0xff]   ;;  %v4878_v34 = vshrl.u32 %v4861_v9, 16  ;;  %v4881_v47 = vshll.u32 %v4861_v9, 16 }
 0x2d5   : > { %6870 = vmatpush3.bf16.msra.mxu1 %v7305_v41  ;;  %v6124_v41 = vcombine.low %v4507_v44, %v4511_v6  ;;  %v7324_v6 = vld [vmem:[%s9012_s6 + $0x1c0] sm:$0xff]   ;;  %v8866_v44 = vld [vmem:[#allocation3 + $0x14] sm:$0x1] }
 0x2d6   : > { %6879 = vmatprep.subr.bf16.mxu1 %v7306_v50  ;;  %v4880_v61 = vrot.slane %v4878_v34, 4  ;;  %v4883_v62 = vrot.slane %v4881_v47, 5 }
 0x2d8   : > { %6872 = vmatmul.mubr.bf16.vlgmr.msra.gmra.mrb[0].mxu1 %v6089_v40  ;;  %v4530_v40 = vrot.slane %v8780_v31, 5  ;;  %v7319_v31 = vld [vmem:[%s9012_s6 + $0x1a0] sm:$0xff]  }
 0x2d9   : > { %6875 = vmatprep.mubr.bf16.mxu1 %v6090_v43  ;;  %6880 = vmatpush3.bf16.msra.mxu1 %v7306_v50  ;;  %v6102_v50 = vrot.slane %v4482_v57, 9 }
 0x2da   : > { %6881 = vmatprep.subr.bf16.mxu1 %v7307_v16  ;;  %v4531_v43 = vsel %vm8551_vm10, %v6106_v39, %v4530_v40  ;;  %v4948_v39 = vshrl.u32 %v4871_v33, 16  ;;  %v4951_v40 = vshll.u32 %v4871_v33, 16 }
 0x2db   : > { %v4515_v60 = vsel %vm8551_vm10, %v6102_v50, %v4514_v28  ;;  %v7327_v50 = vld [vmem:[#allocation3 + $0x40] ss:$8 sps:$4 sm:$0xff]  }
 0x2dc   : > { %v6125_v58 = vcombine.low %v4515_v60, %v4519_v20  ;;  %v4869_v20 = vld [vmem:[#allocation3 + $0x30] sm:$0xf]  ;;  %v4920_v60 = vshrl.u32 %v4867_v35, 16  ;;  %v4950_v34 = vrot.slane %v4948_v39, 4  ;;  %v4953_v47 = vrot.slane %v4951_v40, 5 }
 0x2dd   : > { %6882 = vmatpush3.bf16.msra.mxu1 %v7307_v16  ;;  %v4535_v16 = vsel %vm8551_vm10, %v6107_v37, %v4534_v38  ;;  %v4937_v18 = vshll.u32 %v4869_v20, 16  ;;  %v4909_v37 = vshll.u32 %v4865_v51, 16  ;;  %v7331_v38 = vld [vmem:[%s9012_s6 + $0x1e8] sm:$0xff]   ;;  %v5143_v39 = vld [vmem:[#allocation3 + $0x10] sm:$0xe] }
 0x2de   : > { %6883 = vmatprep.subr.bf16.mxu1 %v7308_v12  ;;  %v6127_v5 = vcombine.low %v4531_v43, %v4535_v16  ;;  %v4922_v16 = vrot.slane %v4920_v60, 4 }
 0x2e0   : > { %6876 = vmatmul.mubr.bf16.gmra.mrb[4].mxu1 %v6091_v2  ;;  %v4897_v2 = vrot.slane %v4895_v25, 5  ;;  %v8896_v25 = vld [vmem:[#allocation3 + $0x34] sm:$0x1] }
 0x2e1   : > { %6884 = vmatpush3.bf16.msra.mxu1 %v7308_v12  ;;  %6895 = vmatprep.mubr.bf16.mxu1 %v6124_v41  ;;  %v7322_v12 = vld [vmem:[%s9012_s6 + $0x1b8] sm:$0xff]  }
 0x2e2   : > { %6885 = vmatprep.subr.bf16.mxu1 %v7309_v27  ;;  %v8868_v41 = vld [vmem:[#allocation3 + $0x1c] sm:$0x1]  ;;  %v4898_v14 = vor.u32 %v4897_v2, %v4894_v63 }
 0x2e3   : > { %v4901_v57 = vshll.u32 %v8868_v41, 16 }
 0x2e4   : > { %v4899_v23 = vrot.slane %v4898_v14, 4  ;;  %v4954_v14 = vor.u32 %v4953_v47, %v4950_v34  ;;  %v7338_v34 = vld [vmem:[%s9012_s6 + $0x210] sm:$0xff]  }
 0x2e5   : > { %6886 = vmatpush3.bf16.msra.mxu1 %v7309_v27  ;;  %v4884_v27 = vor.u32 %v4883_v62, %v4880_v61  ;;  %v4903_v19 = vrot.slane %v4901_v57, 5 }
 0x2e6   : > { %6887 = vmatprep.subr.bf16.mxu1 %v7310_v7 }
 0x2e7   : > { %v4904_v28 = vsel %vm7881_vm7, %v4899_v23, %v4903_v19 }
 0x2e9   : > { %6888 = vmatpush3.bf16.msra.mxu1 %v7310_v7  ;;  %v7323_v7 = vld [vmem:[#allocation3 + $0x20] ss:$8 sps:$4 sm:$0xff]  }
 0x2ea   : > { %6889 = vmatprep.subr.bf16.mxu1 %v7311_v8 }
 0x2ed   : > { %6890 = vmatpush3.bf16.msra.mxu1 %v7311_v8  ;;  %v7326_v8 = vld [vmem:[%s9012_s6 + $0x1c8] sm:$0xff]  }
 0x2ee   : > { %6891 = vmatprep.subr.bf16.mxu1 %v7312_v10 }
 0x2f1   : > { %6892 = vmatpush3.bf16.msra.mxu1 %v7312_v10  ;;  %v4887_v10 = vshll.u32 %v8866_v44, 16 }
 0x2f2   : > { %6893 = vmatprep.subr.bf16.mxu1 %v7313_v15 }
 0x2f3   : > { %v4889_v13 = vrot.slane %v4887_v10, 5  ;;  %v4943_v10 = vshll.u32 %v8896_v25, 16 }
 0x2f5   : > { %6894 = vmatpush3.bf16.msra.mxu1 %v7313_v15  ;;  %v4885_v15 = vrot.slane %v4884_v27, 4  ;;  %v4929_v27 = vshll.u32 %v8894_v45, 16 }
 0x2f6   : > { %6903 = vmatprep.subr.bf16.mxu1 %v7314_v29 }
 0x2f7   : > { %v4890_v24 = vsel %vm7881_vm7, %v4885_v15, %v4889_v13 }
 0x2f8   : > { %6896 = vmatmul.mubr.bf16.vlgmr.msra.gmra.mrb[0].mxu1 %v6125_v58  ;;  %v6180_v4 = vcombine.low %v4890_v24, %v4904_v28  ;;  %v4923_v58 = vshll.u32 %v4867_v35, 16  ;;  %v4931_v28 = vrot.slane %v4929_v27, 5  ;;  %v4945_v35 = vrot.slane %v4943_v10, 5  ;;  %v7344_v27 = vld [vmem:[%s9012_s6 + $0x228] sm:$0xff]  }
 0x2f9   : > { %6899 = vmatprep.mubr.bf16.mxu1 %v6126_v36  ;;  %6904 = vmatpush3.bf16.msra.mxu1 %v7314_v29  ;;  %v7329_v29 = vld [vmem:[%s9012_s6 + $0x1d8] sm:$0xff]   ;;  %v4906_v36 = vshrl.u32 %v4865_v51, 16  ;;  %v5146_v10 = vld [vmem:[#allocation3 + $0x28] sm:$0xe] }
 0x2fa   : > { %6905 = vmatprep.subr.bf16.mxu1 %v7315_v0  ;;  %v4925_v43 = vrot.slane %v4923_v58, 5 }
 0x2fc   : > { %v4926_v52 = vor.u32 %v4925_v43, %v4922_v16  ;;  %v7336_v16 = vld [vmem:[%s9012_s6 + $0x208] sm:$0xff]  }
 0x2fd   : > { %6906 = vmatpush3.bf16.msra.mxu1 %v7315_v0  ;;  %v4934_v0 = vshrl.u32 %v4869_v20, 16  ;;  %v4955_v20 = vrot.slane %v4954_v14, 4  ;;  %v5147_v14 = vld [vmem:[#allocation3 + $0x30] sm:$0xe] }
 0x2fe   : > { %6907 = vmatprep.subr.bf16.mxu1 %v7316_v42 }
 0x300   : > { %6900 = vmatmul.mubr.bf16.gmra.mrb[4].mxu1 %v6127_v5  ;;  %v4936_v5 = vrot.slane %v4934_v0, 4 }
 0x301   : > { %6908 = vmatpush3.bf16.msra.mxu1 %v7316_v42  ;;  %6919 = vmatprep.mubr.bf16.mxu1 %v7317_v59  ;;  %v4875_v42 = vld [vmem:[#allocation3 + $0x48] sm:$0xf]  ;;  %v4873_v59 = vld [vmem:[#allocation3 + $0x40] sm:$0xf] }
 0x302   : > { %6909 = vmatprep.subr.bf16.mxu1 %v7318_v30  ;;  %v4976_v9 = vshrl.u32 %v4875_v42, 16  ;;  %v4962_v61 = vshrl.u32 %v4873_v59, 16  ;;  %v4965_v62 = vshll.u32 %v4873_v59, 16 }
 0x304   : > { %v4964_v13 = vrot.slane %v4962_v61, 4  ;;  %v4967_v23 = vrot.slane %v4965_v62, 5 }
 0x305   : > { %6910 = vmatpush3.bf16.msra.mxu1 %v7318_v30  ;;  %v4939_v30 = vrot.slane %v4937_v18, 5 }
 0x306   : > { %6911 = vmatprep.subr.bf16.mxu1 %v7319_v31  ;;  %v4968_v33 = vor.u32 %v4967_v23, %v4964_v13  ;;  %v5148_v13 = vld [vmem:[#allocation3 + $0x38] sm:$0xe]  ;;  %v6196_v23 = vrot.slane %v5147_v14, 9 }
 0x307   : > { %v4940_v63 = vor.u32 %v4939_v30, %v4936_v5 }
 0x308   : > { %v4969_v5 = vrot.slane %v4968_v33, 4 }
 0x309   : > { %6912 = vmatpush3.bf16.msra.mxu1 %v7319_v31  ;;  %v4908_v31 = vrot.slane %v4906_v36, 4  ;;  %v4941_v24 = vrot.slane %v4940_v63, 4 }
 0x30a   : > { %6913 = vmatprep.subr.bf16.mxu1 %v7320_v56 }
 0x30b   : > { %v4946_v18 = vsel %vm7881_vm7, %v4941_v24, %v4945_v35  ;;  %v5185_v24 = vrot.slane %v8896_v25, 5 }
 0x30d   : > { %6914 = vmatpush3.bf16.msra.mxu1 %v7320_v56  ;;  %v4911_v56 = vrot.slane %v4909_v37, 5 }
 0x30e   : > { %6915 = vmatprep.subr.bf16.mxu1 %v7321_v26 }
 0x30f   : > { %v4912_v2 = vor.u32 %v4911_v56, %v4908_v31  ;;  %v5144_v31 = vld [vmem:[#allocation3 + $0x18] sm:$0xe]  ;;  %v6192_v56 = vrot.slane %v5143_v39, 9 }
 0x310   : > { %v6193_v47 = vrot.slane %v5144_v31, 9 }
 0x311   : > { %6916 = vmatpush3.bf16.msra.mxu1 %v7321_v26  ;;  %v7332_v26 = vld [vmem:[%s9012_s6 + $0x1f0] sm:$0xff]  }
 0x312   : > { %6917 = vmatprep.subr.bf16.mxu1 %v7322_v12 }
 0x315   : > { %6918 = vmatpush3.bf16.msra.mxu1 %v7322_v12  ;;  %v4979_v12 = vshll.u32 %v4875_v42, 16 }
 0x316   : > { %6927 = vmatprep.subr.bf16.mxu1 %v7324_v6 }
 0x317   : > { %v4981_v15 = vrot.slane %v4979_v12, 5  ;;  %v5173_v12 = vrot.slane %v8868_v41, 5 }
 0x318   : > { %6920 = vmatmul.mubr.bf16.vlgmr.msra.gmra.mrb[0].mxu1 %v7323_v7  ;;  %v8901_v7 = vld [vmem:[#allocation3 + $0x3c] sm:$0x1] }
 0x319   : > { %6923 = vmatprep.mubr.bf16.mxu1 %v7325_v21  ;;  %6928 = vmatpush3.bf16.msra.mxu1 %v7324_v6  ;;  %v8898_v6 = vld [vmem:[#allocation3 + $0x24] sm:$0x1]  ;;  %v4978_v21 = vrot.slane %v4976_v9, 4  ;;  %v4957_v19 = vshll.u32 %v8901_v7, 16  ;;  %v5169_v9 = vrot.slane %v8866_v44, 5  ;;  %v5174_v63 = vsel %vm8551_vm10, %v6193_v47, %v5173_v12 }
 0x31a   : > { %6929 = vmatprep.subr.bf16.mxu1 %v7326_v8  ;;  %v4915_v57 = vshll.u32 %v8898_v6, 16 }
 0x31b   : > { %v4982_v51 = vor.u32 %v4981_v15, %v4978_v21  ;;  %v4959_v36 = vrot.slane %v4957_v19, 5  ;;  %v5170_v44 = vsel %vm8551_vm10, %v6192_v56, %v5169_v9  ;;  %v7348_v21 = vld [vmem:[%s9012_s6 + $0x238] sm:$0xff]   ;;  %v5145_v15 = vld [vmem:[#allocation3 + $0x20] sm:$0xe] }
 0x31c   : > { %v4917_v60 = vrot.slane %v4915_v57, 5  ;;  %v6216_v41 = vcombine.low %v5170_v44, %v5174_v63  ;;  %v6195_v57 = vrot.slane %v5146_v10, 9  ;;  %v6194_v19 = vrot.slane %v5145_v15, 9 }
 0x31d   : > { %6930 = vmatpush3.bf16.msra.mxu1 %v7326_v8  ;;  %v7333_v8 = vld [vmem:[%s9012_s6 + $0x1f8] sm:$0xff]   ;;  %v4960_v42 = vsel %vm7881_vm7, %v4955_v20, %v4959_v36  ;;  %v4983_v30 = vrot.slane %v4982_v51, 4  ;;  %v5150_v20 = vld [vmem:[#allocation3 + $0x48] sm:$0xe]  ;;  %v5186_v51 = vsel %vm8551_vm10, %v6196_v23, %v5185_v24 }
 0x31e   : > { %6931 = vmatprep.subr.bf16.mxu1 %v7328_v3  ;;  %v6182_v43 = vcombine.low %v4946_v18, %v4960_v42 }
 0x320   : > { %6924 = vmatmul.mubr.bf16.gmra.mrb[4].mxu1 %v7327_v50  ;;  %v4913_v50 = vrot.slane %v4912_v2, 4  ;;  %v7340_v2 = vld [vmem:[%s9012_s6 + $0x218] sm:$0xff]  }
 0x321   : > { %6932 = vmatpush3.bf16.msra.mxu1 %v7328_v3  ;;  %6943 = vmatprep.mubr.bf16.mxu1 %v6180_v4  ;;  %v4927_v3 = vrot.slane %v4926_v52, 4  ;;  %v7334_v4 = vld [vmem:[%s9012_s6 + $0x200] sm:$0xff]  }
 0x322   : > { %6933 = vmatprep.subr.bf16.mxu1 %v7329_v29  ;;  %v4918_v37 = vsel %vm7881_vm7, %v4913_v50, %v4917_v60  ;;  %v5177_v50 = vrot.slane %v8898_v6, 5 }
 0x323   : > { %v4932_v58 = vsel %vm7881_vm7, %v4927_v3, %v4931_v28  ;;  %v5181_v3 = vrot.slane %v8894_v45, 5  ;;  %v6197_v28 = vrot.slane %v5148_v13, 9  ;;  %v5149_v45 = vld [vmem:[#allocation3 + $0x40] sm:$0xe] }
 0x324   : > { %v6181_v40 = vcombine.low %v4918_v37, %v4932_v58  ;;  %v5178_v25 = vsel %vm8551_vm10, %v6194_v19, %v5177_v50  ;;  %v6199_v58 = vrot.slane %v5150_v20, 9  ;;  %v6198_v33 = vrot.slane %v5149_v45, 9 }
 0x325   : > { %6934 = vmatpush3.bf16.msra.mxu1 %v7329_v29  ;;  %v8909_v29 = vld [vmem:[#allocation3 + $0x4c] sm:$0x1]  ;;  %v5182_v35 = vsel %vm8551_vm10, %v6195_v57, %v5181_v3 }
 0x326   : > { %6935 = vmatprep.subr.bf16.mxu1 %v7330_v55  ;;  %v4985_v0 = vshll.u32 %v8909_v29, 16  ;;  %v6217_v60 = vcombine.low %v5178_v25, %v5182_v35  ;;  %v5197_v18 = vrot.slane %v8909_v29, 5 }
 0x328   : > { %v4987_v59 = vrot.slane %v4985_v0, 5  ;;  %v5198_v37 = vsel %vm8551_vm10, %v6199_v58, %v5197_v18 }
 0x329   : > { %6936 = vmatpush3.bf16.msra.mxu1 %v7330_v55  ;;  %v8914_v55 = vld [vmem:[#allocation3 + $0x44] sm:$0x1] }
 0x32a   : > { %6937 = vmatprep.subr.bf16.mxu1 %v7331_v38  ;;  %v4988_v61 = vsel %vm7881_vm7, %v4983_v30, %v4987_v59  ;;  %v5193_v0 = vrot.slane %v8914_v55, 5 }
 0x32c   : > { %v5194_v36 = vsel %vm8551_vm10, %v6198_v33, %v5193_v0 }
 0x32d   : > { %6938 = vmatpush3.bf16.msra.mxu1 %v7331_v38  ;;  %v4971_v38 = vshll.u32 %v8914_v55, 16  ;;  %v6219_v39 = vcombine.low %v5194_v36, %v5198_v37 }
 0x32e   : > { %6939 = vmatprep.subr.bf16.mxu1 %v7332_v26 }
 0x331   : > { %6940 = vmatpush3.bf16.msra.mxu1 %v7332_v26  ;;  %v4973_v26 = vrot.slane %v4971_v38, 5  ;;  %v7352_v38 = vld [vmem:[#allocation2 + $0xf8] ss:$8 sps:$4 sm:$0xff]  }
 0x332   : > { %6941 = vmatprep.subr.bf16.mxu1 %v7333_v8 }
 0x333   : > { %v4974_v52 = vsel %vm7881_vm7, %v4969_v5, %v4973_v26 }
 0x334   : > { %v6183_v62 = vcombine.low %v4974_v52, %v4988_v61 }
 0x335   : > { %6942 = vmatpush3.bf16.msra.mxu1 %v7333_v8  ;;  %v7346_v8 = vld [vmem:[%s9012_s6 + $0x230] sm:$0xff]  }
 0x336   : > { %6951 = vmatprep.subr.bf16.mxu1 %v7334_v4 }
 0x338   : > { %6944 = vmatmul.mubr.bf16.vlgmr.msra.gmra.mrb[0].mxu1 %v6181_v40 }
 0x339   : > { %6947 = vmatprep.mubr.bf16.mxu1 %v6182_v43  ;;  %6952 = vmatpush3.bf16.msra.mxu1 %v7334_v4  ;;  %v5189_v4 = vrot.slane %v8901_v7, 5 }
 0x33a   : > { %6953 = vmatprep.subr.bf16.mxu1 %v7336_v16 }
 0x33b   : > { %v5190_v6 = vsel %vm8551_vm10, %v6197_v28, %v5189_v4 }
 0x33c   : > { %v6218_v7 = vcombine.low %v5186_v51, %v5190_v6 }
 0x33d   : > { %6954 = vmatpush3.bf16.msra.mxu1 %v7336_v16 }
 0x33e   : > { %6955 = vmatprep.subr.bf16.mxu1 %v7338_v34 }
 0x340   : > { %6948 = vmatmul.mubr.bf16.gmra.mrb[4].mxu1 %v6183_v62 }
 0x341   : > { %6956 = vmatpush3.bf16.msra.mxu1 %v7338_v34  ;;  %6967 = vmatprep.mubr.bf16.mxu1 %v6216_v41 }
 0x342   : > { %6957 = vmatprep.subr.bf16.mxu1 %v7340_v2 }
 0x345   : > { %6958 = vmatpush3.bf16.msra.mxu1 %v7340_v2 }
 0x346   : > { %6959 = vmatprep.subr.bf16.mxu1 %v7342_v49 }
 0x349   : > { %6960 = vmatpush3.bf16.msra.mxu1 %v7342_v49 }
 0x34a   : > { %6961 = vmatprep.subr.bf16.mxu1 %v7344_v27 }
 0x34d   : > { %6962 = vmatpush3.bf16.msra.mxu1 %v7344_v27 }
 0x34e   : > { %6963 = vmatprep.subr.bf16.mxu1 %v7346_v8 }
 0x351   : > { %6964 = vmatpush3.bf16.msra.mxu1 %v7346_v8 }
 0x352   : > { %6965 = vmatprep.subr.bf16.mxu1 %v7348_v21 }
 0x355   : > { %6966 = vmatpush3.bf16.msra.mxu1 %v7348_v21 }
 0x356   : > { %6999 = vmatprep.subr.bf16.mxu1 %v8686_v48 }
 0x358   : > { %6968 = vmatmul.mubr.bf16.vlgmr.msra.gmra.mrb[0].mxu1 %v6217_v60 }
 0x359   : > { %6971 = vmatprep.mubr.bf16.mxu1 %v6218_v7  ;;  %7007 = vmatpush3.bf16.msra.mxu1 %v8686_v48 }
 0x35a   : > { %7000 = vmatprep.subr.bf16.mxu1 %v8695_v22 }
 0x35d   : > { %7008 = vmatpush3.bf16.msra.mxu1 %v8695_v22 }
 0x35e   : > { %7001 = vmatprep.subr.bf16.mxu1 %v8710_v53 }
 0x360   : > { %6972 = vmatmul.mubr.bf16.gmra.mrb[4].mxu1 %v6219_v39 }
 0x361   : > { %7009 = vmatpush3.bf16.msra.mxu1 %v8710_v53  ;;  %6995 = vmatprep.mubr.bf16.mxu1 %v7352_v38 }
 0x362   : > { %7002 = vmatprep.subr.bf16.mxu1 %v8719_v32 }
 0x365   : > { %7010 = vmatpush3.bf16.msra.mxu1 %v8719_v32 }
 0x366   : > { %7003 = vmatprep.subr.bf16.mxu1 %v8729_v17 }
 0x369   : > { %7011 = vmatpush3.bf16.msra.mxu1 %v8729_v17 }
 0x36a   : > { %7004 = vmatprep.subr.bf16.mxu1 %v8741_v11 }
 0x36d   : > { %7012 = vmatpush3.bf16.msra.mxu1 %v8741_v11 }
 0x36e   : > { %7005 = vmatprep.subr.bf16.mxu1 %v8759_v54 }
 0x371   : > { %7013 = vmatpush3.bf16.msra.mxu1 %v8759_v54 }
 0x372   : > { %7006 = vmatprep.subr.bf16.mxu1 %v8773_v1 }
 0x375   : > { %7014 = vmatpush3.bf16.msra.mxu1 %v8773_v1 }
 0x378   : > { %6996 = vmatmul.mubr.bf16.vlgmr.msra.gmra.mrb[4].mxu1 %v7353_v46 }
 0x391   : > { %v6993_v48 = vpop.f32.mrb[8].mxu0 }
 0x392   : > { %v5483_v22 = vpop.f32.mrb[9].mxu0 }
 0x393   : > { %v6994_v53 = vpop.f32.mrb[10].mxu0 }
 0x394   : > { %v5486_v32 = vpop.f32.mrb[11].mxu0 }
 0x42b   : > { %v6969_v17 = vpop.f32.mrb[0].mxu1 }
 0x42c   : > { %v7015_v11 = vadd.f32 %v6993_v48, %v6969_v17  ;;  %v5314_v29 = vpop.f32.mrb[1].mxu1 }
 0x42d   : > { %v7016_v54 = vadd.f32 %v5483_v22, %v5314_v29  ;;  %v6970_v55 = vpop.f32.mrb[2].mxu1 }
 0x42e   : > { %5525 = vst.msk [vmem:[%s305_s18 + $0x10] sm:$0xff] %vm5522_vm11, %v7015_v11  ;;  %v7017_v40 = vadd.f32 %v6994_v53, %v6970_v55  ;;  %v5317_v1 = vpop.f32.mrb[3].mxu1 }
 0x42f   : > { %5523 = vst.msk [vmem:[%s305_s18] sm:$0xff] %vm5522_vm11, %v7016_v54  ;;  %v7018_v42 = vadd.f32 %v5486_v32, %v5317_v1 }
 0x430   : > { %5526 = vst.msk [vmem:[%s305_s18 + $0x18] sm:$0xff] %vm5522_vm11, %v7017_v40 }
 0x431   : > { %5524 = vst.msk [vmem:[%s305_s18 + $0x8] sm:$0xff] %vm5522_vm11, %v7018_v42 }
 0x44b   : > { %v6997_v16 = vpop.f32.mrb[4].mxu1 }
 0x44c   : > { %5529 = vst.msk [vmem:[%s305_s18 + $0x30] sm:$0xff] %vm5522_vm11, %v6997_v16  ;;  %v5499_v43 = vpop.f32.mrb[5].mxu1 }
 0x44d   : > { %5527 = vst.msk [vmem:[%s305_s18 + $0x20] sm:$0xff] %vm5522_vm11, %v5499_v43  ;;  %v6998_v5 = vpop.f32.mrb[6].mxu1 }
 0x44e   : > { %5530 = vst.msk [vmem:[%s305_s18 + $0x38] sm:$0xff] %vm5522_vm11, %v6998_v5  ;;  %v5502_v30 = vpop.f32.mrb[7].mxu1 }
 0x44f   : > { %5528 = vst.msk [vmem:[%s305_s18 + $0x28] sm:$0xff] %vm5522_vm11, %v5502_v30 }
 0x450 PF: > { %s18_s27 = sadd.s32 1, %s7364_s27  }
 0x451   : > { %p15_p4 = scmp.ge.s32.totalorder %s18_s27, 4  }
 0x453   :  { %17 = sbr.rel (!%p15_p4) target bundleno = 1 (0x1), region = 108 }

</bundles_post_ra>
